<compile_context>
chip_gen: v7x
topology: tpu7x:2x2x1
jax: 0.10.0
libtpu: 0.0.40
codegen_flags: <defaults>
</compile_context>

<pallas_src>
import functools

import jax
import jax.numpy as jnp
from jax.experimental import pallas as pl
from jax.experimental.pallas import tpu as pltpu

LN_EPS = 1e-5
BN_EPS = 1e-5

_VMEM_LIMIT_CACHE = None
_ROLL_OK = None


# --------------------------------------------------------------------------
# Small helpers
# --------------------------------------------------------------------------
def calc_same_padding(kernel_size):
    pad = kernel_size // 2
    return (pad, pad - (kernel_size + 1) % 2)


def _vmem_limit():
    # v5e/v6e: 128 MiB VMEM per TensorCore -> allow big resident blocks.
    # v7x:     64 MiB -> keep the scoped limit <= 48 MiB.
    global _VMEM_LIMIT_CACHE
    if _VMEM_LIMIT_CACHE is None:
        lim = 64 * 1024 * 1024
        try:
            cap = int(pltpu.get_tpu_info().vmem_capacity_bytes)
            lim = (96 if cap >= 100 * 1024 * 1024 else 48) * 1024 * 1024
        except Exception:
            pass
        _VMEM_LIMIT_CACHE = lim
    return _VMEM_LIMIT_CACHE


def _compiler_params(dim_semantics):
    return pltpu.CompilerParams(dimension_semantics=dim_semantics,
                                vmem_limit_bytes=_vmem_limit())


def _rep_spec(shape):
    """Full-array block, replicated across a 1-D grid."""
    zeros = (0,) * len(shape)
    return pl.BlockSpec(shape, lambda i, _z=zeros: _z)


def _pick_row_tile(total):
    # Prefer big row tiles: fills the 256-wide MXU on v6e/v7x (128 already
    # fills v5e) and amortizes the ~0.35us per-grid-step overhead.
    for t in (512, 256, 128, 64, 32, 16, 8):
        if total % t == 0:
            return t
    return total


def _wcast(w, mm_dtype):
    return w.astype(mm_dtype) if w.dtype != mm_dtype else w


def _layernorm(x, g, b, eps):
    mu = jnp.mean(x, axis=-1, keepdims=True)
    var = jnp.mean((x - mu) ** 2, axis=-1, keepdims=True)
    return (x - mu) * jax.lax.rsqrt(var + eps) * g + b


def _softmax_last(logits, approx):
    m = jnp.max(logits, axis=-1, keepdims=True)
    e = jnp.exp(logits - m)
    s = jnp.sum(e, axis=-1, keepdims=True)
    # approx=True routes the divide to the EUP fast path (bf16 mm run only;
    # the f32 parity run keeps the exact reciprocal).
    return e * pl.reciprocal(s, approx=approx)


# --------------------------------------------------------------------------
# pltpu.roll support probe (numerically checks direction + stride semantics)
# --------------------------------------------------------------------------
def _roll_probe_kernel(x_ref, o_ref):
    x = x_ref[...]                                           # (2, 16, 128)
    a = pltpu.roll(x[0], 3, 0)                               # static sublane roll
    b = pltpu.roll(x, 0, 2, stride=1, stride_axis=1)         # strided lane roll
    o_ref[...] = b + a[None]


def _roll_supported():
    global _ROLL_OK
    if _ROLL_OK is None:
        ok = False
        try:
            if hasattr(pltpu, "roll"):
                x = jax.random.normal(jax.random.PRNGKey(1), (2, 16, 128),
                                      jnp.float32)
                got = pl.pallas_call(
                    _roll_probe_kernel,
                    out_shape=jax.ShapeDtypeStruct((2, 16, 128), jnp.float32),
                )(x)
                exp_b = jnp.stack(
                    [jnp.stack([jnp.roll(x[h, i], i) for i in range(16)], 0)
                     for h in range(2)], 0)
                exp = exp_b + jnp.roll(x[0], 3, axis=0)[None]
                ok = bool(jnp.allclose(got, exp, atol=1e-6))
        except Exception:
            ok = False
        _ROLL_OK = ok
    return _ROLL_OK


# --------------------------------------------------------------------------
# Kernels
# --------------------------------------------------------------------------
def _ff_kernel(x_ref, g_ref, b_ref, w1_ref, b1_ref, w2_ref, b2_ref, o_ref,
               *, eps):
    # Scale(0.5, PreNorm(LayerNorm, FeedForward)) + residual; row-tiled.
    x = x_ref[...]                                             # (tr, D) f32
    y = _layernorm(x, g_ref[...], b_ref[...], eps)
    h = jnp.dot(y.astype(w1_ref.dtype), w1_ref[...],
                preferred_element_type=jnp.float32) + b1_ref[...]
    h = h * jax.nn.sigmoid(h)                                  # Swish (f32)
    out = jnp.dot(h.astype(w2_ref.dtype), w2_ref[...],
                  preferred_element_type=jnp.float32) + b2_ref[...]
    o_ref[...] = (0.5 * out + x).astype(o_ref.dtype)


def _ff_post_kernel(x_ref, g_ref, b_ref, w1_ref, b1_ref, w2_ref, b2_ref,
                    pg_ref, pb_ref, o_ref, *, eps):
    # ff2 with the block's post-LayerNorm fused into the epilogue.
    x = x_ref[...]
    y = _layernorm(x, g_ref[...], b_ref[...], eps)
    h = jnp.dot(y.astype(w1_ref.dtype), w1_ref[...],
                preferred_element_type=jnp.float32) + b1_ref[...]
    h = h * jax.nn.sigmoid(h)
    out = jnp.dot(h.astype(w2_ref.dtype), w2_ref[...],
                  preferred_element_type=jnp.float32) + b2_ref[...]
    z = 0.5 * out + x
    o_ref[...] = _layernorm(z, pg_ref[...], pb_ref[...], eps).astype(o_ref.dtype)


def _attn_kernel(x_ref, g_ref, b_ref, wqkv_ref, wo_ref, bo_ref, relt_ref,
                 o_ref, *, heads, dim_head, scale, eps, use_roll, approx_recip):
    # PreNorm(LayerNorm, Attention) + residual   (mask=None path)
    x = x_ref[0]                                               # (N, D) f32
    n = x.shape[0]
    inner = heads * dim_head
    mm = wqkv_ref.dtype

    y = _layernorm(x, g_ref[...], b_ref[...], eps)
    qkv = jnp.dot(y.astype(mm), wqkv_ref[...],
                  preferred_element_type=jnp.float32)          # (N, 3*inner)
    q = qkv[:, :inner]
    k = qkv[:, inner:2 * inner]
    v = qkv[:, 2 * inner:]

    def split_heads(t):  # (N, H*Dh) -> (H, N, Dh) via static slices + stack
        return jnp.stack(
            [t[:, h * dim_head:(h + 1) * dim_head] for h in range(heads)],
            axis=0)

    q3 = split_heads(q).astype(mm)
    k3 = split_heads(k).astype(mm)
    v3 = split_heads(v).astype(mm)

    # content scores: one head-batched MXU matmul
    dots = jnp.einsum("hid,hjd->hij", q3, k3,
                      preferred_element_type=jnp.float32)      # (H, N, N)

    # relative-position scores: ONE (H*N, Dh) @ (Dh, W) MXU matmul, then a
    # single per-sublane lane rotation selects the (H, N, N) band.
    relt = relt_ref[...]                                       # (Dh, W)
    w = relt.shape[-1]
    pos_full = jnp.dot(q3.reshape(heads * n, dim_head), relt,
                       preferred_element_type=jnp.float32)     # (H*N, W)
    pos_full = pos_full.reshape(heads, n, w)
    if use_roll:
        # Row i (every head) rotated left by i lanes; the wrapped table layout
        # (see attn_block) puts rel index clip(i-j) at lane j.  Keep lanes :N.
        pos = pltpu.roll(pos_full, 0, 2, stride=1, stride_axis=1)[:, :, :n]
    else:
        # Fallback skew (two static slices per row) if dynamic rotate is
        # unavailable on this JAX/libtpu combination.
        rows = [pos_full[:, 0:1, 0:n]]
        for i in range(1, n):
            rows.append(jnp.concatenate(
                [pos_full[:, i:i + 1, w - i:w], pos_full[:, i:i + 1, 0:n - i]],
                axis=2))
        pos = jnp.concatenate(rows, axis=1)                    # (H, N, N)

    attn = _softmax_last((dots + pos) * scale, approx_recip)   # f32 softmax

    ov = jnp.einsum("hij,hjd->hid", attn.astype(mm), v3,
                    preferred_element_type=jnp.float32)        # (H, N, Dh)
    cat = jnp.concatenate([ov[h] for h in range(heads)], axis=-1)
    out = jnp.dot(cat.astype(mm), wo_ref[...],
                  preferred_element_type=jnp.float32) + bo_ref[...]
    o_ref[0] = (out + x).astype(o_ref.dtype)


def _conv_pre_kernel(x_ref, g_ref, b_ref, w1a_ref, b1a_ref, w1b_ref, b1b_ref,
                     dww_ref, dwb_ref, conv_ref, s1_ref, s2_ref,
                     *, pad_l, pad_r, eps, use_roll):
    # Per-batch: LayerNorm -> pointwise1 (split GLU weights) -> GLU ->
    # depthwise conv ("same" padding).  Also emits per-batch BN partial sums.
    x = x_ref[0]                                               # (N, D)
    n = x.shape[0]
    mm = w1a_ref.dtype
    y = _layernorm(x, g_ref[...], b_ref[...], eps)
    yc = y.astype(mm)
    a = jnp.dot(yc, w1a_ref[...], preferred_element_type=jnp.float32) + b1a_ref[...]
    g = jnp.dot(yc, w1b_ref[...], preferred_element_type=jnp.float32) + b1b_ref[...]
    glu = a * jax.nn.sigmoid(g)                                # (N, C)
    c = glu.shape[-1]
    ksz = dww_ref.shape[0]

    conv = jnp.zeros((n, c), jnp.float32)
    if use_roll:
        # K sublane rotations (XLU slot) + edge masks: no padded (N+K-1, C)
        # copy, no sublane-misaligned slices.
        row = jax.lax.broadcasted_iota(jnp.int32, (n, 1), 0)
        for kk in range(ksz):
            s = pad_l - kk                       # conv[r] += glu[r - s] * w[k]
            shifted = pltpu.roll(glu, s % n, 0)
            valid = (row >= s) & (row < n + s)
            conv = conv + jnp.where(valid, shifted, 0.0) * dww_ref[kk, :]
    else:
        gp = jnp.concatenate(
            [jnp.zeros((pad_l, c), jnp.float32), glu,
             jnp.zeros((pad_r, c), jnp.float32)], axis=0)      # (N+K-1, C)
        for kk in range(ksz):
            conv = conv + gp[kk:kk + n, :] * dww_ref[kk, :]
    conv = conv + dwb_ref[...]

    conv_ref[0] = conv.astype(conv_ref.dtype)
    s1_ref[...] = jnp.sum(conv, axis=0)[None, None, :]
    s2_ref[...] = jnp.sum(conv * conv, axis=0)[None, None, :]


def _conv_post_kernel(conv_ref, x_ref, scale_ref, shift_ref, w2_ref, b2_ref,
                      o_ref):
    # BN (precomputed scale/shift) -> Swish -> pointwise2 + residual; row-tiled.
    conv = conv_ref[...].astype(jnp.float32)                   # (tr, C)
    x = x_ref[...]                                             # (tr, D)
    bn = conv * scale_ref[...] + shift_ref[...]
    sw = bn * jax.nn.sigmoid(bn)
    out = jnp.dot(sw.astype(w2_ref.dtype), w2_ref[...],
                  preferred_element_type=jnp.float32) + b2_ref[...]
    o_ref[...] = (out + x).astype(o_ref.dtype)


# --------------------------------------------------------------------------
# Wrappers (pallas_call plumbing)
# --------------------------------------------------------------------------
def ff_block(x, p, *, post_ln=None, mm_dtype=jnp.float32):
    B, N, D = x.shape
    hid = p["w1"].shape[1]
    rows = B * N
    tr = _pick_row_tile(rows)
    x2 = x.reshape(rows, D)
    x_spec = pl.BlockSpec((tr, D), lambda r: (r, 0))

    w1 = _wcast(p["w1"], mm_dtype)
    w2 = _wcast(p["w2"], mm_dtype)

    base_specs = [x_spec,
                  _rep_spec((1, D)), _rep_spec((1, D)),
                  _rep_spec((D, hid)), _rep_spec((1, hid)),
                  _rep_spec((hid, D)), _rep_spec((1, D))]
    base_args = (x2, p["ln_g"], p["ln_b"], w1, p["b1"], w2, p["b2"])

    if post_ln is None:
        kern = functools.partial(_ff_kernel, eps=LN_EPS)
        in_specs, args = base_specs, base_args
    else:
        kern = functools.partial(_ff_post_kernel, eps=LN_EPS)
        in_specs = base_specs + [_rep_spec((1, D)), _rep_spec((1, D))]
        args = base_args + (post_ln["ln_g"], post_ln["ln_b"])

    out = pl.pallas_call(
        kern,
        out_shape=jax.ShapeDtypeStruct((rows, D), x.dtype),
        grid=(rows // tr,),
        in_specs=in_specs,
        out_specs=x_spec,
        compiler_params=_compiler_params(("parallel",)),
    )(*args)
    return out.reshape(B, N, D)


def attn_block(x, p, *, heads, dim_head, max_pos, mm_dtype=jnp.float32):
    B, N, D = x.shape
    inner = heads * dim_head

    # Lane-aligned "wrapped" relative-position table (tiny plain-JAX gather):
    # column c holds rel_table[clip(d)] with d = ((N-1-c) mod W) - (N-1), so
    # rotating row i left by i lanes puts rel index clip(i-j) at lane j.
    W = ((2 * N - 1 + 127) // 128) * 128
    cidx = jnp.arange(W)
    d = jnp.mod((N - 1) - cidx, W) - (N - 1)
    ridx = jnp.clip(d, -max_pos, max_pos) + max_pos
    rel_t = _wcast(jnp.take(p["rel_table"], ridx, axis=0).T, mm_dtype)  # (Dh, W)

    wqkv = _wcast(jnp.concatenate([p["wq"], p["wkv"]], axis=1), mm_dtype)
    wo = _wcast(p["wo"], mm_dtype)

    return pl.pallas_call(
        functools.partial(_attn_kernel, heads=heads, dim_head=dim_head,
                          scale=dim_head ** -0.5, eps=LN_EPS,
                          use_roll=_roll_supported(),
                          approx_recip=(mm_dtype != jnp.float32)),
        out_shape=jax.ShapeDtypeStruct((B, N, D), x.dtype),
        grid=(B,),
        in_specs=[
            pl.BlockSpec((1, N, D), lambda b: (b, 0, 0)),
            _rep_spec((1, D)), _rep_spec((1, D)),
            _rep_spec((D, 3 * inner)),
            _rep_spec((inner, D)), _rep_spec((1, D)),
            _rep_spec((dim_head, W)),
        ],
        out_specs=pl.BlockSpec((1, N, D), lambda b: (b, 0, 0)),
        compiler_params=_compiler_params(("parallel",)),
    )(x, p["ln_g"], p["ln_b"], wqkv, wo, p["bo"], rel_t)


def conv_block(x, p, *, pad, mm_dtype=jnp.float32):
    B, N, D = x.shape
    K, C = p["dw_w"].shape
    inter_dtype = mm_dtype  # bf16 intermediate on the perf path, f32 otherwise

    w1a = _wcast(p["pw1_wa"], mm_dtype)
    w1b = _wcast(p["pw1_wb"], mm_dtype)

    # Pass 1 (per batch): GLU + depthwise conv + per-batch BN partial sums.
    conv_out, s1, s2 = pl.pallas_call(
        functools.partial(_conv_pre_kernel, pad_l=pad[0], pad_r=pad[1],
                          eps=LN_EPS, use_roll=_roll_supported()),
        out_shape=(jax.ShapeDtypeStruct((B, N, C), inter_dtype),
                   jax.ShapeDtypeStruct((B, 1, C), jnp.float32),
                   jax.ShapeDtypeStruct((B, 1, C), jnp.float32)),
        grid=(B,),
        in_specs=[
            pl.BlockSpec((1, N, D), lambda b: (b, 0, 0)),
            _rep_spec((1, D)), _rep_spec((1, D)),
            _rep_spec((D, C)), _rep_spec((1, C)),
            _rep_spec((D, C)), _rep_spec((1, C)),
            _rep_spec((K, C)), _rep_spec((1, C)),
        ],
        out_specs=(pl.BlockSpec((1, N, C), lambda b: (b, 0, 0)),
                   pl.BlockSpec((1, 1, C), lambda b: (b, 0, 0)),
                   pl.BlockSpec((1, 1, C), lambda b: (b, 0, 0))),
        compiler_params=_compiler_params(("parallel",)),
    )(x, p["ln_g"], p["ln_b"], w1a, p["pw1_ba"], w1b, p["pw1_bb"],
      p["dw_w"], p["dw_b"])

    # Finalize BatchNorm batch statistics (training-mode) — tiny glue.
    cnt = float(B * N)
    mean = jnp.sum(s1, axis=(0, 1)) / cnt
    var = jnp.maximum(jnp.sum(s2, axis=(0, 1)) / cnt - mean * mean, 0.0)
    bn_scale = (p["bn_g"][0] * jax.lax.rsqrt(var + BN_EPS))[None, :]    # (1, C)
    bn_shift = (p["bn_b"][0] - mean * bn_scale[0])[None, :]             # (1, C)

    # Pass 2 (flattened rows): BN + Swish + pointwise2 + residual.
    rows = B * N
    tr = _pick_row_tile(rows)
    conv2 = conv_out.reshape(rows, C)
    x2 = x.reshape(rows, D)
    w2 = _wcast(p["pw2_w"], mm_dtype)
    out = pl.pallas_call(
        _conv_post_kernel,
        out_shape=jax.ShapeDtypeStruct((rows, D), x.dtype),
        grid=(rows // tr,),
        in_specs=[
            pl.BlockSpec((tr, C), lambda r: (r, 0)),
            pl.BlockSpec((tr, D), lambda r: (r, 0)),
            _rep_spec((1, C)), _rep_spec((1, C)),
            _rep_spec((C, D)), _rep_spec((1, D)),
        ],
        out_specs=pl.BlockSpec((tr, D), lambda r: (r, 0)),
        compiler_params=_compiler_params(("parallel",)),
    )(conv2, x2, bn_scale, bn_shift, w2, p["pw2_b"])
    return out.reshape(B, N, D)


def conformer_forward(x, params, cfg, mm_dtype=jnp.float32):
    for blk in params:
        x = ff_block(x, blk["ff1"], mm_dtype=mm_dtype)
        x = attn_block(x, blk["attn"], heads=cfg["heads"],
                       dim_head=cfg["dim_head"], max_pos=cfg["max_pos"],
                       mm_dtype=mm_dtype)
        x = conv_block(x, blk["conv"], pad=cfg["pad"], mm_dtype=mm_dtype)
        x = ff_block(x, blk["ff2"], post_ln=blk["post"], mm_dtype=mm_dtype)
    return x


# --------------------------------------------------------------------------
# Deterministic parameter init + pure-JAX reference for verification
# --------------------------------------------------------------------------
def init_params(key, *, depth, dim, heads, dim_head, ff_mult, conv_exp,
                conv_k, max_pos):
    inner = heads * dim_head
    cinner = dim * conv_exp
    hidden = dim * ff_mult
    params = []
    for _ in range(depth):
        key, *ks = jax.random.split(key, 40)
        kit = iter(ks)
        nk = lambda: next(kit)
        r = lambda k, s, sc=0.05: jax.random.normal(k, s, jnp.float32) * sc
        gamma = lambda k, n: 1.0 + 0.1 * jax.random.normal(k, (1, n), jnp.float32)
        beta = lambda k, n: 0.1 * jax.random.normal(k, (1, n), jnp.float32)
        blk = {
            "ff1": dict(ln_g=gamma(nk(), dim), ln_b=beta(nk(), dim),
                        w1=r(nk(), (dim, hidden)), b1=r(nk(), (1, hidden)),
                        w2=r(nk(), (hidden, dim)), b2=r(nk(), (1, dim))),
            "attn": dict(ln_g=gamma(nk(), dim), ln_b=beta(nk(), dim),
                         wq=r(nk(), (dim, inner)), wkv=r(nk(), (dim, 2 * inner)),
                         wo=r(nk(), (inner, dim)), bo=r(nk(), (1, dim)),
                         rel_table=r(nk(), (2 * max_pos + 1, dim_head))),
            "conv": dict(ln_g=gamma(nk(), dim), ln_b=beta(nk(), dim),
                         pw1_wa=r(nk(), (dim, cinner)), pw1_ba=r(nk(), (1, cinner)),
                         pw1_wb=r(nk(), (dim, cinner)), pw1_bb=r(nk(), (1, cinner)),
                         dw_w=r(nk(), (conv_k, cinner)), dw_b=r(nk(), (1, cinner)),
                         bn_g=gamma(nk(), cinner), bn_b=beta(nk(), cinner),
                         pw2_w=r(nk(), (cinner, dim)), pw2_b=r(nk(), (1, dim))),
            "ff2": dict(ln_g=gamma(nk(), dim), ln_b=beta(nk(), dim),
                        w1=r(nk(), (dim, hidden)), b1=r(nk(), (1, hidden)),
                        w2=r(nk(), (hidden, dim)), b2=r(nk(), (1, dim))),
            "post": dict(ln_g=gamma(nk(), dim), ln_b=beta(nk(), dim)),
        }
        params.append(blk)
    return params


def reference_forward(x, params, cfg):
    def ln(t, g, b):
        mu = t.mean(-1, keepdims=True)
        var = ((t - mu) ** 2).mean(-1, keepdims=True)
        return (t - mu) * jax.lax.rsqrt(var + LN_EPS) * g + b

    H, Dh, max_pos = cfg["heads"], cfg["dim_head"], cfg["max_pos"]
    pad_l, pad_r = cfg["pad"]
    for blk in params:
        # ff1
        p = blk["ff1"]
        y = ln(x, p["ln_g"], p["ln_b"])
        h = y @ p["w1"] + p["b1"]; h = h * jax.nn.sigmoid(h)
        x = 0.5 * (h @ p["w2"] + p["b2"]) + x
        # attention
        p = blk["attn"]
        y = ln(x, p["ln_g"], p["ln_b"])
        B, N, _ = x.shape
        q = y @ p["wq"]; kv = y @ p["wkv"]
        inner = q.shape[-1]
        k_, v_ = kv[..., :inner], kv[..., inner:]
        sp = lambda t: t.reshape(B, N, H, Dh).transpose(0, 2, 1, 3)
        qh, kh, vh = sp(q), sp(k_), sp(v_)
        scale = Dh ** -0.5
        dots = jnp.einsum("bhid,bhjd->bhij", qh, kh) * scale
        seq = jnp.arange(N)
        dist = jnp.clip(seq[:, None] - seq[None, :], -max_pos, max_pos) + max_pos
        rel = jnp.take(p["rel_table"], dist, axis=0)
        pos = jnp.einsum("bhnd,nrd->bhnr", qh, rel) * scale
        attn = jax.nn.softmax(dots + pos, axis=-1)
        o = jnp.einsum("bhij,bhjd->bhid", attn, vh).transpose(0, 2, 1, 3)
        o = o.reshape(B, N, inner)
        x = o @ p["wo"] + p["bo"] + x
        # conv module
        p = blk["conv"]
        y = ln(x, p["ln_g"], p["ln_b"])
        a = y @ p["pw1_wa"] + p["pw1_ba"]
        g_ = y @ p["pw1_wb"] + p["pw1_bb"]
        glu = a * jax.nn.sigmoid(g_)
        gp = jnp.pad(glu, ((0, 0), (pad_l, pad_r), (0, 0)))
        K = p["dw_w"].shape[0]
        conv = sum(gp[:, k:k + N, :] * p["dw_w"][k] for k in range(K)) + p["dw_b"]
        mean = conv.mean(axis=(0, 1)); var = ((conv - mean) ** 2).mean(axis=(0, 1))
        bn = (conv - mean) * jax.lax.rsqrt(var + BN_EPS) * p["bn_g"] + p["bn_b"]
        sw = bn * jax.nn.sigmoid(bn)
        x = sw @ p["pw2_w"] + p["pw2_b"] + x
        # ff2
        p = blk["ff2"]
        y = ln(x, p["ln_g"], p["ln_b"])
        h = y @ p["w1"] + p["b1"]; h = h * jax.nn.sigmoid(h)
        x = 0.5 * (h @ p["w2"] + p["b2"]) + x
        # post norm
        p = blk["post"]
        x = ln(x, p["ln_g"], p["ln_b"])
    return x


# --------------------------------------------------------------------------
if __name__ == "__main__":
    # "highest" keeps the f32 parity check exact (kernels and the pure-JAX
    # reference multi-pass f32 matmuls identically).  Performance runs should
    # use mm_dtype=bf16 (single-pass MXU on v5e/v6e/v7x), where this global is
    # irrelevant since the matmul operands are already bf16.
    jax.config.update("jax_default_matmul_precision", "highest")

    # Small, lane-dense shapes (feature dims are multiples of 128).
    B, N, D = 2, 16, 128
    cfg = dict(depth=2, dim=D, heads=2, dim_head=64, ff_mult=4,
               conv_exp=2, conv_k=7, max_pos=64)
    cfg["pad"] = calc_same_padding(cfg["conv_k"])

    key = jax.random.PRNGKey(0)
    kx, kp = jax.random.split(key)
    x = jax.random.normal(kx, (B, N, D), jnp.float32)
    params = init_params(kp, depth=cfg["depth"], dim=D, heads=cfg["heads"],
                         dim_head=cfg["dim_head"], ff_mult=cfg["ff_mult"],
                         conv_exp=cfg["conv_exp"], conv_k=cfg["conv_k"],
                         max_pos=cfg["max_pos"])

    # f32 matmul path: exact parity with the pure-JAX reference.
    out = jax.block_until_ready(conformer_forward(x, params, cfg,
                                                  mm_dtype=jnp.float32))
    ref = reference_forward(x, params, cfg)
    assert out.shape == (B, N, D)
    err = jnp.max(jnp.abs(out - ref))
    assert jnp.allclose(out, ref, rtol=1e-4, atol=1e-4), f"max abs diff = {err}"

    # bf16 matmul path (recommended for perf on all generations): bf16
    # weights/operands + bf16 conv intermediate, f32 accumulation and f32
    # LayerNorm/BN/softmax.  Loose sanity check only (bf16 rounding).
    out_bf16 = jax.block_until_ready(conformer_forward(x, params, cfg,
                                                       mm_dtype=jnp.bfloat16))
    assert jnp.max(jnp.abs(out_bf16 - ref)) < 0.25

    print("KERNEL_OK")
</pallas_src>

<mosaic_0001>
module attributes {stable_mosaic.version = 11 : i64} {
  func.func @_ff_kernel(%arg0: i32, %arg1: memref<32x128xf32, #tpu.memory_space<vmem>>, %arg2: memref<1x128xf32, #tpu.memory_space<vmem>>, %arg3: memref<1x128xf32, #tpu.memory_space<vmem>>, %arg4: memref<128x512xf32, #tpu.memory_space<vmem>>, %arg5: memref<1x512xf32, #tpu.memory_space<vmem>>, %arg6: memref<512x128xf32, #tpu.memory_space<vmem>>, %arg7: memref<1x128xf32, #tpu.memory_space<vmem>>, %arg8: memref<32x128xf32, #tpu.memory_space<vmem>>) attributes {dimension_semantics = [#tpu.dimension_semantics<parallel>], iteration_bounds = array<i64: 1>, scalar_prefetch = 0 : i64, scratch_operands = 0 : i64, tpu.core_type = #tpu.core_type<tc>, window_params = [{transform_indices = @transform_0, window_bounds = array<i64: 32, 128>}, {pipeline_mode = #tpu.pipeline_mode<synchronous>, transform_indices = @transform_1, window_bounds = array<i64: 1, 128>}, {pipeline_mode = #tpu.pipeline_mode<synchronous>, transform_indices = @transform_2, window_bounds = array<i64: 1, 128>}, {pipeline_mode = #tpu.pipeline_mode<synchronous>, transform_indices = @transform_3, window_bounds = array<i64: 128, 512>}, {pipeline_mode = #tpu.pipeline_mode<synchronous>, transform_indices = @transform_4, window_bounds = array<i64: 1, 512>}, {pipeline_mode = #tpu.pipeline_mode<synchronous>, transform_indices = @transform_5, window_bounds = array<i64: 512, 128>}, {pipeline_mode = #tpu.pipeline_mode<synchronous>, transform_indices = @transform_6, window_bounds = array<i64: 1, 128>}, {transform_indices = @transform_7, window_bounds = array<i64: 32, 128>}]} {
    %c0 = arith.constant 0 : index
    %c0_0 = arith.constant 0 : index
    %0 = vector.load %arg1[%c0, %c0_0] : memref<32x128xf32, #tpu.memory_space<vmem>>, vector<32x128xf32>
    %c0_1 = arith.constant 0 : index
    %c0_2 = arith.constant 0 : index
    %1 = vector.load %arg2[%c0_1, %c0_2] : memref<1x128xf32, #tpu.memory_space<vmem>>, vector<1x128xf32>
    %c0_3 = arith.constant 0 : index
    %c0_4 = arith.constant 0 : index
    %2 = vector.load %arg3[%c0_3, %c0_4] : memref<1x128xf32, #tpu.memory_space<vmem>>, vector<1x128xf32>
    %cst = arith.constant dense<0.000000e+00> : vector<32xf32>
    %3 = vector.multi_reduction <add>, %0, %cst [1] : vector<32x128xf32> to vector<32xf32>
    %4 = vector.shape_cast %3 : vector<32xf32> to vector<32x1xf32>
    %cst_5 = arith.constant 1.280000e+02 : f32
    %5 = vector.broadcast %cst_5 : f32 to vector<32x1xf32>
    %6 = arith.divf %4, %5 : vector<32x1xf32>
    %7 = vector.broadcast %6 : vector<32x1xf32> to vector<32x128xf32>
    %8 = arith.subf %0, %7 : vector<32x128xf32>
    %9 = arith.mulf %8, %8 : vector<32x128xf32>
    %cst_6 = arith.constant dense<0.000000e+00> : vector<32xf32>
    %10 = vector.multi_reduction <add>, %9, %cst_6 [1] : vector<32x128xf32> to vector<32xf32>
    %11 = vector.shape_cast %10 : vector<32xf32> to vector<32x1xf32>
    %cst_7 = arith.constant 1.280000e+02 : f32
    %12 = vector.broadcast %cst_7 : f32 to vector<32x1xf32>
    %13 = arith.divf %11, %12 : vector<32x1xf32>
    %14 = vector.broadcast %6 : vector<32x1xf32> to vector<32x128xf32>
    %15 = arith.subf %0, %14 : vector<32x128xf32>
    %cst_8 = arith.constant 9.99999974E-6 : f32
    %16 = vector.broadcast %cst_8 : f32 to vector<32x1xf32>
    %17 = arith.addf %13, %16 : vector<32x1xf32>
    %18 = math.rsqrt %17 : vector<32x1xf32>
    %19 = vector.broadcast %18 : vector<32x1xf32> to vector<32x128xf32>
    %20 = arith.mulf %15, %19 : vector<32x128xf32>
    %21 = vector.broadcast %1 : vector<1x128xf32> to vector<32x128xf32>
    %22 = arith.mulf %20, %21 : vector<32x128xf32>
    %23 = vector.broadcast %2 : vector<1x128xf32> to vector<32x128xf32>
    %24 = arith.addf %22, %23 : vector<32x128xf32>
    %c0_9 = arith.constant 0 : index
    %c0_10 = arith.constant 0 : index
    %25 = vector.load %arg4[%c0_9, %c0_10] : memref<128x512xf32, #tpu.memory_space<vmem>>, vector<128x512xf32>
    %cst_11 = arith.constant dense<0.000000e+00> : vector<32x512xf32>
    %26 = tpu.matmul %24, %25, %cst_11 {dimension_numbers = #tpu.dot_dimension_numbers<[1], [0], [0], [1], [0, 0, 1, 1], [], []>, precision = #tpu.contract_precision<fp32>} : vector<32x128xf32>, vector<128x512xf32>, vector<32x512xf32> -> vector<32x512xf32>
    %c0_12 = arith.constant 0 : index
    %c0_13 = arith.constant 0 : index
    %27 = vector.load %arg5[%c0_12, %c0_13] : memref<1x512xf32, #tpu.memory_space<vmem>>, vector<1x512xf32>
    %28 = vector.broadcast %27 : vector<1x512xf32> to vector<32x512xf32>
    %29 = arith.addf %26, %28 : vector<32x512xf32>
    %30 = arith.negf %29 : vector<32x512xf32>
    %31 = math.exp %30 : vector<32x512xf32>
    %cst_14 = arith.constant 1.000000e+00 : f32
    %32 = vector.broadcast %cst_14 : f32 to vector<32x512xf32>
    %33 = arith.addf %32, %31 : vector<32x512xf32>
    %34 = arith.divf %32, %33 : vector<32x512xf32>
    %35 = arith.mulf %29, %34 : vector<32x512xf32>
    %c0_15 = arith.constant 0 : index
    %c0_16 = arith.constant 0 : index
    %36 = vector.load %arg6[%c0_15, %c0_16] : memref<512x128xf32, #tpu.memory_space<vmem>>, vector<512x128xf32>
    %cst_17 = arith.constant dense<0.000000e+00> : vector<32x128xf32>
    %37 = tpu.matmul %35, %36, %cst_17 {dimension_numbers = #tpu.dot_dimension_numbers<[1], [0], [0], [1], [0, 0, 1, 1], [], []>, precision = #tpu.contract_precision<fp32>} : vector<32x512xf32>, vector<512x128xf32>, vector<32x128xf32> -> vector<32x128xf32>
    %c0_18 = arith.constant 0 : index
    %c0_19 = arith.constant 0 : index
    %38 = vector.load %arg7[%c0_18, %c0_19] : memref<1x128xf32, #tpu.memory_space<vmem>>, vector<1x128xf32>
    %39 = vector.broadcast %38 : vector<1x128xf32> to vector<32x128xf32>
    %40 = arith.addf %37, %39 : vector<32x128xf32>
    %cst_20 = arith.constant 5.000000e-01 : f32
    %41 = vector.broadcast %cst_20 : f32 to vector<32x128xf32>
    %42 = arith.mulf %41, %40 : vector<32x128xf32>
    %43 = arith.addf %42, %0 : vector<32x128xf32>
    %c0_21 = arith.constant 0 : index
    %c0_22 = arith.constant 0 : index
    %44 = vector.load %arg8[%c0_21, %c0_22] : memref<32x128xf32, #tpu.memory_space<vmem>>, vector<32x128xf32>
    tpu.vector_store %arg8[%c0_21, %c0_22], %43 {strides = array<i32>} : memref<32x128xf32, #tpu.memory_space<vmem>>, vector<32x128xf32>,
    return
  }
  func.func @transform_0(%arg0: i32) -> (i32, i32) {
    %c0_i32 = arith.constant 0 : i32
    %c0_i32_0 = arith.constant 0 : i32
    return %arg0, %c0_i32 : i32, i32
  }
  func.func @transform_1(%arg0: i32) -> (i32, i32) {
    %c0_i32 = arith.constant 0 : i32
    %c0_i32_0 = arith.constant 0 : i32
    %c0_i32_1 = arith.constant 0 : i32
    return %c0_i32, %c0_i32_0 : i32, i32
  }
  func.func @transform_2(%arg0: i32) -> (i32, i32) {
    %c0_i32 = arith.constant 0 : i32
    %c0_i32_0 = arith.constant 0 : i32
    %c0_i32_1 = arith.constant 0 : i32
    return %c0_i32, %c0_i32_0 : i32, i32
  }
  func.func @transform_3(%arg0: i32) -> (i32, i32) {
    %c0_i32 = arith.constant 0 : i32
    %c0_i32_0 = arith.constant 0 : i32
    %c0_i32_1 = arith.constant 0 : i32
    return %c0_i32, %c0_i32_0 : i32, i32
  }
  func.func @transform_4(%arg0: i32) -> (i32, i32) {
    %c0_i32 = arith.constant 0 : i32
    %c0_i32_0 = arith.constant 0 : i32
    %c0_i32_1 = arith.constant 0 : i32
    return %c0_i32, %c0_i32_0 : i32, i32
  }
  func.func @transform_5(%arg0: i32) -> (i32, i32) {
    %c0_i32 = arith.constant 0 : i32
    %c0_i32_0 = arith.constant 0 : i32
    %c0_i32_1 = arith.constant 0 : i32
    return %c0_i32, %c0_i32_0 : i32, i32
  }
  func.func @transform_6(%arg0: i32) -> (i32, i32) {
    %c0_i32 = arith.constant 0 : i32
    %c0_i32_0 = arith.constant 0 : i32
    %c0_i32_1 = arith.constant 0 : i32
    return %c0_i32, %c0_i32_0 : i32, i32
  }
  func.func @transform_7(%arg0: i32) -> (i32, i32) {
    %c0_i32 = arith.constant 0 : i32
    %c0_i32_0 = arith.constant 0 : i32
    return %arg0, %c0_i32 : i32, i32
  }
}

</mosaic_0001>

<bundles_post_ra>
// kernel: tpu_custom_call.1
= control target key start
LH: loop header
LB: loop body
LE: loop exit
PB: predicated region body
PF: predicated region fallthrough
CT: control target
= control target key end

     0   :  { %12 = vsyncpa [#allocation3], 0  ;;  %s9480_s0 = inlined_call_operand.hbm [shape: f32[32,128], index: 0, kind: input, shape index: {}]   ;;  %s9481_s1 = inlined_call_operand.hbm [shape: f32[1,128], index: 1, kind: input, shape index: {}]   ;;  %s9482_s2 = inlined_call_operand.hbm [shape: f32[1,128], index: 2, kind: input, shape index: {}]   ;;  %s9483_s3 = inlined_call_operand.hbm [shape: f32[128,512], index: 3, kind: input, shape index: {}]   ;;  %s9484_s4 = inlined_call_operand.hbm [shape: f32[1,512], index: 4, kind: input, shape index: {}]   ;;  %s9485_s5 = inlined_call_operand.hbm [shape: f32[512,128], index: 5, kind: input, shape index: {}]   ;;  %s9486_s6 = inlined_call_operand.hbm [shape: f32[1,128], index: 6, kind: input, shape index: {}]   ;;  %s9487_s7 = inlined_call_operand.hbm [shape: f32[32,128], index: 7, kind: output, shape index: {}]  }
   0x1   :  { %13 = vsyncpa [#allocation6], 0 }
   0x2   :  { %14 = vsyncpa [#allocation9], 0 }
   0x3   :  { %15 = vsyncpa [#allocation12], 0 }
   0x4   :  { %16 = vsyncpa [#allocation4], 0  ;;  %s6236_s24 = smov [#allocation5]   ;;  %s6237_s26 = smov [#allocation8]  }
   0x5   :  { %s35_s25 = sshll.u32 %s6236_s24, 4  ;;  %s54_s27 = sshll.u32 %s6237_s26, 4  ;;  %s36_s25 = int_to_ptr.vmem [resolvable:$true] %s35_s25  ;;  %s6289_s27 = int_to_ptr.vmem [resolvable:$true] %s54_s27 }
   0x6   :  { %s6050_s30 = scalar_lea.hbm %s9481_s1, 16 }
   0x7   :  { %p6051_p0 = scmp.ne.s32.totalorder %s9481_s1, %s6050_s30  ;;  %p6054_p1 = scmp.lt.u32.totalorder %s6050_s30, %s9481_s1 }
   0x9   :  { %p6056_p2 = pnand %p6054_p1, %p6051_p0 }
   0xb   :  { %6059 = shalt.err (!%p6056_p2)
}
   0xc   :  { %s6060_s12 = scalar_lea.vmem %s36_s25, 16  ;;  %s6064_s13 = scalar_lea.vmem %s36_s25, 32 }
   0xd   :  { %p6061_p3 = scmp.ne.s32.totalorder %s36_s25, %s6060_s12  ;;  %p6065_p4 = scmp.lt.s32.totalorder %s36_s25, %s36_s25 }
   0xe   :  { %p6066_p5 = scmp.lt.s32.totalorder %s6064_s13, %s6060_s12 }
  0x10   :  { %p6067_p6 = por %p6066_p5, %p6065_p4 }
  0x12   :  { %p6068_p7 = pnand %p6067_p6, %p6061_p3 }
  0x14   :  { %6071 = shalt.err (!%p6068_p7)
}
  0x15   :  { %38 = dma.hbm_to_vmem [thread:$0]  %s9481_s1, 16, %s36_s25, [#allocation6]  }
  0x16   :  { %s6072_s18 = scalar_lea.hbm %s9483_s3, 8192 }
  0x17   :  { %p6073_p8 = scmp.ne.s32.totalorder %s9483_s3, %s6072_s18  ;;  %p6076_p9 = scmp.lt.u32.totalorder %s6072_s18, %s9483_s3 }
  0x19   :  { %p6078_p10 = pnand %p6076_p9, %p6073_p8 }
  0x1b   :  { %6081 = shalt.err (!%p6078_p10)
}
  0x1c   :  { %s6082_s23 = scalar_lea.vmem %s6289_s27, 8192  ;;  %p6087_p12 = scmp.lt.s32.totalorder %s6289_s27, %s6289_s27 }
  0x1d   :  { %p6083_p11 = scmp.ne.s32.totalorder %s6289_s27, %s6082_s23  ;;  %p6088_p13 = scmp.lt.s32.totalorder %s6082_s23, %s6082_s23 }
  0x1f   :  { %p6089_p0 = por %p6088_p13, %p6087_p12 }
  0x21   :  { %p6090_p1 = pnand %p6089_p0, %p6083_p11 }
  0x23   :  { %6093 = shalt.err (!%p6090_p1)
}
  0x24   :  { %s6238_s1 = smov 512   ;;  %s6239_s24 = smov 32  }
  0x25   :  { %60 = dma.hbm_to_vmem [thread:$0]  %s9483_s3, 8192, %s6289_s27, [#allocation9], %s6238_s1, %s6238_s1, %s6239_s24  }
  0x26   :  { %s6240_s28 = smov [#allocation11]   ;;  %s6241_s30 = smov [#allocation2]  }
  0x27   :  { %s76_s29 = sshll.u32 %s6240_s28, 4  ;;  %s22_s8 = sshll.u32 %s6241_s30, 4  ;;  %s77_s29 = int_to_ptr.vmem [resolvable:$true] %s76_s29  ;;  %s6320_s8 = int_to_ptr.vmem [resolvable:$true] %s22_s8 }
  0x28   :  { %s6094_s11 = scalar_lea.hbm %s9485_s5, 8192 }
  0x29   :  { %p6095_p2 = scmp.ne.s32.totalorder %s9485_s5, %s6094_s11  ;;  %p6098_p3 = scmp.lt.u32.totalorder %s6094_s11, %s9485_s5 }
  0x2b   :  { %p6100_p4 = pnand %p6098_p3, %p6095_p2 }
  0x2d   :  { %6103 = shalt.err (!%p6100_p4)
}
  0x2e   :  { %s6104_s3 = scalar_lea.vmem %s77_s29, 8192  ;;  %p6109_p6 = scmp.lt.s32.totalorder %s77_s29, %s77_s29 }
  0x2f   :  { %p6105_p5 = scmp.ne.s32.totalorder %s77_s29, %s6104_s3  ;;  %p6110_p7 = scmp.lt.s32.totalorder %s6104_s3, %s6104_s3 }
  0x31   :  { %p6111_p8 = por %p6110_p7, %p6109_p6 }
  0x33   :  { %p6112_p9 = pnand %p6111_p8, %p6105_p5 }
  0x35   :  { %6115 = shalt.err (!%p6112_p9)
}
  0x36   :  { %s6242_s27 = smov 128   ;;  %s6243_s16 = smov 8  }
  0x37   :  { %82 = dma.hbm_to_vmem [thread:$0]  %s9485_s5, 8192, %s77_s29, [#allocation12], %s6242_s27, %s6242_s27, %s6243_s16  }
  0x38   :  { %s6116_s21 = scalar_lea.hbm %s9480_s0, 512 }
  0x39   :  { %p6117_p10 = scmp.ne.s32.totalorder %s9480_s0, %s6116_s21  ;;  %p6120_p11 = scmp.lt.u32.totalorder %s6116_s21, %s9480_s0 }
  0x3b   :  { %p6122_p12 = pnand %p6120_p11, %p6117_p10 }
  0x3d   :  { %6125 = shalt.err (!%p6122_p12)
}
  0x3e   :  { %s6126_s25 = scalar_lea.vmem %s6320_s8, 512  ;;  %p6131_p0 = scmp.lt.s32.totalorder %s6320_s8, %s6320_s8 }
  0x3f   :  { %p6127_p13 = scmp.ne.s32.totalorder %s6320_s8, %s6126_s25  ;;  %p6132_p1 = scmp.lt.s32.totalorder %s6126_s25, %s6126_s25 }
  0x41   :  { %p6133_p2 = por %p6132_p1, %p6131_p0 }
  0x43   :  { %p6134_p3 = pnand %p6133_p2, %p6127_p13 }
  0x45   :  { %6137 = shalt.err (!%p6134_p3)
}
  0x46   :  { %28 = dma.hbm_to_vmem [thread:$0]  %s9480_s0, 512, %s6320_s8, [#allocation3], %s6242_s27, %s6242_s27, %s6243_s16  }
  0x47   :  { %s6244_s28 = smov [#allocation7]   ;;  %s6245_s30 = smov [#allocation10]  }
  0x48   :  { %s45_s29 = sshll.u32 %s6244_s28, 4  ;;  %s67_s9 = sshll.u32 %s6245_s30, 4  ;;  %s46_s29 = int_to_ptr.vmem [resolvable:$true] %s45_s29  ;;  %s68_s9 = int_to_ptr.vmem [resolvable:$true] %s67_s9 }
  0x49   :  { %s6138_s12 = scalar_lea.hbm %s9482_s2, 16 }
  0x4a   :  { %p6139_p4 = scmp.ne.s32.totalorder %s9482_s2, %s6138_s12  ;;  %p6142_p5 = scmp.lt.u32.totalorder %s6138_s12, %s9482_s2 }
  0x4c   :  { %p6144_p6 = pnand %p6142_p5, %p6139_p4 }
  0x4e   :  { %6147 = shalt.err (!%p6144_p6)
}
  0x4f   :  { %s6148_s0 = scalar_lea.vmem %s46_s29, 16  ;;  %s6152_s8 = scalar_lea.vmem %s46_s29, 32 }
  0x50   :  { %p6149_p7 = scmp.ne.s32.totalorder %s46_s29, %s6148_s0  ;;  %p6153_p8 = scmp.lt.s32.totalorder %s46_s29, %s46_s29 }
  0x51   :  { %p6154_p9 = scmp.lt.s32.totalorder %s6152_s8, %s6148_s0 }
  0x53   :  { %p6155_p10 = por %p6154_p9, %p6153_p8 }
  0x55   :  { %p6156_p11 = pnand %p6155_p10, %p6149_p7 }
  0x57   :  { %6159 = shalt.err (!%p6156_p11)
}
  0x58   :  { %48 = dma.hbm_to_vmem [thread:$0]  %s9482_s2, 16, %s46_s29, [#allocation6]  }
  0x59   :  { %s6160_s21 = scalar_lea.hbm %s9484_s4, 64 }
  0x5a   :  { %p6161_p12 = scmp.ne.s32.totalorder %s9484_s4, %s6160_s21  ;;  %p6164_p13 = scmp.lt.u32.totalorder %s6160_s21, %s9484_s4 }
  0x5c   :  { %p6166_p0 = pnand %p6164_p13, %p6161_p12 }
  0x5e   :  { %6169 = shalt.err (!%p6166_p0)
}
  0x5f   :  { %s6170_s25 = scalar_lea.vmem %s68_s9, 64  ;;  %p6175_p2 = scmp.lt.s32.totalorder %s68_s9, %s68_s9 }
  0x60   :  { %p6171_p1 = scmp.ne.s32.totalorder %s68_s9, %s6170_s25  ;;  %p6176_p3 = scmp.lt.s32.totalorder %s6170_s25, %s6170_s25 }
  0x62   :  { %p6177_p4 = por %p6176_p3, %p6175_p2 }
  0x64   :  { %p6178_p5 = pnand %p6177_p4, %p6171_p1 }
  0x66   :  { %6181 = shalt.err (!%p6178_p5)
}
  0x67   :  { %70 = dma.hbm_to_vmem [thread:$0]  %s9484_s4, 64, %s68_s9, [#allocation9]  }
  0x68   :  { %s6246_s26 = smov [#allocation13]   ;;  %s6182_s10 = scalar_lea.hbm %s9486_s6, 16 }
  0x69   :  { %s89_s28 = sshll.u32 %s6246_s26, 4  ;;  %p6183_p6 = scmp.ne.s32.totalorder %s9486_s6, %s6182_s10  ;;  %s90_s28 = int_to_ptr.vmem [resolvable:$true] %s89_s28 }
  0x6a   :  { %p6186_p7 = scmp.lt.u32.totalorder %s6182_s10, %s9486_s6 }
  0x6c   :  { %p6188_p8 = pnand %p6186_p7, %p6183_p6 }
  0x6e   :  { %6191 = shalt.err (!%p6188_p8)
}
  0x6f   :  { %s6192_s15 = scalar_lea.vmem %s90_s28, 16  ;;  %s6196_s4 = scalar_lea.vmem %s90_s28, 32 }
  0x70   :  { %p6193_p9 = scmp.ne.s32.totalorder %s90_s28, %s6192_s15  ;;  %p6197_p10 = scmp.lt.s32.totalorder %s90_s28, %s90_s28 }
  0x71   :  { %p6198_p11 = scmp.lt.s32.totalorder %s6196_s4, %s6192_s15 }
  0x73   :  { %p6199_p12 = por %p6198_p11, %p6197_p10 }
  0x75   :  { %p6200_p13 = pnand %p6199_p12, %p6193_p9 }
  0x77   :  { %6203 = shalt.err (!%p6200_p13)
}
  0x78   :  { %92 = dma.hbm_to_vmem [thread:$0]  %s9486_s6, 16, %s90_s28, [#allocation12]  }
  0x79   :  { %6226 = dma.done.wait [#allocation3], 512  }
  0x7a   :  { %6227 = vsyncadd [#allocation3], 4294966784 }
  0x7b   :  { %6228 = dma.done.wait [#allocation6], 32  }
  0x7c   :  { %6229 = vsyncadd [#allocation6], 4294967264 }
  0x7d   :  { %6230 = dma.done.wait [#allocation9], 8256  }
  0x7e   :  { %6231 = vsyncadd [#allocation9], 4294959040 }
  0x7f   :  { %6232 = dma.done.wait [#allocation12], 8208  }
  0x80   :  { %6233 = vsyncadd [#allocation12], 4294959088  ;;  %v114_v0 = vld [vmem:[#allocation2] sm:$0xff]  ;;  %v116_v1 = vld [vmem:[#allocation2 + $0x10] sm:$0xff]  ;;  %s6248_s6 = smov [#allocation14]  }
  0x81   :  { %120 = vadd.xlane.f32.xlu0 %v114_v0  ;;  %124 = vadd.xlane.f32.xlu1 %v116_v1  ;;  %v115_v2 = vld [vmem:[#allocation2 + $0x8] sm:$0xff]  ;;  %v117_v3 = vld [vmem:[#allocation2 + $0x18] sm:$0xff]  ;;  %s4535_s0 = sshll.u32 %s6248_s6, 4  ;;  %s4536_s0 = int_to_ptr.vmem [resolvable:$true] %s4535_s0 }
  0x82   :  { %v186_v4 = vld [vmem:[#allocation8 + $0x8] sm:$0xff]  ;;  %v188_v6 = vld [vmem:[#allocation8 + $0x18] sm:$0xff]  ;;  %v185_v11 = vld [vmem:[#allocation8] sm:$0xff]  ;;  %s6204_s8 = scalar_lea.vmem %s4536_s0, 512  ;;  %p6209_p1 = scmp.lt.s32.totalorder %s4536_s0, %s4536_s0 }
  0x83   :  { %v190_v5 = vld [vmem:[#allocation8 + $0x28] sm:$0xff]  ;;  %v271_v7 = vand.u32 4294901760, %v186_v4  ;;  %v192_v9 = vld [vmem:[#allocation8 + $0x38] sm:$0xff]  ;;  %v1273_v10 = vand.u32 4294901760, %v188_v6  ;;  %v189_v12 = vld [vmem:[#allocation8 + $0x20] sm:$0xff]  ;;  %v273_v14 = vand.u32 4294901760, %v185_v11  ;;  %p6205_p0 = scmp.ne.s32.totalorder %s4536_s0, %s6204_s8  ;;  %p6210_p2 = scmp.lt.s32.totalorder %s6204_s8, %s6204_s8 }
  0x84   :  { %v275_v8 = vand.u32 4294901760, %v190_v5  ;;  %v1277_v13 = vand.u32 4294901760, %v192_v9  ;;  %v277_v15 = vand.u32 4294901760, %v189_v12  ;;  %v187_v16 = vld [vmem:[#allocation8 + $0x10] sm:$0xff]  ;;  %v6437_v48 = vld [vmem:[#allocation8 + $0x48] sm:$0xff]  ;;  %v6441_v50 = vld [vmem:[#allocation8 + $0x58] sm:$0xff] }
  0x85   :  { %122 = vadd.xlane.f32.xlu0 %v115_v2  ;;  %126 = vadd.xlane.f32.xlu1 %v117_v3  ;;  %v191_v17 = vld [vmem:[#allocation8 + $0x30] sm:$0xff]  ;;  %v6395_v19 = vsub.f32 %v186_v4, %v271_v7  ;;  %v6399_v21 = vsub.f32 %v188_v6, %v1273_v10  ;;  %v6407_v25 = vsub.f32 %v185_v11, %v273_v14  ;;  %v1275_v27 = vand.u32 4294901760, %v187_v16  ;;  %v6439_v49 = vld [vmem:[#allocation8 + $0x68] sm:$0xff]  ;;  %v6445_v53 = vld [vmem:[#allocation8 + $0x78] sm:$0xff]  ;;  %p6211_p3 = por %p6210_p2, %p6209_p1 }
  0x86   :  { %v6393_v18 = vpack.c.bf16 %v275_v8, %v271_v7  ;;  %v6397_v20 = vsub.f32 %v190_v5, %v275_v8  ;;  %v6401_v22 = vpack.c.bf16 %v1277_v13, %v1273_v10  ;;  %v6403_v23 = vsub.f32 %v192_v9, %v1277_v13  ;;  %v6448_v55 = vld [vmem:[#allocation8 + $0x40] sm:$0xff]  ;;  %v6455_v60 = vld [vmem:[#allocation8 + $0x50] sm:$0xff]  ;;  %v6486_v4 = vld [vmem:[#allocation8 + $0x88] sm:$0xff] }
  0x87   :  { %9931 = vst [vmem:[#allocation21_spill] sm:$0xff] %v6395_v19  ;;  %9933 = vst [vmem:[#allocation23_spill] sm:$0xff] %v6399_v21  ;;  %v6405_v24 = vpack.c.bf16 %v277_v15, %v273_v14  ;;  %v6410_v26 = vsub.f32 %v189_v12, %v277_v15  ;;  %v1279_v28 = vand.u32 4294901760, %v191_v17  ;;  %v6416_v30 = vsub.f32 %v187_v16, %v1275_v27  ;;  %v6450_v56 = vld [vmem:[#allocation8 + $0x60] sm:$0xff]  ;;  %v6457_v61 = vld [vmem:[#allocation8 + $0x70] sm:$0xff]  ;;  %p6212_p4 = pnand %p6211_p3, %p6205_p0 }
  0x88   :  { %9930 = vst [vmem:[#allocation20_spill] sm:$0xff] %v6393_v18  ;;  %9932 = vst [vmem:[#allocation22_spill] sm:$0xff] %v6397_v20  ;;  %5098 = vmatprep.subr.bf16.mxu0 %v6393_v18  ;;  %5290 = vmatprep.subr.bf16.mxu1 %v6401_v22  ;;  %v9509_v51 = vand.u32 4294901760, %v6437_v48  ;;  %v9508_v52 = vand.u32 4294901760, %v6439_v49  ;;  %v9507_v54 = vand.u32 4294901760, %v6441_v50  ;;  %v9504_v57 = vand.u32 4294901760, %v6445_v53 }
  0x89   :  { %9934 = vst [vmem:[#allocation24_spill] sm:$0xff] %v6401_v22  ;;  %9935 = vst [vmem:[#allocation25_spill] sm:$0xff] %v6403_v23  ;;  %5100 = vmatpush1.bf16.msra.mxu0 %v6405_v24  ;;  %v6414_v29 = vpack.c.bf16 %v1279_v28, %v1275_v27  ;;  %v6418_v31 = vsub.f32 %v191_v17, %v1279_v28  ;;  %v9499_v58 = vand.u32 4294901760, %v6448_v55  ;;  %v9498_v59 = vand.u32 4294901760, %v6450_v56  ;;  %v6488_v5 = vld [vmem:[#allocation8 + $0xa8] sm:$0xff]  ;;  %v6490_v6 = vld [vmem:[#allocation8 + $0x98] sm:$0xff] }
  0x8a   :  { %9936 = vst [vmem:[#allocation26_spill] sm:$0xff] %v6405_v24  ;;  %9937 = vst [vmem:[#allocation27_spill] sm:$0xff] %v6407_v25  ;;  %v6463_v62 = vpack.c.bf16 %v9508_v52, %v9509_v51  ;;  %v9497_v63 = vand.u32 4294901760, %v6455_v60  ;;  %v9495_v7 = vand.u32 4294901760, %v6486_v4  ;;  %v9494_v8 = vand.u32 4294901760, %v6488_v5  ;;  %v6496_v9 = vld [vmem:[#allocation8 + $0xb8] sm:$0xff] }
  0x8b   :  { %9938 = vst [vmem:[#allocation28_spill] sm:$0xff] %v6410_v26  ;;  %9939 = vst [vmem:[#allocation29_spill] sm:$0xff] %v6414_v29  ;;  %5292 = vmatpush1.bf16.msra.mxu1 %v6414_v29  ;;  %v9493_v10 = vand.u32 4294901760, %v6490_v6  ;;  %v6499_v11 = vld [vmem:[#allocation8 + $0x80] sm:$0xff]  ;;  %v9492_v13 = vand.u32 4294901760, %v6496_v9  ;;  %v6507_v16 = vld [vmem:[#allocation8 + $0x90] sm:$0xff] }
  0x8c   :  { %9940 = vst [vmem:[#allocation30_spill] sm:$0xff] %v6416_v30  ;;  %9941 = vst [vmem:[#allocation31_spill] sm:$0xff] %v6418_v31  ;;  %5102 = vmatprep.subr.bf16.mxu0 %v6463_v62  ;;  %v6501_v12 = vld [vmem:[#allocation8 + $0xa0] sm:$0xff]  ;;  %v9489_v14 = vand.u32 4294901760, %v6499_v11  ;;  %v6509_v17 = vld [vmem:[#allocation8 + $0xb0] sm:$0xff]  ;;  %v6515_v27 = vpack.c.bf16 %v9494_v8, %v9495_v7  ;;  %v9491_v28 = vand.u32 4294901760, %v6507_v16 }
  0x8d   :  { %9946 = vst [vmem:[#allocation36_spill] sm:$0xff] %v6463_v62  ;;  %v9488_v15 = vand.u32 4294901760, %v6501_v12  ;;  %v6603_v52 = vld [vmem:[#allocation8 + $0x120] sm:$0xff]  ;;  %v9970_v62 = vand.u32 4294901760, %v6439_v49  ;;  %v6709_v24 = vld [vmem:[#allocation8 + $0x1a8] sm:$0xff] }
  0x8e   :  { %9950 = vst [vmem:[#allocation40_spill] sm:$0xff] %v6515_v27 }
  0x8f   :  { %v6672_v29 = vsub.f32 %v6439_v49, %v9970_v62  ;;  %v9978_v49 = vand.u32 4294901760, %v6450_v56 }
  0x91   :  { %9971 = vst [vmem:[#allocation53_spill] sm:$0xff] %v6672_v29  ;;  %v6695_v62 = vsub.f32 %v6450_v56, %v9978_v49 }
  0x93   :  { %9979 = vst [vmem:[#allocation57_spill] sm:$0xff] %v6695_v62 }
 0x10e   :  { %v121_v32 = vpop.xlane.xlu0 %120  ;;  %v125_v33 = vpop.xlane.xlu1 %124 }
 0x10f   :  { %v129_v34 = vmul.f32 0.0078125, %v121_v32  ;;  %v131_v35 = vmul.f32 0.0078125, %v125_v33  ;;  %v9490_v32 = vand.u32 4294901760, %v6509_v17  ;;  %v6523_v33 = vpack.c.bf16 %v9492_v13, %v9493_v10  ;;  %v6558_v13 = vld [vmem:[#allocation8 + $0xd0] sm:$0xff] }
 0x110   :  { %v6560_v10 = vld [vmem:[#allocation8 + $0xf0] sm:$0xff]  ;;  %v9511_v7 = vand.u32 4294901760, %v6558_v13 }
 0x111   :  { %v6421_v36 = vsub.f32 %v114_v0, %v129_v34  ;;  %v6423_v37 = vsub.f32 %v116_v1, %v131_v35  ;;  %v9496_v0 = vand.u32 4294901760, %v6457_v61  ;;  %v6471_v1 = vpack.c.bf16 %v9504_v57, %v9507_v54  ;;  %9951 = vst [vmem:[#allocation41_spill] sm:$0xff] %v6523_v33  ;;  %v6531_v35 = vld [vmem:[#allocation8 + $0xc8] sm:$0xff]  ;;  %v6601_v54 = vld [vmem:[#allocation8 + $0x100] sm:$0xff]  ;;  %v6612_v57 = vld [vmem:[#allocation8 + $0x130] sm:$0xff] }
 0x112   :  { %v123_v38 = vpop.xlane.xlu0 %122  ;;  %v127_v39 = vpop.xlane.xlu1 %126  ;;  %v6529_v34 = vpack.c.bf16 %v9488_v15, %v9489_v14  ;;  %v6551_v15 = vld [vmem:[#allocation8 + $0xe0] sm:$0xff]  ;;  %v9536_v51 = vand.u32 4294901760, %v6612_v57 }
 0x113   :  { %9942 = vst [vmem:[#allocation32_spill] sm:$0xff] %v6421_v36  ;;  %9943 = vst [vmem:[#allocation33_spill] sm:$0xff] %v6423_v37  ;;  %v130_v40 = vmul.f32 0.0078125, %v123_v38  ;;  %v137_v41 = vmul.f32 %v6421_v36, %v6421_v36  ;;  %v132_v42 = vmul.f32 0.0078125, %v127_v39  ;;  %v139_v45 = vmul.f32 %v6423_v37, %v6423_v37  ;;  %5294 = vmatprep.subr.bf16.mxu1 %v6471_v1  ;;  %v6533_v38 = vld [vmem:[#allocation8 + $0xe8] sm:$0xff]  ;;  %v6535_v39 = vld [vmem:[#allocation8 + $0xd8] sm:$0xff] }
 0x114   :  { %9947 = vst [vmem:[#allocation37_spill] sm:$0xff] %v6471_v1  ;;  %9952 = vst [vmem:[#allocation42_spill] sm:$0xff] %v6529_v34  ;;  %v6655_v1 = vld [vmem:[#allocation8 + $0x160] sm:$0xff]  ;;  %v6732_v37 = vld [vmem:[#allocation8 + $0x1b8] sm:$0xff] }
 0x115   :  { %v6427_v43 = vsub.f32 %v115_v2, %v130_v40  ;;  %141 = vadd.xlane.f32.xlu0 %v137_v41  ;;  %v6429_v44 = vsub.f32 %v117_v3, %v132_v42  ;;  %v6477_v2 = vpack.c.bf16 %v9498_v59, %v9499_v58  ;;  %v6484_v3 = vpack.c.bf16 %v9496_v0, %v9497_v63  ;;  %v6583_v58 = vld [vmem:[#allocation8 + $0x108] sm:$0xff] }
 0x116   :  { %v6542_v40 = vpack.c.bf16 %v9490_v32, %v9491_v28  ;;  %v9501_v41 = vand.u32 4294901760, %v6531_v35  ;;  %v9500_v42 = vand.u32 4294901760, %v6533_v38  ;;  %v9505_v28 = vand.u32 4294901760, %v6551_v15 }
 0x117   :  { %9944 = vst [vmem:[#allocation34_spill] sm:$0xff] %v6427_v43  ;;  %9945 = vst [vmem:[#allocation35_spill] sm:$0xff] %v6429_v44  ;;  %v138_v46 = vmul.f32 %v6427_v43, %v6427_v43  ;;  %v140_v47 = vmul.f32 %v6429_v44, %v6429_v44  ;;  %5104 = vmatpush1.bf16.msra.mxu0 %v6477_v2  ;;  %5296 = vmatpush1.bf16.msra.mxu1 %v6484_v3  ;;  %v9510_v0 = vand.u32 4294901760, %v6560_v10  ;;  %v6734_v43 = vld [vmem:[#allocation8 + $0x180] sm:$0xff] }
 0x118   :  { %9948 = vst [vmem:[#allocation38_spill] sm:$0xff] %v6477_v2  ;;  %9949 = vst [vmem:[#allocation39_spill] sm:$0xff] %v6484_v3  ;;  %5106 = vmatprep.subr.bf16.mxu0 %v6515_v27  ;;  %5298 = vmatprep.subr.bf16.mxu1 %v6523_v33  ;;  %v6567_v8 = vpack.c.bf16 %v9500_v42, %v9501_v41  ;;  %v6585_v42 = vld [vmem:[#allocation8 + $0x128] sm:$0xff]  ;;  %v6587_v41 = vld [vmem:[#allocation8 + $0x118] sm:$0xff]  ;;  %v9968_v3 = vand.u32 4294901760, %v6437_v48 }
 0x119   :  { %145 = vadd.xlane.f32.xlu0 %v139_v45  ;;  %143 = vadd.xlane.f32.xlu1 %v138_v46  ;;  %9953 = vst [vmem:[#allocation43_spill] sm:$0xff] %v6542_v40  ;;  %v6546_v45 = vld [vmem:[#allocation8 + $0xf8] sm:$0xff]  ;;  %v9503_v46 = vand.u32 4294901760, %v6535_v39  ;;  %v6635_v27 = vld [vmem:[#allocation8 + $0x148] sm:$0xff]  ;;  %v6653_v2 = vld [vmem:[#allocation8 + $0x140] sm:$0xff] }
 0x11a   :  { %v9502_v14 = vand.u32 4294901760, %v6546_v45  ;;  %9954 = vst [vmem:[#allocation44_spill] sm:$0xff] %v6567_v8 }
 0x11b   :  { %5108 = vmatpush1.bf16.msra.mxu0 %v6529_v34  ;;  %5300 = vmatpush1.bf16.msra.mxu1 %v6542_v40  ;;  %v9964_v34 = vand.u32 4294901760, %v6601_v54 }
 0x11c   :  { %v6575_v63 = vpack.c.bf16 %v9502_v14, %v9503_v46  ;;  %5110 = vmatprep.subr.bf16.mxu0 %v6567_v8  ;;  %v6594_v14 = vpack.c.bf16 %v9510_v0, %v9511_v7  ;;  %v6610_v46 = vld [vmem:[#allocation8 + $0x110] sm:$0xff]  ;;  %v9959_v8 = vand.u32 4294901760, %v6585_v42  ;;  %v9961_v0 = vand.u32 4294901760, %v6587_v41 }
 0x11d   :  { %147 = vadd.xlane.f32.xlu1 %v140_v47  ;;  %v6549_v47 = vld [vmem:[#allocation8 + $0xc0] sm:$0xff] }
 0x11e   :  { %v9506_v32 = vand.u32 4294901760, %v6549_v47  ;;  %9955 = vst [vmem:[#allocation45_spill] sm:$0xff] %v6575_v63  ;;  %9957 = vst [vmem:[#allocation47_spill] sm:$0xff] %v6594_v14  ;;  %5302 = vmatprep.subr.bf16.mxu1 %v6575_v63 }
 0x11f   :  { %5304 = vmatpush1.bf16.msra.mxu1 %v6594_v14  ;;  %v9965_v14 = vand.u32 4294901760, %v6603_v52 }
 0x120   :  { %v6581_v59 = vpack.c.bf16 %v9505_v28, %v9506_v32  ;;  %v6598_v28 = vld [vmem:[#allocation8 + $0x138] sm:$0xff]  ;;  %v9958_v32 = vand.u32 4294901760, %v6583_v58 }
 0x121   :  { %v9962_v7 = vand.u32 4294901760, %v6598_v28  ;;  %v6633_v33 = vpack.c.bf16 %v9965_v14, %v9964_v34  ;;  %v6650_v14 = vld [vmem:[#allocation8 + $0x178] sm:$0xff]  ;;  %v6667_v34 = vsub.f32 %v6437_v48, %v9968_v3  ;;  %v9976_v48 = vand.u32 4294901760, %v6448_v55 }
 0x122   :  { %9956 = vst [vmem:[#allocation46_spill] sm:$0xff] %v6581_v59  ;;  %5112 = vmatpush1.bf16.msra.mxu0 %v6581_v59  ;;  %v6619_v40 = vpack.c.bf16 %v9959_v8, %v9958_v32  ;;  %v9537_v59 = vand.u32 4294901760, %v6610_v46  ;;  %v6637_v8 = vld [vmem:[#allocation8 + $0x168] sm:$0xff]  ;;  %v6639_v32 = vld [vmem:[#allocation8 + $0x158] sm:$0xff] }
 0x123   :  { %v6627_v63 = vpack.c.bf16 %v9962_v7, %v9961_v0  ;;  %9966 = vst [vmem:[#allocation50_spill] sm:$0xff] %v6633_v33  ;;  %v6662_v7 = vld [vmem:[#allocation8 + $0x150] sm:$0xff]  ;;  %9969 = vst [vmem:[#allocation52_spill] sm:$0xff] %v6667_v34  ;;  %v6690_v3 = vsub.f32 %v6448_v55, %v9976_v48  ;;  %v6711_v55 = vld [vmem:[#allocation8 + $0x198] sm:$0xff]  ;;  %v9984_v48 = vand.u32 4294901760, %v6635_v27  ;;  %v9985_v56 = vand.u32 4294901760, %v6637_v8 }
 0x124   :  { %9960 = vst [vmem:[#allocation48_spill] sm:$0xff] %v6619_v40  ;;  %5114 = vmatprep.subr.bf16.mxu0 %v6619_v40  ;;  %v6646_v0 = vpack.c.bf16 %v9536_v51, %v9537_v59  ;;  %v9974_v51 = vand.u32 4294901760, %v6445_v53  ;;  %v1315_v44 = vand.u32 4294901760, %v6662_v7  ;;  %v9999_v34 = vand.u32 4294901760, %v6496_v9 }
 0x125   :  { %9963 = vst [vmem:[#allocation49_spill] sm:$0xff] %v6627_v63  ;;  %5306 = vmatprep.subr.bf16.mxu1 %v6627_v63  ;;  %v6685_v63 = vld [vmem:[#allocation8 + $0x170] sm:$0xff]  ;;  %9977 = vst [vmem:[#allocation56_spill] sm:$0xff] %v6690_v3  ;;  %v6717_v49 = vpack.c.bf16 %v9985_v56, %v9984_v48  ;;  %v6736_v48 = vld [vmem:[#allocation8 + $0x1a0] sm:$0xff]  ;;  %v9993_v3 = vand.u32 4294901760, %v6486_v4 }
 0x126   :  { %9967 = vst [vmem:[#allocation51_spill] sm:$0xff] %v6646_v0  ;;  %5116 = vmatpush1.bf16.msra.mxu0 %v6633_v33  ;;  %v9972_v33 = vand.u32 4294901760, %v6441_v50  ;;  %v6682_v59 = vsub.f32 %v6445_v53, %v9974_v51  ;;  %5308 = vmatpush1.bf16.msra.mxu1 %v6646_v0  ;;  %v9982_v51 = vand.u32 4294901760, %v6457_v61  ;;  %v6707_v0 = vld [vmem:[#allocation8 + $0x188] sm:$0xff]  ;;  %v1319_v56 = vand.u32 4294901760, %v6685_v63 }
 0x127   :  { %9986 = vst [vmem:[#allocation60_spill] sm:$0xff] %v6717_v49  ;;  %v319_v36 = vand.u32 4294901760, %v6707_v0  ;;  %5118 = vmatprep.subr.bf16.mxu0 %v6717_v49  ;;  %v6768_v31 = vsub.f32 %v6496_v9, %v9999_v34  ;;  %v10006_v9 = vand.u32 4294901760, %v6509_v17 }
 0x128   :  { %v6677_v40 = vsub.f32 %v6441_v50, %v9972_v33  ;;  %9975 = vst [vmem:[#allocation55_spill] sm:$0xff] %v6682_v59  ;;  %v9980_v50 = vand.u32 4294901760, %v6455_v60  ;;  %v6705_v53 = vsub.f32 %v6457_v61, %v9982_v51  ;;  %v9990_v61 = vand.u32 4294901760, %v6653_v2 }
 0x129   :  { %v9991_v51 = vand.u32 4294901760, %v6655_v1  ;;  %v6753_v59 = vsub.f32 %v6486_v4, %v9993_v3  ;;  %10000 = vst [vmem:[#allocation66_spill] sm:$0xff] %v6768_v31  ;;  %v10001_v4 = vand.u32 4294901760, %v6499_v11  ;;  %v6789_v34 = vsub.f32 %v6509_v17, %v10006_v9 }
 0x12a   :  { %9973 = vst [vmem:[#allocation54_spill] sm:$0xff] %v6677_v40  ;;  %v6700_v33 = vsub.f32 %v6455_v60, %v9980_v50  ;;  %9983 = vst [vmem:[#allocation59_spill] sm:$0xff] %v6705_v53  ;;  %v9987_v60 = vand.u32 4294901760, %v6639_v32  ;;  %v9988_v50 = vand.u32 4294901760, %v6650_v14  ;;  %v6742_v53 = vld [vmem:[#allocation8 + $0x190] sm:$0xff]  ;;  %v9995_v40 = vand.u32 4294901760, %v6488_v5 }
 0x12b   :  { %v6729_v18 = vpack.c.bf16 %v9991_v51, %v9990_v61  ;;  %v1325_v61 = vand.u32 4294901760, %v6732_v37  ;;  %v321_v51 = vand.u32 4294901760, %v6734_v43  ;;  %v1323_v62 = vand.u32 4294901760, %v6742_v53  ;;  %9994 = vst [vmem:[#allocation63_spill] sm:$0xff] %v6753_v59  ;;  %10007 = vst [vmem:[#allocation69_spill] sm:$0xff] %v6789_v34 }
 0x12c   :  { %9981 = vst [vmem:[#allocation58_spill] sm:$0xff] %v6700_v33  ;;  %v6723_v22 = vpack.c.bf16 %v9988_v50, %v9987_v60  ;;  %v323_v60 = vand.u32 4294901760, %v6709_v24  ;;  %v1321_v50 = vand.u32 4294901760, %v6711_v55  ;;  %v325_v33 = vand.u32 4294901760, %v6736_v48 }
 0x12d   :  { %9992 = vst [vmem:[#allocation62_spill] sm:$0xff] %v6729_v18  ;;  %v6758_v29 = vsub.f32 %v6488_v5, %v9995_v40  ;;  %5120 = vmatpush1.bf16.msra.mxu0 %v6729_v18  ;;  %v6774_v3 = vsub.f32 %v6499_v11, %v10001_v4  ;;  %v10002_v5 = vand.u32 4294901760, %v6501_v12  ;;  %v6791_v18 = vpack.c.bf16 %v1319_v56, %v1315_v44 }
 0x12e   :  { %9989 = vst [vmem:[#allocation61_spill] sm:$0xff] %v6723_v22  ;;  %5310 = vmatprep.subr.bf16.mxu1 %v6723_v22  ;;  %v9997_v22 = vand.u32 4294901760, %v6490_v6  ;;  %v6793_v31 = vpack.c.bf16 %v323_v60, %v319_v36  ;;  %v6795_v11 = vpack.c.bf16 %v1325_v61, %v1321_v50  ;;  %v6797_v4 = vpack.c.bf16 %v325_v33, %v321_v51 }
 0x12f   :  { %9996 = vst [vmem:[#allocation64_spill] sm:$0xff] %v6758_v29  ;;  %v6779_v40 = vsub.f32 %v6501_v12, %v10002_v5  ;;  %10008 = vst [vmem:[#allocation70_spill] sm:$0xff] %v6791_v18  ;;  %v10012_v12 = vand.u32 4294901760, %v6531_v35  ;;  %v10014_v17 = vand.u32 4294901760, %v6535_v39  ;;  %v10015_v34 = vand.u32 4294901760, %v6546_v45  ;;  %5312 = vmatpush1.bf16.msra.mxu1 %v6791_v18 }
 0x130   :  { %v6763_v49 = vsub.f32 %v6490_v6, %v9997_v22  ;;  %v10004_v22 = vand.u32 4294901760, %v6507_v16  ;;  %10009 = vst [vmem:[#allocation71_spill] sm:$0xff] %v6793_v31  ;;  %10010 = vst [vmem:[#allocation72_spill] sm:$0xff] %v6795_v11  ;;  %5122 = vmatprep.subr.bf16.mxu0 %v6793_v31  ;;  %5314 = vmatprep.subr.bf16.mxu1 %v6795_v11  ;;  %v6920_v31 = vsub.f32 %v6707_v0, %v319_v36 }
 0x131   :  { %10003 = vst [vmem:[#allocation67_spill] sm:$0xff] %v6779_v40  ;;  %10011 = vst [vmem:[#allocation73_spill] sm:$0xff] %v6797_v4  ;;  %v6802_v5 = vsub.f32 %v6531_v35, %v10012_v12  ;;  %v6812_v9 = vsub.f32 %v6535_v39, %v10014_v17  ;;  %v10016_v40 = vand.u32 4294901760, %v6549_v47  ;;  %v10017_v12 = vand.u32 4294901760, %v6551_v15  ;;  %5124 = vmatpush1.bf16.msra.mxu0 %v6797_v4  ;;  %v248_v4 = vld [vmem:[#allocation8 + $0x1f8] sm:$0xff] }
 0x132   :  { %9998 = vst [vmem:[#allocation65_spill] sm:$0xff] %v6763_v49  ;;  %v6784_v6 = vsub.f32 %v6507_v16, %v10004_v22  ;;  %v10013_v16 = vand.u32 4294901760, %v6533_v38  ;;  %v10019_v17 = vand.u32 4294901760, %v6560_v10  ;;  %10048 = vst [vmem:[#allocation88_spill] sm:$0xff] %v6920_v31  ;;  %v6938_v36 = vsub.f32 %v6742_v53, %v1323_v62 }
 0x133   :  { %v6822_v35 = vsub.f32 %v6549_v47, %v10016_v40  ;;  %v10020_v47 = vand.u32 4294901760, %v6583_v58 }
 0x134   :  { %10005 = vst [vmem:[#allocation68_spill] sm:$0xff] %v6784_v6  ;;  %v6807_v22 = vsub.f32 %v6533_v38, %v10013_v16  ;;  %v6817_v6 = vsub.f32 %v6546_v45, %v10015_v34  ;;  %v6827_v38 = vsub.f32 %v6551_v15, %v10017_v12  ;;  %v10018_v16 = vand.u32 4294901760, %v6558_v13  ;;  %10054 = vst [vmem:[#allocation94_spill] sm:$0xff] %v6938_v36 }
 0x135   :  { %v6837_v45 = vsub.f32 %v6560_v10, %v10019_v17  ;;  %v6843_v40 = vsub.f32 %v6583_v58, %v10020_v47  ;;  %v10021_v15 = vand.u32 4294901760, %v6585_v42  ;;  %v10024_v10 = vand.u32 4294901760, %v6598_v28 }
 0x136   :  { %v6832_v39 = vsub.f32 %v6558_v13, %v10018_v16  ;;  %v10022_v13 = vand.u32 4294901760, %v6587_v41  ;;  %v10026_v58 = vand.u32 4294901760, %v6601_v54 }
 0x137   :  { %v6848_v34 = vsub.f32 %v6585_v42, %v10021_v15  ;;  %v6858_v16 = vsub.f32 %v6598_v28, %v10024_v10  ;;  %v10028_v42 = vand.u32 4294901760, %v6603_v52  ;;  %v10032_v28 = vand.u32 4294901760, %v6612_v57 }
 0x138   :  { %v6853_v12 = vsub.f32 %v6587_v41, %v10022_v13  ;;  %v6864_v17 = vsub.f32 %v6601_v54, %v10026_v58  ;;  %v10030_v41 = vand.u32 4294901760, %v6610_v46  ;;  %v10034_v54 = vand.u32 4294901760, %v6635_v27 }
 0x139   :  { %10025 = vst [vmem:[#allocation75_spill] sm:$0xff] %v6858_v16  ;;  %v6869_v47 = vsub.f32 %v6603_v52, %v10028_v42  ;;  %v6879_v13 = vsub.f32 %v6612_v57, %v10032_v28  ;;  %v10036_v52 = vand.u32 4294901760, %v6637_v8  ;;  %v10040_v57 = vand.u32 4294901760, %v6650_v14  ;;  %v239_v28 = vld [vmem:[#allocation8 + $0x1b0] sm:$0xff] }
 0x13a   :  { %10023 = vst [vmem:[#allocation74_spill] sm:$0xff] %v6853_v12  ;;  %10027 = vst [vmem:[#allocation76_spill] sm:$0xff] %v6864_v17  ;;  %v6874_v15 = vsub.f32 %v6610_v46, %v10030_v41  ;;  %v6885_v10 = vsub.f32 %v6635_v27, %v10034_v54  ;;  %v10038_v46 = vand.u32 4294901760, %v6639_v32  ;;  %v242_v27 = vld [vmem:[#allocation8 + $0x1c8] sm:$0xff]  ;;  %v10042_v54 = vand.u32 4294901760, %v6653_v2 }
 0x13b   :  { %10029 = vst [vmem:[#allocation77_spill] sm:$0xff] %v6869_v47  ;;  %10033 = vst [vmem:[#allocation79_spill] sm:$0xff] %v6879_v13  ;;  %v6890_v58 = vsub.f32 %v6637_v8, %v10036_v52  ;;  %v6900_v41 = vsub.f32 %v6650_v14, %v10040_v57  ;;  %v10044_v8 = vand.u32 4294901760, %v6655_v1  ;;  %v6917_v14 = vsub.f32 %v6685_v63, %v1319_v56  ;;  %v244_v57 = vld [vmem:[#allocation8 + $0x1d8] sm:$0xff] }
 0x13c   :  { %10031 = vst [vmem:[#allocation78_spill] sm:$0xff] %v6874_v15  ;;  %10035 = vst [vmem:[#allocation80_spill] sm:$0xff] %v6885_v10  ;;  %v6895_v42 = vsub.f32 %v6639_v32, %v10038_v46  ;;  %v6906_v11 = vsub.f32 %v6653_v2, %v10042_v54  ;;  %v6914_v32 = vsub.f32 %v6662_v7, %v1315_v44  ;;  %v246_v46 = vld [vmem:[#allocation8 + $0x1e8] sm:$0xff]  ;;  %v241_v44 = vld [vmem:[#allocation8 + $0x1c0] sm:$0xff] }
 0x13d   :  { %10037 = vst [vmem:[#allocation81_spill] sm:$0xff] %v6890_v58  ;;  %10041 = vst [vmem:[#allocation83_spill] sm:$0xff] %v6900_v41  ;;  %v6911_v52 = vsub.f32 %v6655_v1, %v10044_v8  ;;  %v6923_v2 = vsub.f32 %v6709_v24, %v323_v60  ;;  %v6926_v54 = vsub.f32 %v6711_v55, %v1321_v50  ;;  %v245_v7 = vld [vmem:[#allocation8 + $0x1e0] sm:$0xff]  ;;  %v1327_v8 = vand.u32 4294901760, %v239_v28 }
 0x13e   :  { %10039 = vst [vmem:[#allocation82_spill] sm:$0xff] %v6895_v42  ;;  %10043 = vst [vmem:[#allocation84_spill] sm:$0xff] %v6906_v11  ;;  %v6929_v1 = vsub.f32 %v6732_v37, %v1325_v61  ;;  %v6932_v63 = vsub.f32 %v6734_v43, %v321_v51  ;;  %v6935_v56 = vsub.f32 %v6736_v48, %v325_v33  ;;  %v327_v24 = vand.u32 4294901760, %v242_v27  ;;  %v247_v43 = vld [vmem:[#allocation8 + $0x1f0] sm:$0xff] }
 0x13f   :  { %10045 = vst [vmem:[#allocation85_spill] sm:$0xff] %v6911_v52  ;;  %10046 = vst [vmem:[#allocation86_spill] sm:$0xff] %v6914_v32  ;;  %v331_v0 = vand.u32 4294901760, %v246_v46  ;;  %v1329_v60 = vand.u32 4294901760, %v244_v57  ;;  %v1333_v55 = vand.u32 4294901760, %v248_v4  ;;  %v6940_v50 = vpack.c.bf16 %v1327_v8, %v1323_v62 }
 0x140   :  { %10047 = vst [vmem:[#allocation87_spill] sm:$0xff] %v6917_v14  ;;  %10049 = vst [vmem:[#allocation89_spill] sm:$0xff] %v6923_v2  ;;  %v6942_v37 = vsub.f32 %v239_v28, %v1327_v8  ;;  %v329_v61 = vand.u32 4294901760, %v241_v44  ;;  %v333_v18 = vand.u32 4294901760, %v245_v7  ;;  %v6946_v33 = vsub.f32 %v242_v27, %v327_v24 }
 0x141   :  { %10050 = vst [vmem:[#allocation90_spill] sm:$0xff] %v6926_v54  ;;  %10051 = vst [vmem:[#allocation91_spill] sm:$0xff] %v6929_v1  ;;  %v243_v1 = vld [vmem:[#allocation8 + $0x1d0] sm:$0xff]  ;;  %v6944_v51 = vpack.c.bf16 %v331_v0, %v327_v24  ;;  %v6948_v48 = vsub.f32 %v246_v46, %v331_v0  ;;  %v6950_v53 = vpack.c.bf16 %v1333_v55, %v1329_v60  ;;  %5316 = vmatpush1.bf16.msra.mxu1 %v6940_v50  ;;  %v9592_v0 = vmov 0.0  }
 0x142   :  { %10052 = vst [vmem:[#allocation92_spill] sm:$0xff] %v6932_v63  ;;  %10053 = vst [vmem:[#allocation93_spill] sm:$0xff] %v6935_v56  ;;  %v6953_v36 = vsub.f32 %v244_v57, %v1329_v60  ;;  %v6955_v62 = vsub.f32 %v248_v4, %v1333_v55  ;;  %v6957_v28 = vpack.c.bf16 %v333_v18, %v329_v61  ;;  %v1331_v46 = vand.u32 4294901760, %v243_v1 }
 0x143   :  { %10055 = vst [vmem:[#allocation95_spill] sm:$0xff] %v6940_v50  ;;  %10056 = vst [vmem:[#allocation96_spill] sm:$0xff] %v6942_v37  ;;  %v6959_v8 = vsub.f32 %v241_v44, %v329_v61  ;;  %5126 = vmatprep.subr.bf16.mxu0 %v6944_v51  ;;  %5318 = vmatprep.subr.bf16.mxu1 %v6950_v53  ;;  %v6963_v27 = vsub.f32 %v245_v7, %v333_v18  ;;  %v1335_v24 = vand.u32 4294901760, %v247_v43 }
 0x144   :  { %10057 = vst [vmem:[#allocation97_spill] sm:$0xff] %v6944_v51  ;;  %10058 = vst [vmem:[#allocation98_spill] sm:$0xff] %v6946_v33  ;;  %5128 = vmatpush1.bf16.msra.mxu0 %v6957_v28  ;;  %367 = vmatprep.mubr.f32.mxu0 %v9592_v0  ;;  %v9591_v4 = vand.u32 4294901760, %v6395_v19  ;;  %v9594_v57 = vand.u32 4294901760, %v6397_v20  ;;  %v6973_v61 = vsub.f32 %v243_v1, %v1331_v46  ;;  %v9605_v7 = vand.u32 4294901760, %v6407_v25 }
 0x145   :  { %10059 = vst [vmem:[#allocation99_spill] sm:$0xff] %v6948_v48  ;;  %10060 = vst [vmem:[#allocation100_spill] sm:$0xff] %v6950_v53  ;;  %v6971_v55 = vpack.c.bf16 %v1335_v24, %v1331_v46  ;;  %v6975_v18 = vsub.f32 %v247_v43, %v1335_v24  ;;  %1369 = vmatprep.mubr.f32.mxu1 %v9592_v0  ;;  %v10069_v60 = vand.u32 4294901760, %v6399_v21  ;;  %v10070_v1 = vand.u32 4294901760, %v6403_v23  ;;  %v10071_v0 = vld [vmem:[#allocation31_spill] sm:$0xff] }
 0x146   :  { %10061 = vst [vmem:[#allocation101_spill] sm:$0xff] %v6953_v36  ;;  %10062 = vst [vmem:[#allocation102_spill] sm:$0xff] %v6955_v62  ;;  %v427_v44 = vsub.f32 %v6397_v20, %v9594_v57  ;;  %v421_v46 = vsub.f32 %v6407_v25, %v9605_v7  ;;  %v9617_v24 = vand.u32 4294901760, %v6410_v26  ;;  %v9616_v57 = vand.u32 4294901760, %v10071_v0 }
 0x147   :  { %10063 = vst [vmem:[#allocation103_spill] sm:$0xff] %v6957_v28  ;;  %10064 = vst [vmem:[#allocation104_spill] sm:$0xff] %v6959_v8  ;;  %v415_v28 = vsub.f32 %v6395_v19, %v9591_v4  ;;  %v1417_v53 = vsub.f32 %v6399_v21, %v10069_v60  ;;  %v1429_v43 = vsub.f32 %v6403_v23, %v10070_v1  ;;  %5320 = vmatpush1.bf16.msra.mxu1 %v6971_v55  ;;  %v10072_v19 = vld [vmem:[#allocation52_spill] sm:$0xff] }
 0x148   :  { %10065 = vst [vmem:[#allocation105_spill] sm:$0xff] %v6963_v27  ;;  %10066 = vst [vmem:[#allocation106_spill] sm:$0xff] %v6971_v55  ;;  %v9615_v4 = vand.u32 4294901760, %v6416_v30  ;;  %v428_v50 = vand.u32 4294901760, %v427_v44  ;;  %v422_v21 = vand.u32 4294901760, %v421_v46  ;;  %v433_v1 = vsub.f32 %v6410_v26, %v9617_v24  ;;  %v10073_v44 = vld [vmem:[#allocation53_spill] sm:$0xff] }
 0x149   :  { %10067 = vst [vmem:[#allocation107_spill] sm:$0xff] %v6973_v61  ;;  %10068 = vst [vmem:[#allocation108_spill] sm:$0xff] %v6975_v18  ;;  %v416_v51 = vand.u32 4294901760, %v415_v28  ;;  %v1418_v20 = vand.u32 4294901760, %v1417_v53  ;;  %v1430_v60 = vand.u32 4294901760, %v1429_v43  ;;  %v1435_v7 = vsub.f32 %v10071_v0, %v9616_v57  ;;  %v10074_v61 = vld [vmem:[#allocation54_spill] sm:$0xff] }
 0x14a   :  { %v1423_v55 = vsub.f32 %v6416_v30, %v9615_v4  ;;  %v9618_v28 = vand.u32 4294901760, %v10072_v19  ;;  %v9619_v53 = vand.u32 4294901760, %v10073_v44  ;;  %v434_v43 = vand.u32 4294901760, %v433_v1  ;;  %v4550_v26 = vld [vmem:[#allocation5] ss:$0 sm:$0xff] }
 0x14b   :  { %v5129_v25 = vpack.c.bf16 %v428_v50, %v416_v51  ;;  %v5321_v23 = vpack.c.bf16 %v1430_v60, %v1418_v20  ;;  %v1436_v18 = vand.u32 4294901760, %v1435_v7  ;;  %v9621_v27 = vand.u32 4294901760, %v10074_v61  ;;  %v10075_v20 = vld [vmem:[#allocation55_spill] sm:$0xff]  ;;  %v10076_v60 = vld [vmem:[#allocation56_spill] sm:$0xff] }
 0x14c   :  { %v1424_v46 = vand.u32 4294901760, %v1423_v55  ;;  %v439_v4 = vsub.f32 %v10072_v19, %v9618_v28  ;;  %v451_v50 = vsub.f32 %v10073_v44, %v9619_v53  ;;  %v9623_v51 = vand.u32 4294901760, %v10075_v20 }
 0x14d   :  { %5130 = vmatprep.subr.bf16.mxu0 %v5129_v25  ;;  %5322 = vmatprep.subr.bf16.mxu1 %v5321_v23  ;;  %v9624_v57 = vand.u32 4294901760, %v10076_v60  ;;  %v7018_v24 = vpack.c.bf16 %v434_v43, %v422_v21  ;;  %v1441_v23 = vsub.f32 %v10074_v61, %v9621_v27  ;;  %v10079_v25 = vld [vmem:[#allocation57_spill] sm:$0xff]  ;;  %v10080_v43 = vld [vmem:[#allocation58_spill] sm:$0xff]  ;;  %v10081_v27 = vld [vmem:[#allocation59_spill] sm:$0xff]  ;;  %v9630_v61 = vand.u32 4294901760, %v6753_v59 }
 0x14e   :  { %v7020_v55 = vpack.c.bf16 %v1436_v18, %v1424_v46  ;;  %v9625_v7 = vand.u32 4294901760, %v10079_v25  ;;  %v440_v1 = vand.u32 4294901760, %v439_v4  ;;  %v452_v28 = vand.u32 4294901760, %v451_v50  ;;  %v10133_v30 = vld [vmem:[#allocation102_spill] sm:$0xff] }
 0x14f   :  { %10077 = vst [vmem:[#allocation31_spill] sm:$0xff] %v7018_v24  ;;  %v1453_v53 = vsub.f32 %v10075_v20, %v9623_v51  ;;  %v445_v44 = vsub.f32 %v10076_v60, %v9624_v57  ;;  %v1442_v21 = vand.u32 4294901760, %v1441_v23  ;;  %v9627_v46 = vand.u32 4294901760, %v10080_v43 }
 0x150   :  { %10078 = vst [vmem:[#allocation52_spill] sm:$0xff] %v7020_v55  ;;  %v457_v18 = vsub.f32 %v10079_v25, %v9625_v7  ;;  %v9628_v55 = vand.u32 4294901760, %v10081_v27  ;;  %v7037_v24 = vpack.c.bf16 %v452_v28, %v440_v1  ;;  %v9633_v7 = vand.u32 4294901760, %v6758_v29 }
 0x151   :  { %v1454_v4 = vand.u32 4294901760, %v1453_v53  ;;  %v446_v50 = vand.u32 4294901760, %v445_v44  ;;  %v1447_v57 = vsub.f32 %v10080_v43, %v9627_v46  ;;  %v463_v28 = vsub.f32 %v6753_v59, %v9630_v61  ;;  %v10084_v53 = vld [vmem:[#allocation66_spill] sm:$0xff] }
 0x152   :  { %10082 = vst [vmem:[#allocation55_spill] sm:$0xff] %v7037_v24  ;;  %v458_v51 = vand.u32 4294901760, %v457_v18  ;;  %v1459_v23 = vsub.f32 %v10081_v27, %v9628_v55  ;;  %v9634_v44 = vand.u32 4294901760, %v6763_v49  ;;  %v9640_v1 = vand.u32 4294901760, %v10084_v53 }
 0x153   :  { %v7047_v25 = vpack.c.bf16 %v1454_v4, %v1442_v21  ;;  %v1448_v24 = vand.u32 4294901760, %v1447_v57  ;;  %v475_v55 = vsub.f32 %v6758_v29, %v9633_v7  ;;  %v464_v27 = vand.u32 4294901760, %v463_v28  ;;  %v10087_v57 = vld [vmem:[#allocation67_spill] sm:$0xff] }
 0x154   :  { %v7054_v18 = vpack.c.bf16 %v458_v51, %v446_v50  ;;  %v1460_v46 = vand.u32 4294901760, %v1459_v23  ;;  %v1465_v21 = vsub.f32 %v6763_v49, %v9634_v44  ;;  %v1477_v4 = vsub.f32 %v10084_v53, %v9640_v1  ;;  %v10088_v23 = vld [vmem:[#allocation68_spill] sm:$0xff]  ;;  %v10089_v44 = vld [vmem:[#allocation69_spill] sm:$0xff] }
 0x155   :  { %10083 = vst [vmem:[#allocation56_spill] sm:$0xff] %v7047_v25  ;;  %v9639_v61 = vand.u32 4294901760, %v6774_v3  ;;  %v476_v51 = vand.u32 4294901760, %v475_v55  ;;  %v9641_v50 = vand.u32 4294901760, %v10087_v57  ;;  %v9643_v49 = vand.u32 4294901760, %v10089_v44 }
 0x156   :  { %10085 = vst [vmem:[#allocation58_spill] sm:$0xff] %v7054_v18  ;;  %v7066_v25 = vpack.c.bf16 %v1460_v46, %v1448_v24  ;;  %v9642_v18 = vand.u32 4294901760, %v10088_v23  ;;  %v1466_v59 = vand.u32 4294901760, %v1465_v21  ;;  %v1478_v7 = vand.u32 4294901760, %v1477_v4 }
 0x157   :  { %v469_v28 = vsub.f32 %v6774_v3, %v9639_v61  ;;  %v7074_v29 = vpack.c.bf16 %v476_v51, %v464_v27  ;;  %v481_v24 = vsub.f32 %v10087_v57, %v9641_v50  ;;  %v9644_v46 = vand.u32 4294901760, %v6802_v5 }
 0x158   :  { %10086 = vst [vmem:[#allocation66_spill] sm:$0xff] %v7066_v25  ;;  %v1471_v55 = vsub.f32 %v10088_v23, %v9642_v18  ;;  %v7083_v21 = vpack.c.bf16 %v1478_v7, %v1466_v59  ;;  %v1483_v61 = vsub.f32 %v10089_v44, %v9643_v49  ;;  %v9645_v27 = vand.u32 4294901760, %v6807_v22 }
 0x159   :  { %10090 = vst [vmem:[#allocation67_spill] sm:$0xff] %v7074_v29  ;;  %v470_v4 = vand.u32 4294901760, %v469_v28  ;;  %v482_v51 = vand.u32 4294901760, %v481_v24  ;;  %v487_v50 = vsub.f32 %v6802_v5, %v9644_v46  ;;  %v9646_v29 = vand.u32 4294901760, %v6812_v9 }
 0x15a   :  { %10091 = vst [vmem:[#allocation68_spill] sm:$0xff] %v7083_v21  ;;  %v1472_v1 = vand.u32 4294901760, %v1471_v55  ;;  %v1484_v18 = vand.u32 4294901760, %v1483_v61  ;;  %v499_v59 = vsub.f32 %v6807_v22, %v9645_v27  ;;  %v9647_v7 = vand.u32 4294901760, %v6817_v6 }
 0x15b   :  { %v9648_v28 = vand.u32 4294901760, %v6822_v35  ;;  %v7098_v49 = vpack.c.bf16 %v482_v51, %v470_v4  ;;  %v488_v21 = vand.u32 4294901760, %v487_v50  ;;  %v1489_v24 = vsub.f32 %v6812_v9, %v9646_v29 }
 0x15c   :  { %v9649_v55 = vand.u32 4294901760, %v6827_v38  ;;  %v7104_v46 = vpack.c.bf16 %v1484_v18, %v1472_v1  ;;  %v500_v61 = vand.u32 4294901760, %v499_v59  ;;  %v1501_v27 = vsub.f32 %v6817_v6, %v9647_v7 }
 0x15d   :  { %10092 = vst [vmem:[#allocation69_spill] sm:$0xff] %v7098_v49  ;;  %v493_v25 = vsub.f32 %v6822_v35, %v9648_v28  ;;  %v1490_v4 = vand.u32 4294901760, %v1489_v24  ;;  %v9650_v51 = vand.u32 4294901760, %v6832_v39  ;;  %v9651_v29 = vand.u32 4294901760, %v6837_v45 }
 0x15e   :  { %10093 = vst [vmem:[#allocation109_spill] sm:$0xff] %v7104_v46  ;;  %v505_v50 = vsub.f32 %v6827_v38, %v9649_v55  ;;  %v7117_v1 = vpack.c.bf16 %v500_v61, %v488_v21  ;;  %v1502_v18 = vand.u32 4294901760, %v1501_v27  ;;  %v9652_v46 = vand.u32 4294901760, %v6843_v40 }
 0x15f   :  { %v494_v59 = vand.u32 4294901760, %v493_v25  ;;  %v1495_v28 = vsub.f32 %v6832_v39, %v9650_v51  ;;  %v1507_v24 = vsub.f32 %v6837_v45, %v9651_v29  ;;  %v9653_v55 = vand.u32 4294901760, %v6848_v34 }
 0x160   :  { %10094 = vst [vmem:[#allocation110_spill] sm:$0xff] %v7117_v1  ;;  %v506_v7 = vand.u32 4294901760, %v505_v50  ;;  %v7127_v49 = vpack.c.bf16 %v1502_v18, %v1490_v4  ;;  %v511_v21 = vsub.f32 %v6843_v40, %v9652_v46  ;;  %v9654_v25 = vand.u32 4294901760, %v6853_v12 }
 0x161   :  { %v9656_v27 = vand.u32 4294901760, %v6858_v16  ;;  %v1496_v50 = vand.u32 4294901760, %v1495_v28  ;;  %v1508_v51 = vand.u32 4294901760, %v1507_v24  ;;  %v523_v29 = vsub.f32 %v6848_v34, %v9653_v55 }
 0x162   :  { %10095 = vst [vmem:[#allocation111_spill] sm:$0xff] %v7127_v49  ;;  %v7134_v61 = vpack.c.bf16 %v506_v7, %v494_v59  ;;  %v512_v1 = vand.u32 4294901760, %v511_v21  ;;  %v1513_v4 = vsub.f32 %v6853_v12, %v9654_v25  ;;  %v9655_v46 = vand.u32 4294901760, %v6864_v17 }
 0x163   :  { %v1525_v18 = vsub.f32 %v6858_v16, %v9656_v27  ;;  %v7146_v49 = vpack.c.bf16 %v1508_v51, %v1496_v50  ;;  %v524_v7 = vand.u32 4294901760, %v523_v29  ;;  %v9657_v28 = vand.u32 4294901760, %v6869_v47 }
 0x164   :  { %10096 = vst [vmem:[#allocation112_spill] sm:$0xff] %v7134_v61  ;;  %v9658_v59 = vand.u32 4294901760, %v6874_v15  ;;  %v1514_v24 = vand.u32 4294901760, %v1513_v4  ;;  %v517_v21 = vsub.f32 %v6864_v17, %v9655_v46  ;;  %v9659_v25 = vand.u32 4294901760, %v6879_v13 }
 0x165   :  { %10097 = vst [vmem:[#allocation113_spill] sm:$0xff] %v7146_v49  ;;  %v1526_v55 = vand.u32 4294901760, %v1525_v18  ;;  %v7154_v61 = vpack.c.bf16 %v524_v7, %v512_v1  ;;  %v529_v51 = vsub.f32 %v6869_v47, %v9657_v28  ;;  %v9660_v50 = vand.u32 4294901760, %v6885_v10 }
 0x166   :  { %v1519_v29 = vsub.f32 %v6874_v15, %v9658_v59  ;;  %v518_v18 = vand.u32 4294901760, %v517_v21  ;;  %v1531_v46 = vsub.f32 %v6879_v13, %v9659_v25  ;;  %v9661_v1 = vand.u32 4294901760, %v6890_v58 }
 0x167   :  { %10098 = vst [vmem:[#allocation114_spill] sm:$0xff] %v7154_v61  ;;  %v7163_v4 = vpack.c.bf16 %v1526_v55, %v1514_v24  ;;  %v530_v7 = vand.u32 4294901760, %v529_v51  ;;  %v535_v28 = vsub.f32 %v6885_v10, %v9660_v50  ;;  %v9662_v61 = vand.u32 4294901760, %v6895_v42  ;;  %v10137_v10 = vld [vmem:[#allocation34_spill] sm:$0xff] }
 0x168   :  { %v1520_v27 = vand.u32 4294901760, %v1519_v29  ;;  %v1532_v59 = vand.u32 4294901760, %v1531_v46  ;;  %v547_v55 = vsub.f32 %v6890_v58, %v9661_v1  ;;  %v9663_v24 = vand.u32 4294901760, %v6900_v41 }
 0x169   :  { %10099 = vst [vmem:[#allocation115_spill] sm:$0xff] %v7163_v4  ;;  %v9664_v21 = vand.u32 4294901760, %v6906_v11  ;;  %v7178_v25 = vpack.c.bf16 %v530_v7, %v518_v18  ;;  %v536_v4 = vand.u32 4294901760, %v535_v28  ;;  %v1537_v51 = vsub.f32 %v6895_v42, %v9662_v61 }
 0x16a   :  { %v9665_v29 = vand.u32 4294901760, %v6911_v52  ;;  %v7184_v50 = vpack.c.bf16 %v1532_v59, %v1520_v27  ;;  %v548_v46 = vand.u32 4294901760, %v547_v55  ;;  %v1549_v1 = vsub.f32 %v6900_v41, %v9663_v24  ;;  %v10132_v41 = vld [vmem:[#allocation101_spill] sm:$0xff] }
 0x16b   :  { %10100 = vst [vmem:[#allocation116_spill] sm:$0xff] %v7178_v25  ;;  %v541_v49 = vsub.f32 %v6906_v11, %v9664_v21  ;;  %v1538_v18 = vand.u32 4294901760, %v1537_v51  ;;  %v9666_v7 = vand.u32 4294901760, %v6914_v32  ;;  %v9667_v61 = vand.u32 4294901760, %v6917_v14 }
 0x16c   :  { %10101 = vst [vmem:[#allocation117_spill] sm:$0xff] %v7184_v50  ;;  %v553_v28 = vsub.f32 %v6911_v52, %v9665_v29  ;;  %v7197_v27 = vpack.c.bf16 %v548_v46, %v536_v4  ;;  %v1550_v59 = vand.u32 4294901760, %v1549_v1  ;;  %v9670_v50 = vand.u32 4294901760, %v6920_v31  ;;  %v10104_v1 = vld [vmem:[#allocation91_spill] sm:$0xff]  ;;  %v10134_v52 = vld [vmem:[#allocation104_spill] sm:$0xff] }
 0x16d   :  { %v542_v55 = vand.u32 4294901760, %v541_v49  ;;  %v1543_v21 = vsub.f32 %v6914_v32, %v9666_v7  ;;  %v1555_v51 = vsub.f32 %v6917_v14, %v9667_v61  ;;  %v9671_v29 = vand.u32 4294901760, %v6923_v2 }
 0x16e   :  { %10102 = vst [vmem:[#allocation118_spill] sm:$0xff] %v7197_v27  ;;  %v554_v24 = vand.u32 4294901760, %v553_v28  ;;  %v7207_v25 = vpack.c.bf16 %v1550_v59, %v1538_v18  ;;  %v559_v4 = vsub.f32 %v6920_v31, %v9670_v50  ;;  %v9672_v49 = vand.u32 4294901760, %v6926_v54 }
 0x16f   :  { %v9676_v46 = vand.u32 4294901760, %v10104_v1  ;;  %v1544_v27 = vand.u32 4294901760, %v1543_v21  ;;  %v1556_v7 = vand.u32 4294901760, %v1555_v51  ;;  %v571_v61 = vsub.f32 %v6923_v2, %v9671_v29  ;;  %v4551_v2 = vld [vmem:[#allocation7] ss:$0 sm:$0xff] }
 0x170   :  { %10103 = vst [vmem:[#allocation119_spill] sm:$0xff] %v7207_v25  ;;  %v7214_v28 = vpack.c.bf16 %v554_v24, %v542_v55  ;;  %v560_v14 = vand.u32 4294901760, %v559_v4  ;;  %v1561_v18 = vsub.f32 %v6926_v54, %v9672_v49  ;;  %v9675_v50 = vand.u32 4294901760, %v6932_v63  ;;  %v10107_v55 = vld [vmem:[#allocation94_spill] sm:$0xff] }
 0x171   :  { %v1573_v59 = vsub.f32 %v10104_v1, %v9676_v46  ;;  %v7226_v25 = vpack.c.bf16 %v1556_v7, %v1544_v27  ;;  %v572_v24 = vand.u32 4294901760, %v571_v61  ;;  %v9677_v21 = vand.u32 4294901760, %v6935_v56 }
 0x172   :  { %10105 = vst [vmem:[#allocation120_spill] sm:$0xff] %v7214_v28  ;;  %v9678_v51 = vand.u32 4294901760, %v10107_v55  ;;  %v1562_v28 = vand.u32 4294901760, %v1561_v18  ;;  %v565_v4 = vsub.f32 %v6932_v63, %v9675_v50  ;;  %v9679_v49 = vand.u32 4294901760, %v6942_v37 }
 0x173   :  { %10106 = vst [vmem:[#allocation121_spill] sm:$0xff] %v7226_v25  ;;  %v1574_v29 = vand.u32 4294901760, %v1573_v59  ;;  %v7234_v54 = vpack.c.bf16 %v572_v24, %v560_v14  ;;  %v577_v7 = vsub.f32 %v6935_v56, %v9677_v21  ;;  %v9680_v27 = vand.u32 4294901760, %v6946_v33  ;;  %v10136_v56 = vld [vmem:[#allocation32_spill] sm:$0xff] }
 0x174   :  { %v1567_v61 = vsub.f32 %v10107_v55, %v9678_v51  ;;  %v566_v59 = vand.u32 4294901760, %v565_v4  ;;  %v1579_v50 = vsub.f32 %v6942_v37, %v9679_v49  ;;  %v9681_v14 = vand.u32 4294901760, %v6948_v48 }
 0x175   :  { %10108 = vst [vmem:[#allocation122_spill] sm:$0xff] %v7234_v54  ;;  %v7243_v18 = vpack.c.bf16 %v1574_v29, %v1562_v28  ;;  %v578_v24 = vand.u32 4294901760, %v577_v7  ;;  %v583_v21 = vsub.f32 %v6946_v33, %v9680_v27  ;;  %v9684_v54 = vand.u32 4294901760, %v6953_v36  ;;  %v10121_v33 = vld [vmem:[#allocation54_spill] sm:$0xff] }
 0x176   :  { %v1568_v46 = vand.u32 4294901760, %v1567_v61  ;;  %v1580_v51 = vand.u32 4294901760, %v1579_v50  ;;  %v595_v29 = vsub.f32 %v6948_v48, %v9681_v14  ;;  %v9689_v28 = vand.u32 4294901760, %v6955_v62  ;;  %v10111_v61 = vld [vmem:[#allocation105_spill] sm:$0xff] }
 0x177   :  { %10109 = vst [vmem:[#allocation123_spill] sm:$0xff] %v7243_v18  ;;  %v9693_v4 = vand.u32 4294901760, %v6959_v8  ;;  %v7258_v49 = vpack.c.bf16 %v578_v24, %v566_v59  ;;  %v584_v18 = vand.u32 4294901760, %v583_v21  ;;  %v1585_v7 = vsub.f32 %v6953_v36, %v9684_v54  ;;  %v10113_v24 = vld [vmem:[#allocation107_spill] sm:$0xff] }
 0x178   :  { %v9692_v27 = vand.u32 4294901760, %v10111_v61  ;;  %v7264_v25 = vpack.c.bf16 %v1580_v51, %v1568_v46  ;;  %v596_v50 = vand.u32 4294901760, %v595_v29  ;;  %v1597_v14 = vsub.f32 %v6955_v62, %v9689_v28 }
 0x179   :  { %10110 = vst [vmem:[#allocation124_spill] sm:$0xff] %v7258_v49  ;;  %v589_v48 = vsub.f32 %v6959_v8, %v9693_v4  ;;  %v1586_v59 = vand.u32 4294901760, %v1585_v7  ;;  %v9699_v54 = vand.u32 4294901760, %v10113_v24  ;;  %v10114_v49 = vld [vmem:[#allocation108_spill] sm:$0xff]  ;;  %v10122_v8 = vld [vmem:[#allocation57_spill] sm:$0xff] }
 0x17a   :  { %10112 = vst [vmem:[#allocation125_spill] sm:$0xff] %v7264_v25  ;;  %v601_v21 = vsub.f32 %v10111_v61, %v9692_v27  ;;  %v9700_v36 = vand.u32 4294901760, %v10114_v49  ;;  %v7277_v46 = vpack.c.bf16 %v596_v50, %v584_v18  ;;  %v1598_v51 = vand.u32 4294901760, %v1597_v14  ;;  %v10118_v61 = vld [vmem:[#allocation25_spill] sm:$0xff]  ;;  %v10125_v18 = vld [vmem:[#allocation64_spill] sm:$0xff] }
 0x17b   :  { %v590_v29 = vand.u32 4294901760, %v589_v48  ;;  %v1591_v7 = vsub.f32 %v10113_v24, %v9699_v54  ;;  %v10120_v50 = vld [vmem:[#allocation53_spill] sm:$0xff]  ;;  %v10124_v48 = vld [vmem:[#allocation63_spill] sm:$0xff] }
 0x17c   :  { %v602_v62 = vand.u32 4294901760, %v601_v21  ;;  %v1603_v27 = vsub.f32 %v10114_v49, %v9700_v36  ;;  %v7289_v37 = vpack.c.bf16 %v1598_v51, %v1586_v59  ;;  %v10123_v51 = vld [vmem:[#allocation59_spill] sm:$0xff]  ;;  %v10126_v14 = vld [vmem:[#allocation65_spill] sm:$0xff] }
 0x17d   :  { %v1592_v54 = vand.u32 4294901760, %v1591_v7 }
 0x17e   :  { %v7297_v28 = vpack.c.bf16 %v602_v62, %v590_v29  ;;  %v1604_v25 = vand.u32 4294901760, %v1603_v27  ;;  %v10135_v62 = vld [vmem:[#allocation105_spill] sm:$0xff] }
 0x180   :  { %v7309_v21 = vpack.c.bf16 %v1604_v25, %v1592_v54 }
 0x1a2   :  { %v142_v31 = vpop.xlane.xlu0 %141 }
 0x1a3   :  { %v149_v27 = vmul.f32 0.0078125, %v142_v31 }
 0x1a5   :  { %v153_v4 = vadd.f32 1e-05, %v149_v27 }
 0x1a6   :  { %v144_v1 = vpop.xlane.xlu1 %143  ;;  %v146_v29 = vpop.xlane.xlu0 %145 }
 0x1a7   :  { %5974 = vrsqrt.f32 %v153_v4  ;;  %v150_v63 = vmul.f32 0.0078125, %v144_v1  ;;  %v151_v59 = vmul.f32 0.0078125, %v146_v29  ;;  %v10138_v29 = vld [vmem:[#allocation33_spill] sm:$0xff] }
 0x1a9   :  { %v154_v55 = vadd.f32 1e-05, %v150_v63  ;;  %v155_v7 = vadd.f32 1e-05, %v151_v59 }
 0x1aa   :  { %v148_v42 = vpop.xlane.xlu1 %147 }
 0x1ab   :  { %5976 = vrsqrt.f32 %v154_v55  ;;  %v152_v36 = vmul.f32 0.0078125, %v148_v42 }
 0x1ac   :  { %5978 = vrsqrt.f32 %v155_v7 }
 0x1ad   :  { %v156_v11 = vadd.f32 1e-05, %v152_v36  ;;  %v10140_v36 = vld [vmem:[#allocation35_spill] sm:$0xff] }
 0x1af   :  { %5980 = vrsqrt.f32 %v156_v11 }
 0x1b1   :  { %v5975_v32 = vpop.eup %5974 }
 0x1b2   :  { %v161_v25 = vmul.f32 %v5975_v32, %v10136_v56 }
 0x1b4   :  { %v171_v31 = vmul.f32 %v4550_v26, %v161_v25 }
 0x1b5   :  { %v5977_v27 = vpop.eup %5976 }
 0x1b6   :  { %v5979_v54 = vpop.eup %5978  ;;  %v162_v4 = vmul.f32 %v5977_v27, %v10137_v10  ;;  %v181_v1 = vadd.f32 %v4551_v2, %v171_v31  ;;  %v10143_v31 = vand.u32 4294901760, %v10133_v30 }
 0x1b7   :  { %v163_v63 = vmul.f32 %v5979_v54, %v10138_v29  ;;  %v10142_v54 = vand.u32 4294901760, %v10132_v41  ;;  %v10146_v29 = vand.u32 4294901760, %v10134_v52 }
 0x1b8   :  { %v172_v59 = vmul.f32 %v4550_v26, %v162_v4  ;;  %v7358_v58 = vand.u32 4294901760, %v181_v1 }
 0x1b9   :  { %v5981_v42 = vpop.eup %5980  ;;  %v173_v55 = vmul.f32 %v4550_v26, %v163_v63  ;;  %v7373_v27 = vpack.c.bf16 %v10143_v31, %v10142_v54 }
 0x1ba   :  { %10139 = vst [vmem:[#allocation107_spill] sm:$0xff] %v7358_v58  ;;  %v164_v11 = vmul.f32 %v5981_v42, %v10140_v36  ;;  %v7362_v7 = vsub.f32 %v181_v1, %v7358_v58  ;;  %v182_v32 = vadd.f32 %v4551_v2, %v172_v59  ;;  %v10147_v1 = vand.u32 4294901760, %v10135_v62 }
 0x1bb   :  { %v183_v56 = vadd.f32 %v4551_v2, %v173_v55  ;;  %10144 = vst [vmem:[#allocation25_spill] sm:$0xff] %v7373_v27  ;;  %v10150_v59 = vand.u32 4294901760, %v10114_v49  ;;  %v10159_v27 = vld [vmem:[#allocation56_spill] sm:$0xff] }
 0x1bc   :  { %v174_v25 = vmul.f32 %v4550_v26, %v164_v11  ;;  %v7365_v15 = vand.u32 4294901760, %v7362_v7  ;;  %v7367_v10 = vand.u32 4294901760, %v182_v32  ;;  %v7381_v63 = vpack.c.bf16 %v10147_v1, %v10146_v29 }
 0x1bd   :  { %v7375_v4 = vand.u32 4294901760, %v183_v56  ;;  %v10149_v26 = vand.u32 4294901760, %v10113_v24 }
 0x1be   :  { %10141 = vst [vmem:[#allocation108_spill] sm:$0xff] %v7367_v10  ;;  %10148 = vst [vmem:[#allocation54_spill] sm:$0xff] %v7381_v63  ;;  %v371_v55 = vsub.f32 %v7362_v7, %v7365_v15  ;;  %v7392_v36 = vsub.f32 %v182_v32, %v7367_v10  ;;  %v184_v11 = vadd.f32 %v4551_v2, %v174_v25  ;;  %v10154_v2 = vld [vmem:[#allocation31_spill] sm:$0xff]  ;;  %v10156_v25 = vmov 0.0  }
 0x1bf   :  { %10145 = vst [vmem:[#allocation53_spill] sm:$0xff] %v7375_v4  ;;  %v7387_v42 = vpack.c.bf16 %v10150_v59, %v10149_v26  ;;  %v7395_v54 = vsub.f32 %v183_v56, %v7375_v4  ;;  %v10155_v56 = vld [vmem:[#allocation52_spill] sm:$0xff]  ;;  %v10157_v59 = vld [vmem:[#allocation55_spill] sm:$0xff] }
 0x1c0   :  { %v372_v31 = vand.u32 4294901760, %v371_v55  ;;  %v7398_v29 = vand.u32 4294901760, %v7392_v36  ;;  %v7400_v1 = vand.u32 4294901760, %v184_v11 }
 0x1c1   :  { %10151 = vst [vmem:[#allocation57_spill] sm:$0xff] %v7387_v42  ;;  %v7403_v63 = vand.u32 4294901760, %v7395_v54 }
 0x1c2   :  { %10152 = vst [vmem:[#allocation59_spill] sm:$0xff] %v7400_v1  ;;  %373 = vmatmul.mubr.f32.vlgmr.msra.gmra.mrb[0].mxu0 %v372_v31  ;;  %1375 = vmatmul.mubr.f32.vlgmr.msra.gmra.mrb[0].mxu1 %v372_v31  ;;  %v382_v26 = vsub.f32 %v7392_v36, %v7398_v29  ;;  %v7408_v32 = vsub.f32 %v184_v11, %v7400_v1  ;;  %v10160_v11 = vld [vmem:[#allocation58_spill] sm:$0xff] }
 0x1c3   :  { %10153 = vst [vmem:[#allocation63_spill] sm:$0xff] %v7403_v63  ;;  %5132 = vmatpush1.bf16.msra.mxu0 %v10154_v2  ;;  %5324 = vmatpush1.bf16.msra.mxu1 %v10155_v56  ;;  %v393_v42 = vsub.f32 %v7395_v54, %v7403_v63  ;;  %v10161_v2 = vld [vmem:[#allocation66_spill] sm:$0xff]  ;;  %v10162_v56 = vld [vmem:[#allocation67_spill] sm:$0xff]  ;;  %v10163_v63 = vld [vmem:[#allocation68_spill] sm:$0xff] }
 0x1c4   :  { %378 = vmatprep.mubr.f32.mxu0 %v10156_v25  ;;  %5134 = vmatprep.subr.bf16.mxu0 %v10157_v59  ;;  %v383_v55 = vand.u32 4294901760, %v382_v26  ;;  %v7417_v31 = vand.u32 4294901760, %v7408_v32 }
 0x1c5   :  { %1380 = vmatprep.mubr.f32.mxu1 %v10156_v25  ;;  %5326 = vmatprep.subr.bf16.mxu1 %v10159_v27  ;;  %v394_v26 = vand.u32 4294901760, %v393_v42  ;;  %v10164_v27 = vld [vmem:[#allocation69_spill] sm:$0xff]  ;;  %v10167_v42 = vld [vmem:[#allocation111_spill] sm:$0xff] }
 0x1c6   :  { %10158 = vst [vmem:[#allocation64_spill] sm:$0xff] %v7417_v31  ;;  %384 = vmatmul.mubr.f32.gmra.mrb[2].mxu0 %v383_v55  ;;  %1386 = vmatmul.mubr.f32.gmra.mrb[2].mxu1 %v383_v55  ;;  %v404_v59 = vsub.f32 %v7408_v32, %v7417_v31  ;;  %v10165_v55 = vld [vmem:[#allocation109_spill] sm:$0xff] }
 0x1c7   :  { %5136 = vmatpush1.bf16.msra.mxu0 %v10160_v11  ;;  %5328 = vmatpush1.bf16.msra.mxu1 %v10161_v2  ;;  %v10166_v11 = vld [vmem:[#allocation110_spill] sm:$0xff]  ;;  %v10181_v31 = vld [vmem:[#allocation125_spill] sm:$0xff] }
 0x1c8   :  { %389 = vmatprep.mubr.f32.mxu0 %v10156_v25  ;;  %5138 = vmatprep.subr.bf16.mxu0 %v10162_v56  ;;  %v405_v2 = vand.u32 4294901760, %v404_v59  ;;  %v10168_v56 = vld [vmem:[#allocation112_spill] sm:$0xff]  ;;  %v10173_v59 = vld [vmem:[#allocation117_spill] sm:$0xff] }
 0x1c9   :  { %1391 = vmatprep.mubr.f32.mxu1 %v10156_v25  ;;  %5330 = vmatprep.subr.bf16.mxu1 %v10163_v63  ;;  %v10169_v63 = vld [vmem:[#allocation113_spill] sm:$0xff] }
 0x1ca   :  { %395 = vmatmul.mubr.f32.gmra.mrb[4].mxu0 %v394_v26  ;;  %1397 = vmatmul.mubr.f32.gmra.mrb[4].mxu1 %v394_v26  ;;  %v10170_v26 = vld [vmem:[#allocation114_spill] sm:$0xff] }
 0x1cb   :  { %5140 = vmatpush1.bf16.msra.mxu0 %v10164_v27  ;;  %5332 = vmatpush1.bf16.msra.mxu1 %v10165_v55  ;;  %v10171_v27 = vld [vmem:[#allocation115_spill] sm:$0xff]  ;;  %v10172_v55 = vld [vmem:[#allocation116_spill] sm:$0xff] }
 0x1cc   :  { %400 = vmatprep.mubr.f32.mxu0 %v10156_v25  ;;  %5142 = vmatprep.subr.bf16.mxu0 %v10166_v11  ;;  %v10174_v11 = vld [vmem:[#allocation118_spill] sm:$0xff] }
 0x1cd   :  { %1402 = vmatprep.mubr.f32.mxu1 %v10156_v25  ;;  %5334 = vmatprep.subr.bf16.mxu1 %v10167_v42  ;;  %v10175_v42 = vld [vmem:[#allocation119_spill] sm:$0xff] }
 0x1ce   :  { %406 = vmatmul.mubr.f32.gmra.mrb[6].mxu0 %v405_v2  ;;  %1408 = vmatmul.mubr.f32.gmra.mrb[6].mxu1 %v405_v2  ;;  %v10176_v2 = vld [vmem:[#allocation120_spill] sm:$0xff] }
 0x1cf   :  { %5144 = vmatpush1.bf16.msra.mxu0 %v10168_v56  ;;  %5336 = vmatpush1.bf16.msra.mxu1 %v10169_v63  ;;  %v10177_v56 = vld [vmem:[#allocation121_spill] sm:$0xff]  ;;  %v10178_v63 = vld [vmem:[#allocation122_spill] sm:$0xff] }
 0x1d0   :  { %5146 = vmatprep.subr.bf16.mxu0 %v10170_v26  ;;  %5338 = vmatprep.subr.bf16.mxu1 %v10171_v27  ;;  %v10179_v26 = vld [vmem:[#allocation123_spill] sm:$0xff]  ;;  %v10180_v27 = vld [vmem:[#allocation124_spill] sm:$0xff] }
 0x1d1   :  { %636 = vmatprep.mubr.f32.mxu0 %v10156_v25  ;;  %1638 = vmatprep.mubr.f32.mxu1 %v10156_v25 }
 0x1d3   :  { %5148 = vmatpush1.bf16.msra.mxu0 %v10172_v55  ;;  %5340 = vmatpush1.bf16.msra.mxu1 %v10173_v59  ;;  %v10182_v55 = vld [vmem:[#allocation22_spill] sm:$0xff]  ;;  %v10183_v59 = vld [vmem:[#allocation21_spill] sm:$0xff] }
 0x1d4   :  { %5150 = vmatprep.subr.bf16.mxu0 %v10174_v11  ;;  %5342 = vmatprep.subr.bf16.mxu1 %v10175_v42  ;;  %v10184_v11 = vpack.c.bf16 %v10182_v55, %v10183_v59  ;;  %v10185_v42 = vld [vmem:[#allocation23_spill] sm:$0xff] }
 0x1d7   :  { %5152 = vmatpush1.bf16.msra.mxu0 %v10176_v2  ;;  %5344 = vmatpush1.bf16.msra.mxu1 %v10177_v56  ;;  %v10186_v2 = vpack.c.bf16 %v10118_v61, %v10185_v42 }
 0x1d8   :  { %5154 = vmatprep.subr.bf16.mxu0 %v10178_v63  ;;  %5346 = vmatprep.subr.bf16.mxu1 %v10179_v26  ;;  %v10193_v63 = vpack.c.bf16 %v10075_v20, %v10121_v33  ;;  %v10194_v26 = vpack.c.bf16 %v10122_v8, %v10076_v60 }
 0x1db   :  { %5156 = vmatpush1.bf16.msra.mxu0 %v10180_v27  ;;  %5348 = vmatpush1.bf16.msra.mxu1 %v10181_v31  ;;  %v10187_v31 = vld [vmem:[#allocation28_spill] sm:$0xff]  ;;  %v10195_v27 = vpack.c.bf16 %v10123_v51, %v10080_v43 }
 0x1dc   :  { %5158 = vmatprep.subr.bf16.mxu0 %v7277_v46  ;;  %5350 = vmatprep.subr.bf16.mxu1 %v7289_v37  ;;  %v10188_v46 = vld [vmem:[#allocation27_spill] sm:$0xff]  ;;  %v10190_v37 = vld [vmem:[#allocation30_spill] sm:$0xff] }
 0x1dd   :  { %v10189_v56 = vpack.c.bf16 %v10187_v31, %v10188_v46 }
 0x1df   :  { %5160 = vmatpush1.bf16.msra.mxu0 %v7297_v28  ;;  %5352 = vmatpush1.bf16.msra.mxu1 %v7309_v21  ;;  %v10191_v28 = vpack.c.bf16 %v10071_v0, %v10190_v37  ;;  %v10192_v21 = vpack.c.bf16 %v10120_v50, %v10072_v19 }
 0x1e0   :  { %5162 = vmatprep.subr.bf16.mxu0 %v10184_v11  ;;  %5354 = vmatprep.subr.bf16.mxu1 %v10186_v2  ;;  %v10196_v11 = vpack.c.bf16 %v10125_v18, %v10124_v48  ;;  %v10197_v2 = vpack.c.bf16 %v10084_v53, %v10126_v14 }
 0x1e2   :  { %638 = vmatmul.mubr.f32.vlgmr.msra.gmra.mrb[0].mxu0 %v7358_v58  ;;  %1640 = vmatmul.mubr.f32.vlgmr.msra.gmra.mrb[0].mxu1 %v7358_v58 }
 0x1e3   :  { %5164 = vmatpush1.bf16.msra.mxu0 %v10189_v56  ;;  %5356 = vmatpush1.bf16.msra.mxu1 %v10191_v28  ;;  %v10198_v56 = vpack.c.bf16 %v10087_v57, %v6774_v3  ;;  %v10199_v28 = vpack.c.bf16 %v10089_v44, %v10088_v23 }
 0x1e4   :  { %643 = vmatprep.mubr.f32.mxu0 %v10156_v25  ;;  %1645 = vmatprep.mubr.f32.mxu1 %v10156_v25 }
 0x1e5   :  { %5166 = vmatprep.subr.bf16.mxu0 %v10192_v21  ;;  %5358 = vmatprep.subr.bf16.mxu1 %v10193_v63  ;;  %v10200_v21 = vpack.c.bf16 %v6807_v22, %v6802_v5  ;;  %v10201_v63 = vpack.c.bf16 %v6817_v6, %v6812_v9 }
 0x1e6   :  { %645 = vmatmul.mubr.f32.gmra.mrb[2].mxu0 %v7367_v10  ;;  %1647 = vmatmul.mubr.f32.gmra.mrb[2].mxu1 %v7367_v10  ;;  %v10216_v10 = vld [vmem:[#allocation84_spill] sm:$0xff] }
 0x1e7   :  { %5168 = vmatpush1.bf16.msra.mxu0 %v10194_v26  ;;  %5360 = vmatpush1.bf16.msra.mxu1 %v10195_v27  ;;  %v10202_v26 = vpack.c.bf16 %v6827_v38, %v6822_v35  ;;  %v10203_v27 = vpack.c.bf16 %v6837_v45, %v6832_v39 }
 0x1e8   :  { %650 = vmatprep.mubr.f32.mxu0 %v10156_v25  ;;  %1652 = vmatprep.mubr.f32.mxu1 %v10156_v25 }
 0x1e9   :  { %5170 = vmatprep.subr.bf16.mxu0 %v10196_v11  ;;  %5362 = vmatprep.subr.bf16.mxu1 %v10197_v2  ;;  %v10204_v11 = vpack.c.bf16 %v6848_v34, %v6843_v40  ;;  %v10205_v2 = vpack.c.bf16 %v6858_v16, %v6853_v12  ;;  %v10218_v16 = vld [vmem:[#allocation87_spill] sm:$0xff]  ;;  %v10219_v12 = vld [vmem:[#allocation86_spill] sm:$0xff] }
 0x1ea   :  { %652 = vmatmul.mubr.f32.gmra.mrb[4].mxu0 %v7375_v4  ;;  %1654 = vmatmul.mubr.f32.gmra.mrb[4].mxu1 %v7375_v4 }
 0x1eb   :  { %5172 = vmatpush1.bf16.msra.mxu0 %v10198_v56  ;;  %5364 = vmatpush1.bf16.msra.mxu1 %v10199_v28  ;;  %v10206_v56 = vpack.c.bf16 %v6869_v47, %v6864_v17  ;;  %v10207_v28 = vld [vmem:[#allocation78_spill] sm:$0xff]  ;;  %v10220_v47 = vpack.c.bf16 %v10218_v16, %v10219_v12  ;;  %v10222_v17 = vld [vmem:[#allocation88_spill] sm:$0xff] }
 0x1ec   :  { %657 = vmatprep.mubr.f32.mxu0 %v10156_v25  ;;  %1659 = vmatprep.mubr.f32.mxu1 %v10156_v25 }
 0x1ed   :  { %5174 = vmatprep.subr.bf16.mxu0 %v10200_v21  ;;  %5366 = vmatprep.subr.bf16.mxu1 %v10201_v63  ;;  %v10208_v21 = vpack.c.bf16 %v6879_v13, %v10207_v28  ;;  %v10209_v63 = vld [vmem:[#allocation81_spill] sm:$0xff]  ;;  %v10225_v28 = vld [vmem:[#allocation90_spill] sm:$0xff] }
 0x1ee   :  { %659 = vmatmul.mubr.f32.gmra.mrb[6].mxu0 %v7400_v1  ;;  %1661 = vmatmul.mubr.f32.gmra.mrb[6].mxu1 %v7400_v1  ;;  %v10213_v1 = vld [vmem:[#allocation82_spill] sm:$0xff] }
 0x1ef   :  { %5176 = vmatpush1.bf16.msra.mxu0 %v10202_v26  ;;  %5368 = vmatpush1.bf16.msra.mxu1 %v10203_v27  ;;  %v10210_v26 = vld [vmem:[#allocation80_spill] sm:$0xff] }
 0x1f0   :  { %5178 = vmatprep.subr.bf16.mxu0 %v10204_v11  ;;  %5370 = vmatprep.subr.bf16.mxu1 %v10205_v2  ;;  %v10211_v27 = vpack.c.bf16 %v10209_v63, %v10210_v26  ;;  %v10212_v11 = vld [vmem:[#allocation83_spill] sm:$0xff]  ;;  %v10215_v2 = vld [vmem:[#allocation85_spill] sm:$0xff]  ;;  %v10228_v26 = vld [vmem:[#allocation92_spill] sm:$0xff] }
 0x1f1   :  { %793 = vmatprep.mubr.f32.mxu0 %v10156_v25  ;;  %1795 = vmatprep.mubr.f32.mxu1 %v10156_v25  ;;  %v10214_v4 = vpack.c.bf16 %v10212_v11, %v10213_v1  ;;  %v10217_v58 = vpack.c.bf16 %v10215_v2, %v10216_v10  ;;  %v10231_v1 = vld [vmem:[#allocation94_spill] sm:$0xff] }
 0x1f2   :  { %v10234_v10 = vld [vmem:[#allocation98_spill] sm:$0xff] }
 0x1f3   :  { %5180 = vmatpush1.bf16.msra.mxu0 %v10206_v56  ;;  %5372 = vmatpush1.bf16.msra.mxu1 %v10208_v21  ;;  %v10221_v56 = vld [vmem:[#allocation89_spill] sm:$0xff]  ;;  %v10224_v21 = vld [vmem:[#allocation91_spill] sm:$0xff] }
 0x1f4   :  { %5182 = vmatprep.subr.bf16.mxu0 %v10211_v27  ;;  %5374 = vmatprep.subr.bf16.mxu1 %v10214_v4  ;;  %v10223_v13 = vpack.c.bf16 %v10221_v56, %v10222_v17  ;;  %v10226_v63 = vpack.c.bf16 %v10224_v21, %v10225_v28  ;;  %v10227_v27 = vld [vmem:[#allocation93_spill] sm:$0xff]  ;;  %v10230_v4 = vld [vmem:[#allocation96_spill] sm:$0xff] }
 0x1f5   :  { %v10229_v11 = vpack.c.bf16 %v10227_v27, %v10228_v26  ;;  %v10232_v2 = vpack.c.bf16 %v10230_v4, %v10231_v1  ;;  %v10240_v4 = vld [vmem:[#allocation24_spill] sm:$0xff] }
 0x1f7   :  { %5184 = vmatpush1.bf16.msra.mxu0 %v10217_v58  ;;  %5376 = vmatpush1.bf16.msra.mxu1 %v10220_v47  ;;  %v10233_v58 = vld [vmem:[#allocation99_spill] sm:$0xff]  ;;  %v10236_v47 = vpack.c.bf16 %v10133_v30, %v10132_v41  ;;  %v10242_v30 = vld [vmem:[#allocation29_spill] sm:$0xff]  ;;  %v10243_v41 = vld [vmem:[#allocation36_spill] sm:$0xff] }
 0x1f8   :  { %5186 = vmatprep.subr.bf16.mxu0 %v10223_v13  ;;  %5378 = vmatprep.subr.bf16.mxu1 %v10226_v63  ;;  %v10235_v16 = vpack.c.bf16 %v10233_v58, %v10234_v10  ;;  %v10237_v13 = vpack.c.bf16 %v10135_v62, %v10134_v52  ;;  %v10238_v63 = vpack.c.bf16 %v10114_v49, %v10113_v24  ;;  %v10244_v52 = vld [vmem:[#allocation37_spill] sm:$0xff]  ;;  %v10245_v49 = vld [vmem:[#allocation38_spill] sm:$0xff]  ;;  %v10246_v24 = vld [vmem:[#allocation39_spill] sm:$0xff] }
 0x1f9   :  { %v10247_v62 = vld [vmem:[#allocation40_spill] sm:$0xff] }
 0x1fb   :  { %5188 = vmatpush1.bf16.msra.mxu0 %v10229_v11  ;;  %5380 = vmatpush1.bf16.msra.mxu1 %v10232_v2  ;;  %v10239_v11 = vld [vmem:[#allocation20_spill] sm:$0xff]  ;;  %v10249_v2 = vld [vmem:[#allocation42_spill] sm:$0xff] }
 0x1fc   :  { %5190 = vmatprep.subr.bf16.mxu0 %v10235_v16  ;;  %5382 = vmatprep.subr.bf16.mxu1 %v10236_v47  ;;  %v10241_v16 = vld [vmem:[#allocation26_spill] sm:$0xff]  ;;  %v10250_v47 = vld [vmem:[#allocation43_spill] sm:$0xff] }
 0x1ff   :  { %5192 = vmatpush1.bf16.msra.mxu0 %v10237_v13  ;;  %5384 = vmatpush1.bf16.msra.mxu1 %v10238_v63  ;;  %v10252_v13 = vld [vmem:[#allocation45_spill] sm:$0xff]  ;;  %v10253_v63 = vld [vmem:[#allocation46_spill] sm:$0xff] }
 0x200   :  { %5194 = vmatprep.subr.bf16.mxu0 %v10239_v11  ;;  %5386 = vmatprep.subr.bf16.mxu1 %v10240_v4 }
 0x202   :  { %796 = vmatmul.mubr.f32.vlgmr.msra.gmra.mrb[0].mxu0 %v7362_v7  ;;  %1798 = vmatmul.mubr.f32.vlgmr.msra.gmra.mrb[0].mxu1 %v7362_v7  ;;  %v10248_v7 = vld [vmem:[#allocation41_spill] sm:$0xff] }
 0x203   :  { %5196 = vmatpush1.bf16.msra.mxu0 %v10241_v16  ;;  %5388 = vmatpush1.bf16.msra.mxu1 %v10242_v30 }
 0x204   :  { %801 = vmatprep.mubr.f32.mxu0 %v10156_v25  ;;  %1803 = vmatprep.mubr.f32.mxu1 %v10156_v25 }
 0x205   :  { %5198 = vmatprep.subr.bf16.mxu0 %v10243_v41  ;;  %5390 = vmatprep.subr.bf16.mxu1 %v10244_v52  ;;  %v10273_v52 = vld [vmem:[#allocation103_spill] sm:$0xff] }
 0x206   :  { %804 = vmatmul.mubr.f32.gmra.mrb[2].mxu0 %v7392_v36  ;;  %1806 = vmatmul.mubr.f32.gmra.mrb[2].mxu1 %v7392_v36  ;;  %v10251_v36 = vld [vmem:[#allocation44_spill] sm:$0xff] }
 0x207   :  { %5200 = vmatpush1.bf16.msra.mxu0 %v10245_v49  ;;  %5392 = vmatpush1.bf16.msra.mxu1 %v10246_v24  ;;  %v10266_v24 = vld [vmem:[#allocation95_spill] sm:$0xff]  ;;  %v10267_v49 = vld [vmem:[#allocation97_spill] sm:$0xff] }
 0x208   :  { %809 = vmatprep.mubr.f32.mxu0 %v10156_v25  ;;  %1811 = vmatprep.mubr.f32.mxu1 %v10156_v25 }
 0x209   :  { %5202 = vmatprep.subr.bf16.mxu0 %v10247_v62  ;;  %5394 = vmatprep.subr.bf16.mxu1 %v10248_v7  ;;  %v10254_v7 = vld [vmem:[#allocation47_spill] sm:$0xff]  ;;  %v10260_v62 = vld [vmem:[#allocation61_spill] sm:$0xff] }
 0x20a   :  { %812 = vmatmul.mubr.f32.gmra.mrb[4].mxu0 %v7395_v54  ;;  %1814 = vmatmul.mubr.f32.gmra.mrb[4].mxu1 %v7395_v54  ;;  %v10255_v54 = vld [vmem:[#allocation48_spill] sm:$0xff] }
 0x20b   :  { %5204 = vmatpush1.bf16.msra.mxu0 %v10249_v2  ;;  %5396 = vmatpush1.bf16.msra.mxu1 %v10250_v47  ;;  %v10256_v2 = vld [vmem:[#allocation49_spill] sm:$0xff]  ;;  %v10257_v47 = vld [vmem:[#allocation50_spill] sm:$0xff] }
 0x20c   :  { %817 = vmatprep.mubr.f32.mxu0 %v10156_v25  ;;  %1819 = vmatprep.mubr.f32.mxu1 %v10156_v25 }
 0x20d   :  { %5206 = vmatprep.subr.bf16.mxu0 %v10251_v36  ;;  %5398 = vmatprep.subr.bf16.mxu1 %v10252_v13  ;;  %v10258_v36 = vld [vmem:[#allocation51_spill] sm:$0xff]  ;;  %v10259_v13 = vld [vmem:[#allocation60_spill] sm:$0xff] }
 0x20e   :  { %820 = vmatmul.mubr.f32.gmra.mrb[6].mxu0 %v7408_v32  ;;  %1822 = vmatmul.mubr.f32.gmra.mrb[6].mxu1 %v7408_v32  ;;  %v10261_v32 = vld [vmem:[#allocation62_spill] sm:$0xff] }
 0x20f   :  { %5208 = vmatpush1.bf16.msra.mxu0 %v10253_v63  ;;  %5400 = vmatpush1.bf16.msra.mxu1 %v10254_v7  ;;  %v10262_v63 = vld [vmem:[#allocation70_spill] sm:$0xff]  ;;  %v10263_v7 = vld [vmem:[#allocation71_spill] sm:$0xff] }
 0x210   :  { %5210 = vmatprep.subr.bf16.mxu0 %v10255_v54  ;;  %5402 = vmatprep.subr.bf16.mxu1 %v10256_v2  ;;  %v10264_v54 = vld [vmem:[#allocation72_spill] sm:$0xff]  ;;  %v10265_v2 = vld [vmem:[#allocation73_spill] sm:$0xff] }
 0x211   :  { %922 = vmatprep.mubr.f32.mxu0 %v10156_v25  ;;  %1924 = vmatprep.mubr.f32.mxu1 %v10156_v25 }
 0x213   :  { %5212 = vmatpush1.bf16.msra.mxu0 %v10257_v47  ;;  %5404 = vmatpush1.bf16.msra.mxu1 %v10258_v36  ;;  %v10268_v47 = vld [vmem:[#allocation100_spill] sm:$0xff] }
 0x214   :  { %5214 = vmatprep.subr.bf16.mxu0 %v10259_v13  ;;  %5406 = vmatprep.subr.bf16.mxu1 %v10260_v62  ;;  %v10269_v13 = vand.u32 4294901760, %v10183_v59  ;;  %v10270_v62 = vand.u32 4294901760, %v10182_v55  ;;  %v10278_v59 = vand.u32 4294901760, %v10071_v0  ;;  %v10283_v0 = vand.u32 4294901760, %v10076_v60 }
 0x215   :  { %v10289_v60 = vand.u32 4294901760, %v10126_v14  ;;  %v10296_v14 = vand.u32 4294901760, %v6807_v22  ;;  %v10303_v22 = vand.u32 4294901760, %v6837_v45  ;;  %v10311_v45 = vld [vmem:[#allocation76_spill] sm:$0xff] }
 0x216   :  { %v5225_v36 = vpack.c.bf16 %v10270_v62, %v10269_v13  ;;  %v10281_v13 = vand.u32 4294901760, %v10121_v33  ;;  %v10288_v33 = vand.u32 4294901760, %v10125_v18  ;;  %v10294_v18 = vand.u32 4294901760, %v10089_v44 }
 0x217   :  { %5216 = vmatpush1.bf16.msra.mxu0 %v10261_v32  ;;  %5408 = vmatpush1.bf16.msra.mxu1 %v10262_v63  ;;  %v10271_v32 = vand.u32 4294901760, %v10185_v42  ;;  %v10272_v63 = vand.u32 4294901760, %v10118_v61  ;;  %v10279_v42 = vand.u32 4294901760, %v10072_v19  ;;  %v10280_v61 = vand.u32 4294901760, %v10120_v50 }
 0x218   :  { %5218 = vmatprep.subr.bf16.mxu0 %v10263_v7  ;;  %5410 = vmatprep.subr.bf16.mxu1 %v10264_v54  ;;  %v10274_v54 = vld [vmem:[#allocation106_spill] sm:$0xff]  ;;  %v10285_v19 = vand.u32 4294901760, %v10080_v43  ;;  %v10286_v50 = vand.u32 4294901760, %v10123_v51  ;;  %v10291_v43 = vand.u32 4294901760, %v6774_v3  ;;  %v10292_v51 = vand.u32 4294901760, %v10087_v57 }
 0x219   :  { %v5417_v7 = vpack.c.bf16 %v10272_v63, %v10271_v32  ;;  %v5229_v62 = vpack.c.bf16 %v10280_v61, %v10279_v42  ;;  %v10282_v63 = vand.u32 4294901760, %v10075_v20  ;;  %v10297_v3 = vand.u32 4294901760, %v6812_v9  ;;  %v10306_v42 = vld [vmem:[#allocation74_spill] sm:$0xff] }
 0x21a   :  { %v10298_v57 = vand.u32 4294901760, %v6817_v6  ;;  %v10300_v44 = vand.u32 4294901760, %v6822_v35  ;;  %v10304_v6 = vand.u32 4294901760, %v6843_v40  ;;  %v10305_v9 = vand.u32 4294901760, %v6848_v34  ;;  %v10308_v35 = vld [vmem:[#allocation75_spill] sm:$0xff]  ;;  %v10315_v34 = vld [vmem:[#allocation78_spill] sm:$0xff] }
 0x21b   :  { %5220 = vmatpush1.bf16.msra.mxu0 %v10265_v2  ;;  %5412 = vmatpush1.bf16.msra.mxu1 %v10266_v24  ;;  %v10275_v24 = vand.u32 4294901760, %v10188_v46  ;;  %v5421_v46 = vpack.c.bf16 %v10282_v63, %v10281_v13  ;;  %v10307_v61 = vand.u32 4294901760, %v10306_v42  ;;  %v10312_v13 = vand.u32 4294901760, %v10311_v45  ;;  %v10313_v63 = vld [vmem:[#allocation77_spill] sm:$0xff]  ;;  %v10361_v45 = vld [vmem:[#allocation46_spill] sm:$0xff] }
 0x21c   :  { %5222 = vmatprep.subr.bf16.mxu0 %v10267_v49  ;;  %5414 = vmatprep.subr.bf16.mxu1 %v10268_v47  ;;  %v10276_v49 = vand.u32 4294901760, %v10187_v31  ;;  %v10277_v47 = vand.u32 4294901760, %v10190_v37  ;;  %v10284_v31 = vand.u32 4294901760, %v10122_v8  ;;  %v10290_v8 = vand.u32 4294901760, %v10084_v53  ;;  %v10345_v42 = vld [vmem:[#allocation25_spill] sm:$0xff] }
 0x21d   :  { %v10295_v53 = vand.u32 4294901760, %v6802_v5  ;;  %v10302_v5 = vand.u32 4294901760, %v6832_v39  ;;  %v10310_v39 = vld [vmem:[#allocation64_spill] sm:$0xff]  ;;  %v10314_v40 = vand.u32 4294901760, %v10313_v63 }
 0x21e   :  { %v5227_v2 = vpack.c.bf16 %v10276_v49, %v10275_v24  ;;  %v5419_v55 = vpack.c.bf16 %v10278_v59, %v10277_v47  ;;  %v5231_v37 = vpack.c.bf16 %v10284_v31, %v10283_v0  ;;  %v5423_v49 = vpack.c.bf16 %v10286_v50, %v10285_v19  ;;  %v10317_v31 = vld [vmem:[#allocation79_spill] sm:$0xff]  ;;  %v10319_v50 = vld [vmem:[#allocation80_spill] sm:$0xff] }
 0x21f   :  { %5224 = vmatpush1.bf16.msra.mxu0 %v10273_v52  ;;  %5416 = vmatpush1.bf16.msra.mxu1 %v10274_v54  ;;  %v5425_v24 = vpack.c.bf16 %v10290_v8, %v10289_v60  ;;  %v5429_v47 = vpack.c.bf16 %v10298_v57, %v10297_v3  ;;  %v5431_v59 = vpack.c.bf16 %v10303_v22, %v10302_v5  ;;  %v10316_v0 = vand.u32 4294901760, %v10315_v34  ;;  %v10323_v60 = vld [vmem:[#allocation82_spill] sm:$0xff]  ;;  %v10363_v63 = vld [vmem:[#allocation48_spill] sm:$0xff]  ;;  %v10366_v34 = vld [vmem:[#allocation51_spill] sm:$0xff] }
 0x220   :  { %5226 = vmatprep.subr.bf16.mxu0 %v5225_v36  ;;  %5418 = vmatprep.subr.bf16.mxu1 %v5417_v7  ;;  %v5235_v7 = vpack.c.bf16 %v10292_v51, %v10291_v43  ;;  %v10301_v36 = vand.u32 4294901760, %v6827_v38  ;;  %v10324_v8 = vand.u32 4294901760, %v10323_v60  ;;  %v10338_v22 = vand.u32 4294901760, %v10228_v26  ;;  %v10346_v26 = vld [vmem:[#allocation54_spill] sm:$0xff]  ;;  %v10376_v60 = vld [vmem:[#allocation100_spill] sm:$0xff] }
 0x222   :  { %926 = vmatmul.mubr.f32.vlgmr.msra.gmra.mrb[0].mxu0 %v7365_v15  ;;  %1928 = vmatmul.mubr.f32.vlgmr.msra.gmra.mrb[0].mxu1 %v7365_v15  ;;  %v10287_v15 = vand.u32 4294901760, %v10124_v48  ;;  %v10293_v48 = vand.u32 4294901760, %v10088_v23  ;;  %v10299_v23 = vld [vmem:[#allocation63_spill] sm:$0xff]  ;;  %v5239_v32 = vpack.c.bf16 %v10301_v36, %v10300_v44  ;;  %v10336_v36 = vand.u32 4294901760, %v10225_v28 }
 0x223   :  { %5228 = vmatpush1.bf16.msra.mxu0 %v5227_v2  ;;  %5420 = vmatpush1.bf16.msra.mxu1 %v5419_v55  ;;  %v5241_v55 = vpack.c.bf16 %v10305_v9, %v10304_v6  ;;  %v10340_v6 = vand.u32 4294901760, %v10231_v1  ;;  %v10341_v9 = vld [vmem:[#allocation96_spill] sm:$0xff]  ;;  %v10344_v28 = vand.u32 4294901760, %v10233_v58  ;;  %v10348_v1 = vld [vmem:[#allocation107_spill] sm:$0xff] }
 0x224   :  { %931 = vmatprep.mubr.f32.mxu0 %v10156_v25  ;;  %1933 = vmatprep.mubr.f32.mxu1 %v10156_v25  ;;  %v5233_v20 = vpack.c.bf16 %v10288_v33, %v10287_v15  ;;  %v5427_v2 = vpack.c.bf16 %v10294_v18, %v10293_v48  ;;  %v10321_v15 = vld [vmem:[#allocation81_spill] sm:$0xff]  ;;  %v10350_v58 = vld [vmem:[#allocation108_spill] sm:$0xff] }
 0x225   :  { %5230 = vmatprep.subr.bf16.mxu0 %v5229_v62  ;;  %5422 = vmatprep.subr.bf16.mxu1 %v5421_v46  ;;  %v10309_v62 = vand.u32 4294901760, %v10308_v35  ;;  %v5243_v46 = vpack.c.bf16 %v10314_v40, %v10312_v13  ;;  %v10322_v33 = vand.u32 4294901760, %v10321_v15  ;;  %v10329_v18 = vld [vmem:[#allocation85_spill] sm:$0xff]  ;;  %v10357_v35 = vld [vmem:[#allocation43_spill] sm:$0xff] }
 0x226   :  { %935 = vmatmul.mubr.f32.gmra.mrb[2].mxu0 %v7398_v29  ;;  %1937 = vmatmul.mubr.f32.gmra.mrb[2].mxu1 %v7398_v29  ;;  %v5237_v29 = vpack.c.bf16 %v10296_v14, %v10295_v53  ;;  %v10331_v14 = vand.u32 4294901760, %v10219_v12  ;;  %v10339_v12 = vand.u32 4294901760, %v10227_v27  ;;  %v10347_v27 = vld [vmem:[#allocation57_spill] sm:$0xff]  ;;  %v10362_v13 = vld [vmem:[#allocation47_spill] sm:$0xff] }
 0x227   :  { %5232 = vmatpush1.bf16.msra.mxu0 %v5231_v37  ;;  %5424 = vmatpush1.bf16.msra.mxu1 %v5423_v49  ;;  %v5433_v38 = vpack.c.bf16 %v10309_v62, %v10307_v61  ;;  %v10318_v37 = vand.u32 4294901760, %v10317_v31  ;;  %v10320_v49 = vand.u32 4294901760, %v10319_v50  ;;  %v10355_v61 = vld [vmem:[#allocation53_spill] sm:$0xff]  ;;  %v10358_v62 = vld [vmem:[#allocation44_spill] sm:$0xff]  ;;  %v10371_v50 = vld [vmem:[#allocation71_spill] sm:$0xff] }
 0x228   :  { %940 = vmatprep.mubr.f32.mxu0 %v10156_v25  ;;  %1942 = vmatprep.mubr.f32.mxu1 %v10156_v25  ;;  %v10364_v40 = vld [vmem:[#allocation49_spill] sm:$0xff] }
 0x229   :  { %5234 = vmatprep.subr.bf16.mxu0 %v5233_v20  ;;  %5426 = vmatprep.subr.bf16.mxu1 %v5425_v24  ;;  %v5435_v19 = vpack.c.bf16 %v10318_v37, %v10316_v0  ;;  %v5245_v20 = vpack.c.bf16 %v10322_v33, %v10320_v49  ;;  %v10325_v24 = vld [vmem:[#allocation83_spill] sm:$0xff]  ;;  %v10367_v0 = vld [vmem:[#allocation60_spill] sm:$0xff]  ;;  %v10368_v31 = vld [vmem:[#allocation61_spill] sm:$0xff] }
 0x22a   :  { %944 = vmatmul.mubr.f32.gmra.mrb[4].mxu0 %v10299_v23  ;;  %1946 = vmatmul.mubr.f32.gmra.mrb[4].mxu1 %v10299_v23  ;;  %v10326_v43 = vand.u32 4294901760, %v10325_v24  ;;  %v10335_v23 = vand.u32 4294901760, %v10221_v56  ;;  %v10343_v56 = vand.u32 4294901760, %v10234_v10  ;;  %v10349_v10 = vld [vmem:[#allocation37_spill] sm:$0xff]  ;;  %v10369_v37 = vld [vmem:[#allocation62_spill] sm:$0xff]  ;;  %v10372_v49 = vld [vmem:[#allocation72_spill] sm:$0xff] }
 0x22b   :  { %5236 = vmatpush1.bf16.msra.mxu0 %v5235_v7  ;;  %5428 = vmatpush1.bf16.msra.mxu1 %v5427_v2  ;;  %v10327_v7 = vld [vmem:[#allocation84_spill] sm:$0xff]  ;;  %v10330_v2 = vand.u32 4294901760, %v10329_v18  ;;  %v10373_v15 = vld [vmem:[#allocation73_spill] sm:$0xff]  ;;  %v10374_v33 = vld [vmem:[#allocation95_spill] sm:$0xff] }
 0x22c   :  { %949 = vmatprep.mubr.f32.mxu0 %v10156_v25  ;;  %1951 = vmatprep.mubr.f32.mxu1 %v10156_v25  ;;  %v5437_v51 = vpack.c.bf16 %v10326_v43, %v10324_v8  ;;  %v10328_v48 = vand.u32 4294901760, %v10327_v7  ;;  %v7818_v43 = vld [vmem:[#allocation11] sm:$0xff] }
 0x22d   :  { %5238 = vmatprep.subr.bf16.mxu0 %v5237_v29  ;;  %5430 = vmatprep.subr.bf16.mxu1 %v5429_v47  ;;  %v10332_v29 = vld [vmem:[#allocation87_spill] sm:$0xff]  ;;  %v10334_v47 = vand.u32 4294901760, %v10222_v17  ;;  %v2459_v7 = vand.u32 4294901760, %v7818_v43 }
 0x22e   :  { %953 = vmatmul.mubr.f32.gmra.mrb[6].mxu0 %v10310_v39  ;;  %1955 = vmatmul.mubr.f32.gmra.mrb[6].mxu1 %v10310_v39  ;;  %v5247_v53 = vpack.c.bf16 %v10330_v2, %v10328_v48  ;;  %v10333_v3 = vand.u32 4294901760, %v10332_v29  ;;  %v10360_v39 = vld [vmem:[#allocation59_spill] sm:$0xff] }
 0x22f   :  { %5240 = vmatpush1.bf16.msra.mxu0 %v5239_v32  ;;  %5432 = vmatpush1.bf16.msra.mxu1 %v5431_v59  ;;  %v5249_v44 = vpack.c.bf16 %v10335_v23, %v10334_v47  ;;  %v10337_v32 = vand.u32 4294901760, %v10224_v21  ;;  %v5251_v59 = vpack.c.bf16 %v10339_v12, %v10338_v22  ;;  %v5253_v21 = vpack.c.bf16 %v10344_v28, %v10343_v56  ;;  %v7846_v29 = vld [vmem:[#allocation11 + $0x98] sm:$0xff] }
 0x230   :  { %5242 = vmatprep.subr.bf16.mxu0 %v5241_v55  ;;  %5434 = vmatprep.subr.bf16.mxu1 %v5433_v38  ;;  %v5439_v57 = vpack.c.bf16 %v10333_v3, %v10331_v14  ;;  %v10342_v55 = vand.u32 4294901760, %v10341_v9  ;;  %v10359_v38 = vld [vmem:[#allocation45_spill] sm:$0xff]  ;;  %v7837_v2 = vsub.f32 %v7818_v43, %v2459_v7  ;;  %v2516_v23 = vand.u32 4294901760, %v7846_v29  ;;  %v7875_v9 = vld [vmem:[#allocation11 + $0x18] sm:$0xff] }
 0x231   :  { %1119 = vmatprep.mubr.f32.mxu0 %v10156_v25  ;;  %2121 = vmatprep.mubr.f32.mxu1 %v10156_v25  ;;  %v5441_v5 = vpack.c.bf16 %v10337_v32, %v10336_v36  ;;  %v7844_v14 = vld [vmem:[#allocation11 + $0x90] sm:$0xff] }
 0x232   :  { %v5443_v17 = vpack.c.bf16 %v10342_v55, %v10340_v6  ;;  %v2513_v47 = vand.u32 4294901760, %v7844_v14  ;;  %v9759_v36 = vand.u32 4294901760, %v7837_v2  ;;  %v7970_v43 = vld [vmem:[#allocation11 + $0xb0] sm:$0xff] }
 0x233   :  { %5244 = vmatpush1.bf16.msra.mxu0 %v5243_v46  ;;  %5436 = vmatpush1.bf16.msra.mxu1 %v5435_v19  ;;  %v10365_v46 = vld [vmem:[#allocation50_spill] sm:$0xff] }
 0x234   :  { %5246 = vmatprep.subr.bf16.mxu0 %v5245_v20  ;;  %5438 = vmatprep.subr.bf16.mxu1 %v5437_v51  ;;  %v10370_v19 = vld [vmem:[#allocation70_spill] sm:$0xff]  ;;  %v10375_v20 = vld [vmem:[#allocation97_spill] sm:$0xff]  ;;  %v7865_v12 = vsub.f32 %v7844_v14, %v2513_v47  ;;  %v2619_v6 = vsub.f32 %v7837_v2, %v9759_v36 }
 0x235   :  { %v7820_v51 = vld [vmem:[#allocation11 + $0x8] sm:$0xff] }
 0x237   :  { %5248 = vmatpush1.bf16.msra.mxu0 %v5247_v53  ;;  %5440 = vmatpush1.bf16.msra.mxu1 %v5439_v57 }
 0x238   :  { %5250 = vmatprep.subr.bf16.mxu0 %v5249_v44  ;;  %5442 = vmatprep.subr.bf16.mxu1 %v5441_v5  ;;  %v7852_v44 = vld [vmem:[#allocation11 + $0x10] sm:$0xff] }
 0x239   :  { %v2465_v55 = vand.u32 4294901760, %v7852_v44 }
 0x23b   :  { %5252 = vmatpush1.bf16.msra.mxu0 %v5251_v59  ;;  %5444 = vmatpush1.bf16.msra.mxu1 %v5443_v17  ;;  %v7870_v59 = vsub.f32 %v7846_v29, %v2516_v23 }
 0x23c   :  { %5254 = vmatprep.subr.bf16.mxu0 %v5253_v21  ;;  %5446 = vmatprep.subr.bf16.mxu1 %v10345_v42  ;;  %v9757_v21 = vand.u32 4294901760, %v7865_v12  ;;  %v7882_v42 = vld [vmem:[#allocation11 + $0xa0] sm:$0xff] }
 0x23f   :  { %5256 = vmatpush1.bf16.msra.mxu0 %v10346_v26  ;;  %5448 = vmatpush1.bf16.msra.mxu1 %v10347_v27  ;;  %v7884_v26 = vld [vmem:[#allocation11 + $0xa8] sm:$0xff]  ;;  %v2620_v27 = vand.u32 4294901760, %v2619_v6 }
 0x240   :  { %5258 = vmatprep.subr.bf16.mxu0 %v10239_v11  ;;  %5450 = vmatprep.subr.bf16.mxu1 %v10240_v4  ;;  %v10351_v4 = vld [vmem:[#allocation38_spill] sm:$0xff]  ;;  %v10352_v11 = vld [vmem:[#allocation39_spill] sm:$0xff] }
 0x242   :  { %1121 = vmatmul.mubr.f32.vlgmr.msra.gmra.mrb[0].mxu0 %v10348_v1  ;;  %2123 = vmatmul.mubr.f32.vlgmr.msra.gmra.mrb[0].mxu1 %v10348_v1 }
 0x243   :  { %5260 = vmatpush1.bf16.msra.mxu0 %v10241_v16  ;;  %5452 = vmatpush1.bf16.msra.mxu1 %v10242_v30  ;;  %v10353_v16 = vld [vmem:[#allocation40_spill] sm:$0xff]  ;;  %v10354_v30 = vld [vmem:[#allocation41_spill] sm:$0xff] }
 0x244   :  { %1126 = vmatprep.mubr.f32.mxu0 %v10156_v25  ;;  %2128 = vmatprep.mubr.f32.mxu1 %v10156_v25 }
 0x245   :  { %5262 = vmatprep.subr.bf16.mxu0 %v10243_v41  ;;  %5454 = vmatprep.subr.bf16.mxu1 %v10349_v10  ;;  %v10356_v41 = vld [vmem:[#allocation42_spill] sm:$0xff]  ;;  %v7887_v10 = vld [vmem:[#allocation11 + $0x20] sm:$0xff] }
 0x246   :  { %1128 = vmatmul.mubr.f32.gmra.mrb[2].mxu0 %v10350_v58  ;;  %2130 = vmatmul.mubr.f32.gmra.mrb[2].mxu1 %v10350_v58 }
 0x247   :  { %5264 = vmatpush1.bf16.msra.mxu0 %v10351_v4  ;;  %5456 = vmatpush1.bf16.msra.mxu1 %v10352_v11  ;;  %v2745_v11 = vsub.f32 %v7865_v12, %v9757_v21 }
 0x248   :  { %1133 = vmatprep.mubr.f32.mxu0 %v10156_v25  ;;  %2135 = vmatprep.mubr.f32.mxu1 %v10156_v25 }
 0x249   :  { %5266 = vmatprep.subr.bf16.mxu0 %v10353_v16  ;;  %5458 = vmatprep.subr.bf16.mxu1 %v10354_v30  ;;  %v2468_v16 = vand.u32 4294901760, %v7875_v9 }
 0x24a   :  { %1135 = vmatmul.mubr.f32.gmra.mrb[4].mxu0 %v10355_v61  ;;  %2137 = vmatmul.mubr.f32.gmra.mrb[4].mxu1 %v10355_v61 }
 0x24b   :  { %5268 = vmatpush1.bf16.msra.mxu0 %v10356_v41  ;;  %5460 = vmatpush1.bf16.msra.mxu1 %v10357_v35  ;;  %v2519_v41 = vand.u32 4294901760, %v7882_v42  ;;  %v2522_v35 = vand.u32 4294901760, %v7884_v26  ;;  %v8078_v14 = vpack.c.bf16 %v2468_v16, %v2465_v55 }
 0x24c   :  { %1140 = vmatprep.mubr.f32.mxu0 %v10156_v25  ;;  %2142 = vmatprep.mubr.f32.mxu1 %v10156_v25 }
 0x24d   :  { %5270 = vmatprep.subr.bf16.mxu0 %v10358_v62  ;;  %5462 = vmatprep.subr.bf16.mxu1 %v10359_v38  ;;  %v7903_v62 = vld [vmem:[#allocation11 + $0x28] sm:$0xff] }
 0x24e   :  { %1142 = vmatmul.mubr.f32.gmra.mrb[6].mxu0 %v10360_v39  ;;  %2144 = vmatmul.mubr.f32.gmra.mrb[6].mxu1 %v10360_v39 }
 0x24f   :  { %5272 = vmatpush1.bf16.msra.mxu0 %v10361_v45  ;;  %5464 = vmatpush1.bf16.msra.mxu1 %v10362_v13  ;;  %v7908_v45 = vsub.f32 %v7875_v9, %v2468_v16  ;;  %v2471_v13 = vand.u32 4294901760, %v7887_v10 }
 0x250   :  { %5274 = vmatprep.subr.bf16.mxu0 %v10363_v63  ;;  %5466 = vmatprep.subr.bf16.mxu1 %v10364_v40 }
 0x251   :  { %1244 = vmatprep.mubr.f32.mxu0 %v10156_v25  ;;  %2246 = vmatprep.mubr.f32.mxu1 %v10156_v25  ;;  %10377 = vst [vmem:[#allocation65_spill] sm:$0xff] %v7908_v45 }
 0x253   :  { %5276 = vmatpush1.bf16.msra.mxu0 %v10365_v46  ;;  %5468 = vmatpush1.bf16.msra.mxu1 %v10366_v34  ;;  %v7915_v46 = vsub.f32 %v7882_v42, %v2519_v41  ;;  %v7920_v34 = vsub.f32 %v7884_v26, %v2522_v35 }
 0x254   :  { %5278 = vmatprep.subr.bf16.mxu0 %v10367_v0  ;;  %5470 = vmatprep.subr.bf16.mxu1 %v10368_v31  ;;  %v9752_v0 = vand.u32 4294901760, %v7908_v45  ;;  %v2474_v31 = vand.u32 4294901760, %v7903_v62 }
 0x256   :  { %v8120_v42 = vpack.c.bf16 %v2474_v31, %v2471_v13 }
 0x257   :  { %5280 = vmatpush1.bf16.msra.mxu0 %v10369_v37  ;;  %5472 = vmatpush1.bf16.msra.mxu1 %v10370_v19  ;;  %v7927_v37 = vsub.f32 %v7887_v10, %v2471_v13 }
 0x258   :  { %5282 = vmatprep.subr.bf16.mxu0 %v10371_v50  ;;  %5474 = vmatprep.subr.bf16.mxu1 %v10372_v49  ;;  %v9751_v49 = vand.u32 4294901760, %v7915_v46  ;;  %10386 = vst [vmem:[#allocation31_spill] sm:$0xff] %v8120_v42 }
 0x25b   :  { %5284 = vmatpush1.bf16.msra.mxu0 %v10373_v15  ;;  %5476 = vmatpush1.bf16.msra.mxu1 %v10374_v33  ;;  %v9750_v15 = vand.u32 4294901760, %v7920_v34  ;;  %v2640_v33 = vsub.f32 %v7908_v45, %v9752_v0 }
 0x25c   :  { %5286 = vmatprep.subr.bf16.mxu0 %v10375_v20  ;;  %5478 = vmatprep.subr.bf16.mxu1 %v10376_v60  ;;  %v9749_v20 = vand.u32 4294901760, %v7927_v37  ;;  %v7941_v60 = vsub.f32 %v7903_v62, %v2474_v31 }
 0x25d   :  { %v2766_v6 = vsub.f32 %v7920_v34, %v9750_v15 }
 0x25e   :  { %10378 = vst [vmem:[#allocation101_spill] sm:$0xff] %v7941_v60 }
 0x25f   :  { %5288 = vmatpush1.bf16.msra.mxu0 %v10273_v52  ;;  %5480 = vmatpush1.bf16.msra.mxu1 %v10274_v54  ;;  %v7812_v52 = vld [vmem:[#allocation11 + $0x80] sm:$0xff]  ;;  %v7814_v54 = vld [vmem:[#allocation11 + $0x88] sm:$0xff] }
 0x260   :  { %v2507_v8 = vand.u32 4294901760, %v7812_v52  ;;  %v2510_v24 = vand.u32 4294901760, %v7814_v54 }
 0x262   :  { %1246 = vmatmul.mubr.f32.vlgmr.msra.gmra.mrb[0].mxu0 %v10348_v1  ;;  %2248 = vmatmul.mubr.f32.vlgmr.msra.gmra.mrb[0].mxu1 %v10348_v1  ;;  %v7827_v48 = vsub.f32 %v7812_v52, %v2507_v8  ;;  %v7832_v18 = vsub.f32 %v7814_v54, %v2510_v24  ;;  %v9754_v1 = vand.u32 4294901760, %v7870_v59 }
 0x263   :  { %1251 = vmatprep.mubr.f32.mxu0 %v10156_v25  ;;  %2253 = vmatprep.mubr.f32.mxu1 %v10156_v25 }
 0x264   :  { %v9762_v3 = vand.u32 4294901760, %v7827_v48  ;;  %v9760_v57 = vand.u32 4294901760, %v7832_v18  ;;  %v2752_v30 = vsub.f32 %v7870_v59, %v9754_v1 }
 0x266   :  { %1253 = vmatmul.mubr.f32.gmra.mrb[2].mxu0 %v10350_v58  ;;  %2255 = vmatmul.mubr.f32.gmra.mrb[2].mxu1 %v10350_v58  ;;  %v2731_v5 = vsub.f32 %v7827_v48, %v9762_v3  ;;  %v2738_v22 = vsub.f32 %v7832_v18, %v9760_v57  ;;  %v2753_v63 = vand.u32 4294901760, %v2752_v30 }
 0x267   :  { %1258 = vmatprep.mubr.f32.mxu0 %v10156_v25  ;;  %2260 = vmatprep.mubr.f32.mxu1 %v10156_v25 }
 0x268   :  { %v2732_v17 = vand.u32 4294901760, %v2731_v5  ;;  %v2739_v56 = vand.u32 4294901760, %v2738_v22  ;;  %v2759_v22 = vsub.f32 %v7915_v46, %v9751_v49 }
 0x26a   :  { %1260 = vmatmul.mubr.f32.gmra.mrb[4].mxu0 %v10355_v61  ;;  %2262 = vmatmul.mubr.f32.gmra.mrb[4].mxu1 %v10355_v61  ;;  %v5513_v58 = vpack.c.bf16 %v2739_v56, %v2732_v17  ;;  %v7899_v61 = vsub.f32 %v7852_v44, %v2465_v55  ;;  %v2641_v17 = vand.u32 4294901760, %v2640_v33  ;;  %v7953_v56 = vpack.c.bf16 %v2510_v24, %v2507_v8 }
 0x26b   :  { %1265 = vmatprep.mubr.f32.mxu0 %v10156_v25  ;;  %2267 = vmatprep.mubr.f32.mxu1 %v10156_v25  ;;  %v2462_v25 = vand.u32 4294901760, %v7820_v51 }
 0x26c   :  { %5514 = vmatprep.subr.bf16.mxu1 %v5513_v58  ;;  %v9753_v40 = vand.u32 4294901760, %v7899_v61  ;;  %v2760_v58 = vand.u32 4294901760, %v2759_v22  ;;  %5482 = vmatprep.subr.bf16.mxu0 %v7953_v56 }
 0x26d   :  { %v7842_v53 = vsub.f32 %v7820_v51, %v2462_v25  ;;  %v7972_v51 = vld [vmem:[#allocation11 + $0xb8] sm:$0xff] }
 0x26e   :  { %1267 = vmatmul.mubr.f32.gmra.mrb[6].mxu0 %v10360_v39  ;;  %2269 = vmatmul.mubr.f32.gmra.mrb[6].mxu1 %v10360_v39  ;;  %v2746_v39 = vand.u32 4294901760, %v2745_v11  ;;  %v2633_v50 = vsub.f32 %v7899_v61, %v9753_v40  ;;  %v7963_v11 = vpack.c.bf16 %v2462_v25, %v2459_v7  ;;  %v2525_v7 = vand.u32 4294901760, %v7970_v43 }
 0x26f   :  { %v9758_v32 = vand.u32 4294901760, %v7842_v53  ;;  %v2528_v25 = vand.u32 4294901760, %v7972_v51 }
 0x270   :  { %v5517_v19 = vpack.c.bf16 %v2753_v63, %v2746_v39  ;;  %v2634_v5 = vand.u32 4294901760, %v2633_v50  ;;  %5484 = vmatpush3.bf16.msra.mxu0 %v7963_v11  ;;  %v7976_v39 = vld [vmem:[#allocation11 + $0x30] sm:$0xff]  ;;  %v7978_v63 = vld [vmem:[#allocation11 + $0x38] sm:$0xff]  ;;  %v7985_v33 = vsub.f32 %v7970_v43, %v2525_v7 }
 0x271   :  { %v2626_v28 = vsub.f32 %v7842_v53, %v9758_v32  ;;  %v9766_v50 = vand.u32 4294901760, %v7978_v63  ;;  %v10389_v43 = vand.u32 4294901760, %v7978_v63 }
 0x272   :  { %v5519_v30 = vpack.c.bf16 %v2641_v17, %v2634_v5  ;;  %10379 = vst [vmem:[#allocation102_spill] sm:$0xff] %v7985_v33  ;;  %v7990_v5 = vsub.f32 %v7972_v51, %v2528_v25  ;;  %v8002_v17 = vld [vmem:[#allocation11 + $0xc0] sm:$0xff] }
 0x273   :  { %v2627_v4 = vand.u32 4294901760, %v2626_v28  ;;  %v2647_v28 = vsub.f32 %v7927_v37, %v9749_v20 }
 0x274   :  { %10380 = vst [vmem:[#allocation104_spill] sm:$0xff] %v7990_v5 }
 0x275   :  { %v5515_v38 = vpack.c.bf16 %v2627_v4, %v2620_v27  ;;  %v9748_v27 = vand.u32 4294901760, %v7941_v60  ;;  %v2767_v4 = vand.u32 4294901760, %v2766_v6  ;;  %v2648_v52 = vand.u32 4294901760, %v2647_v28  ;;  %v8004_v28 = vld [vmem:[#allocation11 + $0xc8] sm:$0xff] }
 0x276   :  { %v8000_v6 = vsub.f32 %v7978_v63, %v9766_v50  ;;  %v8054_v50 = vld [vmem:[#allocation11 + $0xd0] sm:$0xff] }
 0x277   :  { %5516 = vmatpush3.bf16.msra.mxu1 %v5515_v38  ;;  %v2654_v54 = vsub.f32 %v7941_v60, %v9748_v27  ;;  %v5521_v8 = vpack.c.bf16 %v2767_v4, %v2760_v58  ;;  %v9755_v58 = vand.u32 4294901760, %v7985_v33  ;;  %v9756_v4 = vand.u32 4294901760, %v7990_v5 }
 0x278   :  { %5518 = vmatprep.subr.bf16.mxu1 %v5517_v19  ;;  %v9769_v19 = vand.u32 4294901760, %v7976_v39  ;;  %10382 = vst [vmem:[#allocation32_spill] sm:$0xff] %v8000_v6  ;;  %v9784_v44 = vand.u32 4294901760, %v8054_v50 }
 0x279   :  { %v2655_v24 = vand.u32 4294901760, %v2654_v54  ;;  %v8010_v54 = vld [vmem:[#allocation11 + $0x40] sm:$0xff]  ;;  %v2773_v15 = vsub.f32 %v7985_v33, %v9755_v58  ;;  %v2780_v49 = vsub.f32 %v7990_v5, %v9756_v4 }
 0x27a   :  { %v7995_v22 = vsub.f32 %v7976_v39, %v9769_v19  ;;  %v9767_v27 = vand.u32 4294901760, %v8010_v54  ;;  %v8072_v19 = vld [vmem:[#allocation11 + $0x58] sm:$0xff] }
 0x27b   :  { %5520 = vmatpush3.bf16.msra.mxu1 %v5519_v30  ;;  %v5523_v38 = vpack.c.bf16 %v2655_v24, %v2648_v52  ;;  %v9765_v30 = vand.u32 4294901760, %v8002_v17  ;;  %v9763_v52 = vand.u32 4294901760, %v8004_v28  ;;  %v2774_v32 = vand.u32 4294901760, %v2773_v15 }
 0x27c   :  { %5522 = vmatprep.subr.bf16.mxu1 %v5521_v8  ;;  %10381 = vst [vmem:[#allocation105_spill] sm:$0xff] %v7995_v22  ;;  %v8012_v8 = vld [vmem:[#allocation11 + $0x48] sm:$0xff]  ;;  %v9761_v24 = vand.u32 4294901760, %v7995_v22  ;;  %v8043_v4 = vsub.f32 %v8010_v54, %v9767_v27  ;;  %v2781_v36 = vand.u32 4294901760, %v2780_v49  ;;  %v8056_v27 = vld [vmem:[#allocation11 + $0xd8] sm:$0xff]  ;;  %v8062_v15 = vpack.c.bf16 %v2516_v23, %v2513_v47 }
 0x27d   :  { %v9768_v20 = vand.u32 4294901760, %v8012_v8  ;;  %v8027_v0 = vsub.f32 %v8002_v17, %v9765_v30  ;;  %v8032_v40 = vsub.f32 %v8004_v28, %v9763_v52  ;;  %v9782_v9 = vand.u32 4294901760, %v8056_v27 }
 0x27e   :  { %v2661_v1 = vsub.f32 %v7995_v22, %v9761_v24  ;;  %v5525_v49 = vpack.c.bf16 %v2781_v36, %v2774_v32  ;;  %5486 = vmatprep.subr.bf16.mxu0 %v8062_v15 }
 0x27f   :  { %5524 = vmatpush3.bf16.msra.mxu1 %v5523_v38  ;;  %v9764_v38 = vand.u32 4294901760, %v8000_v6  ;;  %10383 = vst [vmem:[#allocation34_spill] sm:$0xff] %v8027_v0  ;;  %10384 = vst [vmem:[#allocation33_spill] sm:$0xff] %v8032_v40  ;;  %v8048_v21 = vsub.f32 %v8012_v8, %v9768_v20  ;;  %v9773_v57 = vand.u32 4294901760, %v8027_v0  ;;  %v9772_v24 = vand.u32 4294901760, %v8032_v40  ;;  %v8070_v20 = vld [vmem:[#allocation11 + $0x50] sm:$0xff]  ;;  %5488 = vmatpush3.bf16.msra.mxu0 %v8078_v14 }
 0x280   :  { %v2662_v3 = vand.u32 4294901760, %v2661_v1  ;;  %5526 = vmatprep.subr.bf16.mxu1 %v5525_v49  ;;  %v9781_v16 = vand.u32 4294901760, %v8070_v20  ;;  %v8100_v49 = vpack.c.bf16 %v2522_v35, %v2519_v41 }
 0x281   :  { %v2668_v58 = vsub.f32 %v8000_v6, %v9764_v38  ;;  %v9770_v38 = vand.u32 4294901760, %v8043_v4  ;;  %v9771_v30 = vand.u32 4294901760, %v8048_v21  ;;  %v2787_v1 = vsub.f32 %v8027_v0, %v9773_v57 }
 0x282   :  { %10385 = vst [vmem:[#allocation35_spill] sm:$0xff] %v8100_v49  ;;  %v8125_v41 = vsub.f32 %v8070_v20, %v9781_v16  ;;  %5490 = vmatprep.subr.bf16.mxu0 %v8100_v49  ;;  %v10392_v16 = vand.u32 4294901760, %v8002_v17  ;;  %v10397_v17 = vand.u32 4294901760, %v8012_v8 }
 0x283   :  { %v2669_v52 = vand.u32 4294901760, %v2668_v58  ;;  %v2794_v58 = vsub.f32 %v8032_v40, %v9772_v24  ;;  %v2675_v47 = vsub.f32 %v8043_v4, %v9770_v38  ;;  %v2682_v23 = vsub.f32 %v8048_v21, %v9771_v30  ;;  %v8092_v38 = vld [vmem:[#allocation11 + $0xe0] sm:$0xff]  ;;  %v8094_v30 = vld [vmem:[#allocation11 + $0xe8] sm:$0xff]  ;;  %5492 = vmatpush3.bf16.msra.mxu0 %v8120_v42 }
 0x284   :  { %v2788_v36 = vand.u32 4294901760, %v2787_v1  ;;  %v9780_v13 = vand.u32 4294901760, %v8092_v38  ;;  %v9779_v31 = vand.u32 4294901760, %v8094_v30  ;;  %v10405_v42 = vand.u32 4294901760, %v8072_v19 }
 0x285   :  { %v5527_v29 = vpack.c.bf16 %v2669_v52, %v2662_v3  ;;  %v2795_v32 = vand.u32 4294901760, %v2794_v58  ;;  %v2676_v3 = vand.u32 4294901760, %v2675_v47  ;;  %v2683_v55 = vand.u32 4294901760, %v2682_v23  ;;  %v8112_v47 = vld [vmem:[#allocation11 + $0x60] sm:$0xff]  ;;  %v8114_v23 = vld [vmem:[#allocation11 + $0x68] sm:$0xff] }
 0x286   :  { %v9774_v52 = vand.u32 4294901760, %v8072_v19  ;;  %v8105_v58 = vsub.f32 %v8054_v50, %v9784_v44  ;;  %v8157_v57 = vsub.f32 %v8092_v38, %v9780_v13  ;;  %v2401_v44 = vld [vmem:[#allocation11 + $0x70] sm:$0xff] }
 0x287   :  { %5528 = vmatpush3.bf16.msra.mxu1 %v5527_v29  ;;  %v5529_v1 = vpack.c.bf16 %v2795_v32, %v2788_v36  ;;  %v8110_v29 = vsub.f32 %v8056_v27, %v9782_v9  ;;  %v5531_v26 = vpack.c.bf16 %v2683_v55, %v2676_v3  ;;  %v9778_v36 = vand.u32 4294901760, %v8125_v41 }
 0x288   :  { %v8130_v35 = vsub.f32 %v8072_v19, %v9774_v52  ;;  %v9776_v10 = vand.u32 4294901760, %v8105_v58  ;;  %v9783_v3 = vand.u32 4294901760, %v8112_v47  ;;  %v9787_v55 = vand.u32 4294901760, %v8114_v23 }
 0x289   :  { %5530 = vmatprep.subr.bf16.mxu1 %v5529_v1  ;;  %v9775_v62 = vand.u32 4294901760, %v8110_v29  ;;  %v8146_v1 = vpack.c.bf16 %v2528_v25, %v2525_v7  ;;  %v10388_v52 = vand.u32 4294901760, %v7976_v39  ;;  %v2689_v7 = vsub.f32 %v8125_v41, %v9778_v36  ;;  %v2402_v36 = vld [vmem:[#allocation11 + $0x78] sm:$0xff] }
 0x28a   :  { %v9777_v32 = vand.u32 4294901760, %v8130_v35  ;;  %v2801_v24 = vsub.f32 %v8105_v58, %v9776_v10  ;;  %v9790_v63 = vand.u32 4294901760, %v8157_v57  ;;  %v10393_v9 = vand.u32 4294901760, %v8004_v28 }
 0x28b   :  { %5532 = vmatpush3.bf16.msra.mxu1 %v5531_v26  ;;  %10387 = vst [vmem:[#allocation52_spill] sm:$0xff] %v8146_v1  ;;  %v2808_v26 = vsub.f32 %v8110_v29, %v9775_v62  ;;  %v8163_v51 = vpack.c.bf16 %v10389_v43, %v10388_v52  ;;  %v8174_v62 = vsub.f32 %v8094_v30, %v9779_v31  ;;  %v2690_v43 = vand.u32 4294901760, %v2689_v7 }
 0x28c   :  { %v2696_v25 = vsub.f32 %v8130_v35, %v9777_v32  ;;  %5494 = vmatprep.subr.bf16.mxu0 %v8146_v1  ;;  %v2802_v39 = vand.u32 4294901760, %v2801_v24  ;;  %v8181_v52 = vsub.f32 %v8112_v47, %v9783_v3  ;;  %v8188_v31 = vsub.f32 %v8114_v23, %v9787_v55  ;;  %v2417_v24 = vld [vmem:[#allocation11 + $0xf0] sm:$0xff] }
 0x28d   :  { %10390 = vst [vmem:[#allocation55_spill] sm:$0xff] %v8163_v51  ;;  %v2809_v10 = vand.u32 4294901760, %v2808_v26  ;;  %5496 = vmatpush3.bf16.msra.mxu0 %v8163_v51  ;;  %v2418_v26 = vld [vmem:[#allocation11 + $0xf8] sm:$0xff]  ;;  %v8194_v3 = vpack.c.bf16 %v10393_v9, %v10392_v16  ;;  %v2815_v7 = vsub.f32 %v8157_v57, %v9790_v63  ;;  %v10395_v55 = vand.u32 4294901760, %v8174_v62 }
 0x28e   :  { %10391 = vst [vmem:[#allocation56_spill] sm:$0xff] %v8181_v52  ;;  %v2697_v32 = vand.u32 4294901760, %v2696_v25  ;;  %v9791_v25 = vand.u32 4294901760, %v8181_v52  ;;  %v9798_v9 = vand.u32 4294901760, %v8188_v31  ;;  %v2501_v8 = vand.u32 4294901760, %v2401_v44 }
 0x28f   :  { %v5533_v13 = vpack.c.bf16 %v2809_v10, %v2802_v39  ;;  %10394 = vst [vmem:[#allocation58_spill] sm:$0xff] %v8194_v3  ;;  %v2822_v1 = vsub.f32 %v8174_v62, %v10395_v55  ;;  %v10396_v10 = vand.u32 4294901760, %v8010_v54  ;;  %5498 = vmatprep.subr.bf16.mxu0 %v8194_v3  ;;  %v2816_v16 = vand.u32 4294901760, %v2815_v7 }
 0x290   :  { %v5535_v51 = vpack.c.bf16 %v2697_v32, %v2690_v43  ;;  %v2703_v32 = vsub.f32 %v8181_v52, %v9791_v25  ;;  %v2549_v39 = vand.u32 4294901760, %v2417_v24  ;;  %v2552_v43 = vand.u32 4294901760, %v2418_v26 }
 0x291   :  { %v8207_v28 = vpack.c.bf16 %v10397_v17, %v10396_v10  ;;  %5534 = vmatprep.subr.bf16.mxu1 %v5533_v13  ;;  %v2823_v55 = vand.u32 4294901760, %v2822_v1  ;;  %v2710_v54 = vsub.f32 %v8188_v31, %v9798_v9  ;;  %v2504_v10 = vand.u32 4294901760, %v2402_v36 }
 0x292   :  { %5536 = vmatpush3.bf16.msra.mxu1 %v5535_v51  ;;  %v2704_v13 = vand.u32 4294901760, %v2703_v32  ;;  %v10399_v17 = vand.u32 4294901760, %v8054_v50  ;;  %v10400_v7 = vand.u32 4294901760, %v8056_v27  ;;  %v8224_v25 = vsub.f32 %v2417_v24, %v2549_v39 }
 0x293   :  { %10398 = vst [vmem:[#allocation66_spill] sm:$0xff] %v8207_v28  ;;  %5500 = vmatpush3.bf16.msra.mxu0 %v8207_v28  ;;  %v8226_v3 = vsub.f32 %v2418_v26, %v2552_v43  ;;  %v5537_v1 = vpack.c.bf16 %v2823_v55, %v2816_v16  ;;  %v2711_v51 = vand.u32 4294901760, %v2710_v54  ;;  %v10404_v28 = vand.u32 4294901760, %v8070_v20 }
 0x294   :  { %v8222_v63 = vpack.c.bf16 %v10400_v7, %v10399_v17  ;;  %10402 = vst [vmem:[#allocation68_spill] sm:$0xff] %v8224_v25  ;;  %v8234_v49 = vsub.f32 %v2401_v44, %v2501_v8  ;;  %v2828_v27 = vand.u32 4294901760, %v8224_v25  ;;  %v8239_v24 = vsub.f32 %v2402_v36, %v2504_v10 }
 0x295   :  { %10403 = vst [vmem:[#allocation69_spill] sm:$0xff] %v8226_v3  ;;  %v8232_v9 = vpack.c.bf16 %v10405_v42, %v10404_v28  ;;  %v2835_v50 = vand.u32 4294901760, %v8226_v3  ;;  %5538 = vmatprep.subr.bf16.mxu1 %v5537_v1  ;;  %v5539_v26 = vpack.c.bf16 %v2711_v51, %v2704_v13  ;;  %v10409_v28 = vand.u32 4294901760, %v8092_v38 }
 0x296   :  { %10401 = vst [vmem:[#allocation67_spill] sm:$0xff] %v8222_v63  ;;  %10407 = vst [vmem:[#allocation110_spill] sm:$0xff] %v8234_v49  ;;  %5502 = vmatprep.subr.bf16.mxu0 %v8222_v63  ;;  %v2716_v20 = vand.u32 4294901760, %v8234_v49  ;;  %v2829_v19 = vsub.f32 %v8224_v25, %v2828_v27  ;;  %v2723_v44 = vand.u32 4294901760, %v8239_v24  ;;  %v10410_v16 = vand.u32 4294901760, %v8094_v30 }
 0x297   :  { %10406 = vst [vmem:[#allocation109_spill] sm:$0xff] %v8232_v9  ;;  %10408 = vst [vmem:[#allocation111_spill] sm:$0xff] %v8239_v24  ;;  %5504 = vmatpush3.bf16.msra.mxu0 %v8232_v9  ;;  %v2836_v42 = vsub.f32 %v8226_v3, %v2835_v50  ;;  %5540 = vmatpush3.bf16.msra.mxu1 %v5539_v26  ;;  %v10412_v55 = vand.u32 4294901760, %v8112_v47  ;;  %v10413_v54 = vand.u32 4294901760, %v8114_v23 }
 0x298   :  { %v8250_v32 = vpack.c.bf16 %v10410_v16, %v10409_v28  ;;  %v2717_v36 = vsub.f32 %v8234_v49, %v2716_v20  ;;  %v2830_v17 = vand.u32 4294901760, %v2829_v19  ;;  %v2724_v1 = vsub.f32 %v8239_v24, %v2723_v44 }
 0x299   :  { %v8257_v13 = vpack.c.bf16 %v10413_v54, %v10412_v55  ;;  %v2837_v7 = vand.u32 4294901760, %v2836_v42  ;;  %v8262_v26 = vpack.c.bf16 %v2552_v43, %v2549_v39  ;;  %v8264_v28 = vpack.c.bf16 %v2504_v10, %v2501_v8 }
 0x29a   :  { %10411 = vst [vmem:[#allocation112_spill] sm:$0xff] %v8250_v32  ;;  %5506 = vmatprep.subr.bf16.mxu0 %v8250_v32  ;;  %v2718_v38 = vand.u32 4294901760, %v2717_v36  ;;  %v2725_v51 = vand.u32 4294901760, %v2724_v1  ;;  %v5545_v23 = vpack.c.bf16 %v7832_v18, %v7827_v48  ;;  %v10420_v54 = vand.u32 4294901760, %v8130_v35 }
 0x29b   :  { %10414 = vst [vmem:[#allocation113_spill] sm:$0xff] %v8257_v13  ;;  %5508 = vmatpush3.bf16.msra.mxu0 %v8257_v13  ;;  %v5541_v30 = vpack.c.bf16 %v2837_v7, %v2830_v17  ;;  %10415 = vst [vmem:[#allocation114_spill] sm:$0xff] %v8262_v26  ;;  %v10419_v17 = vand.u32 4294901760, %v8125_v41  ;;  %v10422_v1 = vand.u32 4294901760, %v8157_v57  ;;  %v10423_v55 = vand.u32 4294901760, %v8174_v62 }
 0x29c   :  { %v5543_v47 = vpack.c.bf16 %v2725_v51, %v2718_v38  ;;  %5510 = vmatprep.subr.bf16.mxu0 %v8262_v26  ;;  %v10416_v51 = vand.u32 4294901760, %v8105_v58  ;;  %v10426_v36 = vand.u32 4294901760, %v8188_v31  ;;  %v251_v42 = vlaneseq }
 0x29d   :  { %5542 = vmatprep.subr.bf16.mxu1 %v5541_v30  ;;  %v8311_v7 = vpack.c.bf16 %v10420_v54, %v10419_v17  ;;  %v8317_v38 = vpack.c.bf16 %v10423_v55, %v10422_v1  ;;  %v10425_v30 = vand.u32 4294901760, %v8181_v52  ;;  %v8332_v17 = vld [vmem:[#allocation10] sm:$0xf] }
 0x29e   :  { %5544 = vmatpush3.bf16.msra.mxu1 %v5543_v47  ;;  %v10417_v47 = vand.u32 4294901760, %v8110_v29  ;;  %v8329_v10 = vshrl.u32 %v251_v42, 7 }
 0x29f   :  { %5512 = vmatpush3.bf16.msra.mxu0 %v8264_v28  ;;  %5578 = vmatprep.subr.bf16.mxu1 %v7953_v56  ;;  %10421 = vst [vmem:[#allocation116_spill] sm:$0xff] %v8311_v7  ;;  %10424 = vst [vmem:[#allocation117_spill] sm:$0xff] %v8317_v38  ;;  %v8323_v16 = vpack.c.bf16 %v10426_v36, %v10425_v30 }
 0x2a0   :  { %5546 = vmatprep.subr.bf16.mxu0 %v5545_v23  ;;  %v8305_v23 = vpack.c.bf16 %v10417_v47, %v10416_v51  ;;  %v8325_v51 = vpack.c.bf16 %v2835_v50, %v2828_v27  ;;  %v8327_v47 = vpack.c.bf16 %v2723_v44, %v2716_v20  ;;  %v253_v54 = vsub.s32 0, %v8329_v10 }
 0x2a1   :  { %10427 = vst [vmem:[#allocation118_spill] sm:$0xff] %v8323_v16  ;;  %v257_v55 = vsub.s32 1, %v8329_v10 }
 0x2a2   :  { %10418 = vst [vmem:[#allocation115_spill] sm:$0xff] %v8305_v23  ;;  %10428 = vst [vmem:[#allocation119_spill] sm:$0xff] %v8325_v51  ;;  %v254_v1 = vrot.slane %v8332_v17, %v253_v54 }
 0x2a3   :  { %10429 = vst [vmem:[#allocation120_spill] sm:$0xff] %v8327_v47  ;;  %v258_v8 = vrot.slane %v8332_v17, %v257_v55 }
 0x335   :  { %v1247_v43 = vpop.f32.mrb[0].mxu0  ;;  %v8337_v36 = vpop.f32.mrb[0].mxu1 }
 0x336   :  { %10430 = vst [vmem:[#allocation121_spill] sm:$0xff] %v8337_v36  ;;  %v5865_v27 = vadd.f32 %v1247_v43, %v254_v1  ;;  %v1249_v50 = vpop.f32.mrb[1].mxu0  ;;  %v8339_v20 = vpop.f32.mrb[1].mxu1 }
 0x337   :  { %v5866_v44 = vadd.f32 %v1249_v50, %v258_v8 }
 0x338   :  { %v4552_v42 = vmul.f32 -1.442695, %v5865_v27 }
 0x339   :  { %v4553_v30 = vmul.f32 -1.442695, %v5866_v44  ;;  %v1254_v39 = vpop.f32.mrb[2].mxu0  ;;  %v8341_v19 = vpop.f32.mrb[2].mxu1 }
 0x33a   :  { %10431 = vst [vmem:[#allocation122_spill] sm:$0xff] %v8341_v19  ;;  %5982 = vpow2.f32 %v4552_v42  ;;  %v5867_v47 = vadd.f32 %v1254_v39, %v254_v1  ;;  %v1256_v51 = vpop.f32.mrb[3].mxu0  ;;  %v8343_v16 = vpop.f32.mrb[3].mxu1 }
 0x33b   :  { %10432 = vst [vmem:[#allocation123_spill] sm:$0xff] %v8343_v16  ;;  %v5868_v54 = vadd.f32 %v1256_v51, %v258_v8  ;;  %5984 = vpow2.f32 %v4553_v30 }
 0x33c   :  { %v4556_v55 = vmul.f32 -1.442695, %v5867_v47 }
 0x33d   :  { %v4557_v38 = vmul.f32 -1.442695, %v5868_v54  ;;  %v1261_v7 = vpop.f32.mrb[4].mxu0  ;;  %v8345_v43 = vpop.f32.mrb[4].mxu1 }
 0x33e   :  { %10433 = vst [vmem:[#allocation124_spill] sm:$0xff] %v8345_v43  ;;  %5986 = vpow2.f32 %v4556_v55  ;;  %v5869_v23 = vadd.f32 %v1261_v7, %v254_v1  ;;  %v1263_v50 = vpop.f32.mrb[5].mxu0  ;;  %v8347_v36 = vpop.f32.mrb[5].mxu1 }
 0x33f   :  { %10434 = vst [vmem:[#allocation125_spill] sm:$0xff] %v8347_v36  ;;  %v5870_v49 = vadd.f32 %v1263_v50, %v258_v8  ;;  %5988 = vpow2.f32 %v4557_v38 }
 0x340   :  { %v4560_v19 = vmul.f32 -1.442695, %v5869_v23 }
 0x341   :  { %v4561_v42 = vmul.f32 -1.442695, %v5870_v49  ;;  %v1268_v39 = vpop.f32.mrb[6].mxu0  ;;  %v8349_v24 = vpop.f32.mrb[6].mxu1 }
 0x342   :  { %10435 = vst [vmem:[#allocation22_spill] sm:$0xff] %v8349_v24  ;;  %5990 = vpow2.f32 %v4560_v19  ;;  %v8351_v51 = vadd.f32 %v1268_v39, %v254_v1  ;;  %v1270_v30 = vpop.f32.mrb[7].mxu0  ;;  %v8353_v16 = vpop.f32.mrb[7].mxu1 }
 0x343   :  { %10436 = vst [vmem:[#allocation21_spill] sm:$0xff] %v8353_v16  ;;  %5992 = vpow2.f32 %v4561_v42  ;;  %v8356_v24 = vadd.f32 %v1270_v30, %v258_v8 }
 0x344   :  { %v5983_v25 = vpop.eup %5982  ;;  %v4564_v7 = vmul.f32 -1.442695, %v8351_v51 }
 0x345   :  { %v2323_v55 = vadd.f32 1.0, %v5983_v25  ;;  %v5985_v43 = vpop.eup %5984 }
 0x346   :  { %5994 = vpow2.f32 %v4564_v7  ;;  %v2324_v38 = vadd.f32 1.0, %v5985_v43  ;;  %v4565_v7 = vmul.f32 -1.442695, %v8356_v24 }
 0x347   :  { %5996 = vrcp.f32 %v2323_v55 }
 0x348   :  { %v5987_v50 = vpop.eup %5986  ;;  %5998 = vrcp.f32 %v2324_v38 }
 0x349   :  { %v2327_v36 = vadd.f32 1.0, %v5987_v50  ;;  %v5989_v3 = vpop.eup %5988 }
 0x34a   :  { %v2328_v19 = vadd.f32 1.0, %v5989_v3 }
 0x34b   :  { %6000 = vrcp.f32 %v2327_v36 }
 0x34c   :  { %v5991_v1 = vpop.eup %5990  ;;  %6002 = vrcp.f32 %v2328_v19 }
 0x34d   :  { %v2331_v39 = vadd.f32 1.0, %v5991_v1  ;;  %v5993_v16 = vpop.eup %5992 }
 0x34e   :  { %v2332_v42 = vadd.f32 1.0, %v5993_v16 }
 0x34f   :  { %6004 = vrcp.f32 %v2331_v39 }
 0x350   :  { %v5995_v52 = vpop.eup %5994  ;;  %6006 = vrcp.f32 %v2332_v42 }
 0x351   :  { %v5997_v25 = vpop.eup %5996  ;;  %v2335_v38 = vadd.f32 1.0, %v5995_v52  ;;  %6008 = vpow2.f32 %v4565_v7 }
 0x352   :  { %v2371_v43 = vmul.f32 %v5997_v25, %v5865_v27  ;;  %v5999_v55 = vpop.eup %5998 }
 0x353   :  { %v2372_v36 = vmul.f32 %v5999_v55, %v5866_v44  ;;  %6010 = vrcp.f32 %v2335_v38 }
 0x354   :  { %v8359_v50 = vand.u32 4294901760, %v2371_v43 }
 0x355   :  { %v6001_v3 = vpop.eup %6000  ;;  %v8361_v19 = vand.u32 4294901760, %v2372_v36 }
 0x356   :  { %10437 = vst [vmem:[#allocation23_spill] sm:$0xff] %v8359_v50  ;;  %v2375_v8 = vmul.f32 %v6001_v3, %v5867_v47  ;;  %v6003_v30 = vpop.eup %6002  ;;  %v8364_v1 = vsub.f32 %v2371_v43, %v8359_v50 }
 0x357   :  { %10438 = vst [vmem:[#allocation28_spill] sm:$0xff] %v8361_v19  ;;  %v2376_v16 = vmul.f32 %v6003_v30, %v5868_v54  ;;  %2840 = vmatprep.mubr.f32.mxu1 %v8361_v19  ;;  %v8369_v52 = vsub.f32 %v2372_v36, %v8361_v19  ;;  %v10443_v30 = vld [vmem:[#allocation35_spill] sm:$0xff]  ;;  %v10445_v19 = vld [vmem:[#allocation52_spill] sm:$0xff] }
 0x358   :  { %2842 = vmatmul.mubr.f32.vlgmr.msra.gmra.mrb[8].mxu1 %v8359_v50  ;;  %v8371_v27 = vand.u32 4294901760, %v2375_v8  ;;  %v9808_v25 = vand.u32 4294901760, %v8364_v1 }
 0x359   :  { %v6005_v39 = vpop.eup %6004  ;;  %v8373_v44 = vand.u32 4294901760, %v2376_v16  ;;  %5580 = vmatpush3.bf16.msra.mxu1 %v7963_v11  ;;  %v9815_v38 = vand.u32 4294901760, %v8369_v52 }
 0x35a   :  { %10439 = vst [vmem:[#allocation27_spill] sm:$0xff] %v8371_v27  ;;  %v2379_v42 = vmul.f32 %v6005_v39, %v5869_v23  ;;  %v6007_v47 = vpop.eup %6006  ;;  %5582 = vmatprep.subr.bf16.mxu1 %v8062_v15  ;;  %v8386_v55 = vsub.f32 %v2375_v8, %v8371_v27  ;;  %v2563_v3 = vsub.f32 %v8364_v1, %v9808_v25 }
 0x35b   :  { %10440 = vst [vmem:[#allocation30_spill] sm:$0xff] %v8373_v44  ;;  %v8379_v54 = vsub.f32 %v2376_v16, %v8373_v44  ;;  %v2380_v43 = vmul.f32 %v6007_v47, %v5870_v49  ;;  %2847 = vmatprep.mubr.f32.mxu1 %v8373_v44  ;;  %v6009_v36 = vpop.eup %6008  ;;  %v2557_v47 = vsub.f32 %v8369_v52, %v9815_v38  ;;  %v10444_v44 = vld [vmem:[#allocation31_spill] sm:$0xff] }
 0x35c   :  { %v8381_v7 = vand.u32 4294901760, %v2379_v42  ;;  %2849 = vmatmul.mubr.f32.gmra.mrb[10].mxu1 %v8371_v27  ;;  %v2336_v39 = vadd.f32 1.0, %v6009_v36  ;;  %v2564_v36 = vand.u32 4294901760, %v2563_v3  ;;  %v10446_v3 = vpack.c.bf16 %v7842_v53, %v7837_v2 }
 0x35d   :  { %v8388_v23 = vand.u32 4294901760, %v2380_v43  ;;  %5584 = vmatpush3.bf16.msra.mxu1 %v8078_v14  ;;  %v9822_v16 = vand.u32 4294901760, %v8379_v54  ;;  %v6011_v27 = vpop.eup %6010  ;;  %v2558_v25 = vand.u32 4294901760, %v2557_v47 }
 0x35e   :  { %10441 = vst [vmem:[#allocation86_spill] sm:$0xff] %v8381_v7  ;;  %v8396_v49 = vsub.f32 %v2379_v42, %v8381_v7  ;;  %5586 = vmatprep.subr.bf16.mxu1 %v10443_v30  ;;  %6012 = vrcp.f32 %v2336_v39 }
 0x35f   :  { %10442 = vst [vmem:[#allocation89_spill] sm:$0xff] %v8388_v23  ;;  %v8401_v8 = vsub.f32 %v2380_v43, %v8388_v23  ;;  %2854 = vmatprep.mubr.f32.mxu1 %v8388_v23  ;;  %v2572_v42 = vsub.f32 %v8379_v54, %v9822_v16  ;;  %v9820_v43 = vand.u32 4294901760, %v8386_v55  ;;  %2559 = vmatprep.mubr.f32.mxu0 %v2558_v25 }
 0x360   :  { %2856 = vmatmul.mubr.f32.gmra.mrb[12].mxu1 %v8381_v7  ;;  %v9823_v23 = vand.u32 4294901760, %v8396_v49  ;;  %v2383_v7 = vmul.f32 %v6011_v27, %v8351_v51  ;;  %2565 = vmatmul.mubr.f32.vlgmr.msra.gmra.mrb[8].mxu0 %v2564_v36  ;;  %v10448_v27 = vld [vmem:[#allocation55_spill] sm:$0xff] }
 0x361   :  { %5588 = vmatpush3.bf16.msra.mxu1 %v10444_v44  ;;  %v2573_v50 = vand.u32 4294901760, %v2572_v42  ;;  %v9821_v38 = vand.u32 4294901760, %v8401_v8  ;;  %v2578_v39 = vsub.f32 %v8386_v55, %v9820_v43  ;;  %5548 = vmatpush3.bf16.msra.mxu0 %v10446_v3  ;;  %v10447_v42 = vpack.c.bf16 %v7870_v59, %v7865_v12  ;;  %v8433_v43 = vld [vmem:[#allocation11 + $0x180] sm:$0xff]  ;;  %v10452_v3 = vld [vmem:[#allocation58_spill] sm:$0xff]  ;;  %v8452_v44 = vld [vmem:[#allocation11 + $0x108] sm:$0xff] }
 0x362   :  { %5590 = vmatprep.subr.bf16.mxu1 %v10445_v19  ;;  %v2593_v36 = vsub.f32 %v8396_v49, %v9823_v23  ;;  %10449 = vst [vmem:[#allocation88_spill] sm:$0xff] %v8433_v43  ;;  %v8437_v16 = vand.u32 4294901760, %v2383_v7  ;;  %v265_v23 = vsub.s32 3, %v8329_v10  ;;  %10457 = vst [vmem:[#allocation92_spill] sm:$0xff] %v8452_v44 }
 0x363   :  { %v2587_v47 = vsub.f32 %v8401_v8, %v9821_v38  ;;  %2574 = vmatprep.mubr.f32.mxu0 %v2573_v50  ;;  %5550 = vmatprep.subr.bf16.mxu0 %v10447_v42  ;;  %v2579_v51 = vand.u32 4294901760, %v2578_v39  ;;  %v8435_v38 = vld [vmem:[#allocation11 + $0x188] sm:$0xff]  ;;  %v8440_v50 = vld [vmem:[#allocation11 + $0x100] sm:$0xff]  ;;  %v10454_v39 = vpack.c.bf16 %v7908_v45, %v7899_v61  ;;  %v10459_v42 = vpack.c.bf16 %v7941_v60, %v7927_v37 }
 0x364   :  { %10450 = vst [vmem:[#allocation91_spill] sm:$0xff] %v8435_v38  ;;  %10451 = vst [vmem:[#allocation90_spill] sm:$0xff] %v8437_v16  ;;  %v2594_v19 = vand.u32 4294901760, %v2593_v36  ;;  %v10461_v36 = vand.u32 4294901760, %v8435_v38 }
 0x365   :  { %5592 = vmatpush3.bf16.msra.mxu1 %v10448_v27  ;;  %v2588_v25 = vand.u32 4294901760, %v2587_v47  ;;  %10453 = vst [vmem:[#allocation93_spill] sm:$0xff] %v8440_v50  ;;  %2580 = vmatmul.mubr.f32.gmra.mrb[10].mxu0 %v2579_v51  ;;  %v9826_v47 = vand.u32 4294901760, %v8433_v43  ;;  %v10455_v27 = vpack.c.bf16 %v7920_v34, %v7915_v46 }
 0x366   :  { %5594 = vmatprep.subr.bf16.mxu1 %v10452_v3  ;;  %5552 = vmatpush3.bf16.msra.mxu0 %v10454_v39  ;;  %v10456_v3 = vld [vmem:[#allocation66_spill] sm:$0xff]  ;;  %v8471_v51 = vsub.f32 %v8435_v38, %v10461_v36  ;;  %v10480_v38 = vand.u32 4294901760, %v8369_v52 }
 0x367   :  { %2589 = vmatprep.mubr.f32.mxu0 %v2588_v25  ;;  %5554 = vmatprep.subr.bf16.mxu0 %v10455_v27  ;;  %v8456_v25 = vsub.f32 %v2383_v7, %v8437_v16  ;;  %v8466_v27 = vsub.f32 %v8433_v43, %v9826_v47  ;;  %v8488_v36 = vld [vmem:[#allocation11 + $0x190] sm:$0xff]  ;;  %v8507_v47 = vld [vmem:[#allocation11 + $0x1d8] sm:$0xff] }
 0x368   :  { %v6013_v45 = vpop.eup %6012  ;;  %10462 = vst [vmem:[#allocation98_spill] sm:$0xff] %v8471_v51  ;;  %v8494_v7 = vld [vmem:[#allocation11 + $0x1d0] sm:$0xff]  ;;  %10471 = vst [vmem:[#allocation36_spill] sm:$0xff] %v8507_v47 }
 0x369   :  { %5596 = vmatpush3.bf16.msra.mxu1 %v10456_v3  ;;  %10458 = vst [vmem:[#allocation94_spill] sm:$0xff] %v8456_v25  ;;  %v2384_v39 = vmul.f32 %v6013_v45, %v8356_v24  ;;  %2595 = vmatmul.mubr.f32.gmra.mrb[12].mxu0 %v2594_v19  ;;  %10460 = vst [vmem:[#allocation99_spill] sm:$0xff] %v8466_v27  ;;  %v10465_v24 = vpack.c.bf16 %v7990_v5, %v7985_v33  ;;  %v10466_v19 = vand.u32 4294901760, %v8440_v50  ;;  %v8527_v3 = vld [vmem:[#allocation11 + $0x1e8] sm:$0xff]  ;;  %v8547_v5 = vld [vmem:[#allocation11 + $0x1f8] sm:$0xff] }
 0x36a   :  { %5598 = vmatprep.subr.bf16.mxu1 %v8222_v63  ;;  %5556 = vmatpush3.bf16.msra.mxu0 %v10459_v42  ;;  %v8475_v63 = vrot.slane %v8332_v17, %v265_v23  ;;  %v8492_v23 = vld [vmem:[#allocation11 + $0x198] sm:$0xff]  ;;  %10468 = vst [vmem:[#allocation29_spill] sm:$0xff] %v8494_v7  ;;  %10478 = vst [vmem:[#allocation75_spill] sm:$0xff] %v8527_v3  ;;  %v10491_v33 = vand.u32 4294901760, %v8494_v7 }
 0x36b   :  { %v8477_v45 = vand.u32 4294901760, %v2384_v39  ;;  %5558 = vmatprep.subr.bf16.mxu0 %v10465_v24  ;;  %v8486_v42 = vsub.f32 %v8440_v50, %v10466_v19  ;;  %v10469_v19 = vand.u32 4294901760, %v7827_v48  ;;  %v10470_v50 = vand.u32 4294901760, %v7832_v18  ;;  %10484 = vst [vmem:[#allocation78_spill] sm:$0xff] %v8547_v5 }
 0x36c   :  { %10463 = vst [vmem:[#allocation20_spill] sm:$0xff] %v8475_v63  ;;  %v10475_v18 = vand.u32 4294901760, %v8452_v44 }
 0x36d   :  { %10464 = vst [vmem:[#allocation24_spill] sm:$0xff] %v8477_v45  ;;  %5600 = vmatpush3.bf16.msra.mxu1 %v8232_v9  ;;  %10467 = vst [vmem:[#allocation26_spill] sm:$0xff] %v8486_v42  ;;  %v8498_v24 = vsub.f32 %v2384_v39, %v8477_v45  ;;  %2861 = vmatprep.mubr.f32.mxu1 %v8477_v45  ;;  %v8505_v43 = vpack.c.bf16 %v10470_v50, %v10469_v19  ;;  %v8511_v9 = vld [vmem:[#allocation11 + $0x158] sm:$0xff]  ;;  %v8525_v45 = vld [vmem:[#allocation11 + $0x1e0] sm:$0xff] }
 0x36e   :  { %5602 = vmatprep.subr.bf16.mxu1 %v8250_v32  ;;  %v8509_v32 = vld [vmem:[#allocation11 + $0x150] sm:$0xff]  ;;  %10473 = vst [vmem:[#allocation106_spill] sm:$0xff] %v8511_v9  ;;  %2863 = vmatmul.mubr.f32.gmra.mrb[14].mxu1 %v8437_v16  ;;  %v10474_v39 = vpack.c.bf16 %v8000_v6, %v7995_v22  ;;  %v8522_v50 = vsub.f32 %v8452_v44, %v10475_v18  ;;  %10477 = vst [vmem:[#allocation74_spill] sm:$0xff] %v8525_v45  ;;  %v8529_v16 = vld [vmem:[#allocation11 + $0x160] sm:$0xff] }
 0x36f   :  { %10472 = vst [vmem:[#allocation103_spill] sm:$0xff] %v8509_v32  ;;  %10479 = vst [vmem:[#allocation64_spill] sm:$0xff] %v8529_v16  ;;  %3132 = vmatprep.mubr.f32.mxu1 %v10480_v38  ;;  %v10481_v18 = vpack.c.bf16 %v8032_v40, %v8027_v0  ;;  %v8543_v6 = vld [vmem:[#allocation11 + $0x168] sm:$0xff]  ;;  %v8545_v22 = vld [vmem:[#allocation11 + $0x1f0] sm:$0xff]  ;;  %v10488_v40 = vand.u32 4294901760, %v8498_v24 }
 0x370   :  { %5560 = vmatpush3.bf16.msra.mxu0 %v10474_v39  ;;  %10476 = vst [vmem:[#allocation63_spill] sm:$0xff] %v8522_v50  ;;  %v8533_v39 = vadd.f32 %v8339_v20, %v8475_v63  ;;  %10482 = vst [vmem:[#allocation76_spill] sm:$0xff] %v8543_v6  ;;  %v10485_v20 = vand.u32 4294901760, %v8456_v25  ;;  %v8556_v63 = vld [vmem:[#allocation11 + $0x170] sm:$0xff]  ;;  %v8558_v44 = vld [vmem:[#allocation11 + $0x178] sm:$0xff] }
 0x371   :  { %5562 = vmatprep.subr.bf16.mxu0 %v10481_v18  ;;  %10483 = vst [vmem:[#allocation77_spill] sm:$0xff] %v8545_v22  ;;  %5604 = vmatpush3.bf16.msra.mxu1 %v8257_v13  ;;  %10486 = vst [vmem:[#allocation79_spill] sm:$0xff] %v8556_v63  ;;  %v2602_v0 = vsub.f32 %v8498_v24, %v10488_v40  ;;  %v10489_v18 = vpack.c.bf16 %v8048_v21, %v8043_v4  ;;  %v8581_v19 = vld [vmem:[#allocation11 + $0x110] sm:$0xff] }
 0x372   :  { %v2608_v38 = vsub.f32 %v8456_v25, %v10485_v20  ;;  %10487 = vst [vmem:[#allocation80_spill] sm:$0xff] %v8558_v44  ;;  %5606 = vmatprep.subr.bf16.mxu1 %v8262_v26  ;;  %v4555_v26 = vmul.f32 -1.442695, %v8533_v39  ;;  %v10490_v13 = vpack.c.bf16 %v8110_v29, %v8105_v58  ;;  %v8586_v40 = vsub.f32 %v8494_v7, %v10491_v33 }
 0x373   :  { %v2603_v60 = vand.u32 4294901760, %v2602_v0  ;;  %v10492_v0 = vand.u32 4294901760, %v8507_v47  ;;  %v10493_v58 = vand.u32 4294901760, %v8509_v32  ;;  %v10494_v33 = vand.u32 4294901760, %v8511_v9 }
 0x374   :  { %5564 = vmatpush3.bf16.msra.mxu0 %v10489_v18  ;;  %v2609_v18 = vand.u32 4294901760, %v2608_v38  ;;  %v8600_v38 = vld [vmem:[#allocation11 + $0x118] sm:$0xff]  ;;  %6014 = vpow2.f32 %v4555_v26 }
 0x375   :  { %5566 = vmatprep.subr.bf16.mxu0 %v10490_v13  ;;  %5608 = vmatpush3.bf16.msra.mxu1 %v8264_v28  ;;  %v8591_v25 = vsub.f32 %v8507_v47, %v10492_v0  ;;  %v8596_v29 = vsub.f32 %v8509_v32, %v10493_v58  ;;  %v8605_v20 = vsub.f32 %v8511_v9, %v10494_v33  ;;  %v10495_v0 = vand.u32 4294901760, %v8525_v45  ;;  %v10609_v47 = vld [vmem:[#allocation124_spill] sm:$0xff] }
 0x376   :  { %2604 = vmatprep.mubr.f32.mxu0 %v2603_v60  ;;  %5642 = vmatprep.subr.bf16.mxu1 %v7953_v56  ;;  %v10496_v58 = vand.u32 4294901760, %v8527_v3  ;;  %v10497_v56 = vand.u32 4294901760, %v8529_v16  ;;  %v10498_v32 = vand.u32 4294901760, %v8543_v6  ;;  %v10499_v9 = vand.u32 4294901760, %v8545_v22 }
 0x377   :  { %v8610_v48 = vsub.f32 %v8525_v45, %v10495_v0  ;;  %2610 = vmatmul.mubr.f32.gmra.mrb[14].mxu0 %v2609_v18  ;;  %v10500_v45 = vand.u32 4294901760, %v8547_v5  ;;  %v10501_v18 = vpack.c.bf16 %v8130_v35, %v8125_v41  ;;  %v10506_v41 = vpack.c.bf16 %v8174_v62, %v8157_v57 }
 0x378   :  { %v8615_v60 = vsub.f32 %v8527_v3, %v10496_v58  ;;  %v8620_v13 = vsub.f32 %v8529_v16, %v10497_v56  ;;  %v8625_v33 = vsub.f32 %v8543_v6, %v10498_v32  ;;  %v8630_v0 = vsub.f32 %v8545_v22, %v10499_v9  ;;  %2998 = vmatprep.mubr.f32.mxu0 %v8369_v52 }
 0x379   :  { %v8635_v58 = vsub.f32 %v8547_v5, %v10500_v45  ;;  %5568 = vmatpush3.bf16.msra.mxu0 %v10501_v18  ;;  %v10502_v56 = vand.u32 4294901760, %v8488_v36  ;;  %v10504_v9 = vand.u32 4294901760, %v8556_v63  ;;  %v10505_v45 = vand.u32 4294901760, %v8558_v44 }
 0x37a   :  { %5570 = vmatprep.subr.bf16.mxu0 %v10506_v41  ;;  %v10507_v35 = vand.u32 4294901760, %v8364_v1  ;;  %v10508_v6 = vand.u32 4294901760, %v8379_v54  ;;  %v10511_v41 = vand.u32 4294901760, %v8586_v40  ;;  %v10514_v18 = vand.u32 4294901760, %v8596_v29 }
 0x37b   :  { %v8644_v32 = vsub.f32 %v8488_v36, %v10502_v56  ;;  %v8650_v22 = vsub.f32 %v8556_v63, %v10504_v9  ;;  %v8655_v52 = vsub.f32 %v8558_v44, %v10505_v45  ;;  %v8668_v45 = vld [vmem:[#allocation11 + $0x1a0] sm:$0xff]  ;;  %v10533_v62 = vand.u32 4294901760, %v8581_v19 }
 0x37c   :  { %3136 = vmatmul.mubr.f32.vlgmr.msra.gmra.mrb[16].mxu1 %v10507_v35  ;;  %v10509_v9 = vld [vmem:[#allocation56_spill] sm:$0xff] }
 0x37d   :  { %10503 = vst [vmem:[#allocation81_spill] sm:$0xff] %v8644_v32  ;;  %3143 = vmatprep.mubr.f32.mxu1 %v10508_v6  ;;  %5644 = vmatpush3.bf16.msra.mxu1 %v7963_v11  ;;  %v10510_v56 = vpack.c.bf16 %v8188_v31, %v10509_v9  ;;  %v10515_v6 = vand.u32 4294901760, %v8605_v20  ;;  %v10517_v11 = vld [vmem:[#allocation69_spill] sm:$0xff]  ;;  %v10518_v44 = vld [vmem:[#allocation68_spill] sm:$0xff] }
 0x37e   :  { %5646 = vmatprep.subr.bf16.mxu1 %v8062_v15  ;;  %v10512_v15 = vand.u32 4294901760, %v8591_v25  ;;  %v10519_v31 = vpack.c.bf16 %v10517_v11, %v10518_v44  ;;  %v8701_v9 = vld [vmem:[#allocation11 + $0x1a8] sm:$0xff]  ;;  %v10527_v44 = vand.u32 4294901760, %v8630_v0  ;;  %v10528_v11 = vand.u32 4294901760, %v8635_v58 }
 0x37f   :  { %5572 = vmatpush3.bf16.msra.mxu0 %v10510_v56  ;;  %v8694_v35 = vpack.c.bf16 %v10515_v6, %v10514_v18  ;;  %v10520_v56 = vand.u32 4294901760, %v8386_v55  ;;  %v10524_v18 = vand.u32 4294901760, %v8620_v13  ;;  %v10525_v6 = vand.u32 4294901760, %v8625_v33 }
 0x380   :  { %v8688_v26 = vpack.c.bf16 %v10512_v15, %v10511_v41  ;;  %5574 = vmatprep.subr.bf16.mxu0 %v10519_v31  ;;  %v10521_v41 = vand.u32 4294901760, %v8610_v48  ;;  %v10522_v15 = vand.u32 4294901760, %v8615_v60  ;;  %v8720_v31 = vpack.c.bf16 %v10528_v11, %v10527_v44 }
 0x381   :  { %10516 = vst [vmem:[#allocation83_spill] sm:$0xff] %v8694_v35  ;;  %3147 = vmatmul.mubr.f32.gmra.mrb[18].mxu1 %v10520_v56  ;;  %v8714_v35 = vpack.c.bf16 %v10525_v6, %v10524_v18  ;;  %v10530_v56 = vand.u32 4294901760, %v8401_v8  ;;  %v8733_v18 = vsub.f32 %v8581_v19, %v10533_v62  ;;  %v10535_v6 = vand.u32 4294901760, %v8650_v22 }
 0x382   :  { %10513 = vst [vmem:[#allocation82_spill] sm:$0xff] %v8688_v26  ;;  %v8708_v57 = vpack.c.bf16 %v10522_v15, %v10521_v41  ;;  %10529 = vst [vmem:[#allocation87_spill] sm:$0xff] %v8720_v31  ;;  %5648 = vmatpush3.bf16.msra.mxu1 %v8078_v14  ;;  %v10531_v41 = vand.u32 4294901760, %v8492_v23  ;;  %v10536_v44 = vand.u32 4294901760, %v8655_v52  ;;  %v10540_v31 = vand.u32 4294901760, %v7842_v53  ;;  %v10543_v26 = vld [vmem:[#allocation111_spill] sm:$0xff] }
 0x383   :  { %10526 = vst [vmem:[#allocation85_spill] sm:$0xff] %v8714_v35  ;;  %3154 = vmatprep.mubr.f32.mxu1 %v10530_v56  ;;  %10534 = vst [vmem:[#allocation25_spill] sm:$0xff] %v8733_v18  ;;  %v10538_v56 = vsub.s32 2, %v8329_v10  ;;  %5650 = vmatprep.subr.bf16.mxu1 %v10443_v30  ;;  %v10541_v62 = vand.u32 4294901760, %v8600_v38  ;;  %v10546_v10 = vand.u32 4294901760, %v7865_v12  ;;  %v10548_v30 = vand.u32 4294901760, %v8466_v27 }
 0x384   :  { %10523 = vst [vmem:[#allocation84_spill] sm:$0xff] %v8708_v57  ;;  %v8728_v15 = vsub.f32 %v8492_v23, %v10531_v41  ;;  %v8739_v11 = vpack.c.bf16 %v10536_v44, %v10535_v6  ;;  %v10539_v41 = vand.u32 4294901760, %v7837_v2  ;;  %v10544_v6 = vld [vmem:[#allocation110_spill] sm:$0xff]  ;;  %v10549_v53 = vand.u32 4294901760, %v8471_v51 }
 0x385   :  { %v8744_v14 = vrot.slane %v8332_v17, %v10538_v56  ;;  %v8754_v57 = vsub.f32 %v8600_v38, %v10541_v62  ;;  %v10545_v44 = vpack.c.bf16 %v10543_v26, %v10544_v6  ;;  %v10547_v17 = vand.u32 4294901760, %v7870_v59 }
 0x386   :  { %10532 = vst [vmem:[#allocation96_spill] sm:$0xff] %v8728_v15  ;;  %10537 = vst [vmem:[#allocation54_spill] sm:$0xff] %v8739_v11  ;;  %v5611_v35 = vpack.c.bf16 %v10540_v31, %v10539_v41  ;;  %v3761_v2 = vsub.f32 %v8466_v27, %v10548_v30  ;;  %v3768_v31 = vsub.f32 %v8471_v51, %v10549_v53  ;;  %v10550_v62 = vand.u32 4294901760, %v8396_v49  ;;  %v10556_v53 = vld [vmem:[#allocation31_spill] sm:$0xff] }
 0x387   :  { %10542 = vst [vmem:[#allocation57_spill] sm:$0xff] %v8754_v57  ;;  %5576 = vmatpush3.bf16.msra.mxu0 %v10545_v44  ;;  %v5613_v56 = vpack.c.bf16 %v10547_v17, %v10546_v10  ;;  %v10551_v12 = vand.u32 4294901760, %v8486_v42  ;;  %v10552_v26 = vand.u32 4294901760, %v8522_v50  ;;  %v10553_v10 = vand.u32 4294901760, %v8668_v45  ;;  %5652 = vmatpush3.bf16.msra.mxu1 %v10556_v53 }
 0x388   :  { %3158 = vmatmul.mubr.f32.gmra.mrb[20].mxu1 %v10550_v62  ;;  %5610 = vmatprep.subr.bf16.mxu0 %v8505_v43  ;;  %v10555_v30 = vand.u32 4294901760, %v8498_v24  ;;  %v10557_v43 = vand.u32 4294901760, %v7899_v61  ;;  %v10558_v62 = vld [vmem:[#allocation65_spill] sm:$0xff]  ;;  %v10560_v11 = vand.u32 4294901760, %v7915_v46  ;;  %v10563_v53 = vand.u32 4294901760, %v7927_v37  ;;  %v10568_v46 = vld [vmem:[#allocation104_spill] sm:$0xff] }
 0x389   :  { %v3649_v59 = vsub.f32 %v8486_v42, %v10551_v12  ;;  %v3656_v6 = vsub.f32 %v8522_v50, %v10552_v26  ;;  %v8783_v17 = vsub.f32 %v8668_v45, %v10553_v10  ;;  %v10559_v12 = vand.u32 4294901760, %v10558_v62  ;;  %v6015_v42 = vpop.eup %6014  ;;  %v10564_v61 = vld [vmem:[#allocation101_spill] sm:$0xff]  ;;  %v10572_v50 = vld [vmem:[#allocation32_spill] sm:$0xff]  ;;  %v10574_v37 = vld [vmem:[#allocation34_spill] sm:$0xff] }
 0x38a   :  { %3165 = vmatprep.mubr.f32.mxu1 %v10555_v30  ;;  %v10561_v26 = vand.u32 4294901760, %v7920_v34  ;;  %3001 = vmatmul.mubr.f32.vlgmr.msra.gmra.mrb[16].mxu0 %v8364_v1  ;;  %v10562_v30 = vld [vmem:[#allocation52_spill] sm:$0xff]  ;;  %v10565_v51 = vand.u32 4294901760, %v10564_v61  ;;  %v10569_v27 = vand.u32 4294901760, %v10568_v46  ;;  %v10573_v63 = vand.u32 4294901760, %v10572_v50  ;;  %v10576_v61 = vld [vmem:[#allocation33_spill] sm:$0xff] }
 0x38b   :  { %10554 = vst [vmem:[#allocation107_spill] sm:$0xff] %v8783_v17  ;;  %v5615_v41 = vpack.c.bf16 %v10559_v12, %v10557_v43  ;;  %5654 = vmatprep.subr.bf16.mxu1 %v10562_v30  ;;  %v10566_v43 = vld [vmem:[#allocation102_spill] sm:$0xff]  ;;  %3007 = vmatprep.mubr.f32.mxu0 %v8379_v54  ;;  %v10575_v30 = vand.u32 4294901760, %v10574_v37  ;;  %v3769_v46 = vand.u32 4294901760, %v3768_v31  ;;  %v3650_v54 = vand.u32 4294901760, %v3649_v59  ;;  %v8837_v31 = vld [vmem:[#allocation11 + $0x128] sm:$0xff] }
 0x38c   :  { %v5617_v44 = vpack.c.bf16 %v10561_v26, %v10560_v11  ;;  %v5619_v62 = vpack.c.bf16 %v10565_v51, %v10563_v53  ;;  %v10567_v12 = vand.u32 4294901760, %v10566_v43  ;;  %v10570_v11 = vld [vmem:[#allocation105_spill] sm:$0xff]  ;;  %5612 = vmatpush3.bf16.msra.mxu0 %v5611_v35  ;;  %v10577_v51 = vand.u32 4294901760, %v10576_v61  ;;  %v10580_v50 = vld [vmem:[#allocation94_spill] sm:$0xff]  ;;  %v10589_v1 = vld [vmem:[#allocation123_spill] sm:$0xff] }
 0x38d   :  { %v10571_v26 = vand.u32 4294901760, %v10570_v11  ;;  %v3762_v43 = vand.u32 4294901760, %v3761_v2  ;;  %v10581_v11 = vand.u32 4294901760, %v10580_v50  ;;  %5614 = vmatprep.subr.bf16.mxu0 %v5613_v56  ;;  %v3657_v35 = vand.u32 4294901760, %v3656_v6  ;;  %v8857_v2 = vld [vmem:[#allocation11 + $0x1b8] sm:$0xff] }
 0x38e   :  { %v5621_v34 = vpack.c.bf16 %v10569_v27, %v10567_v12  ;;  %v8820_v53 = vpack.c.bf16 %v10577_v51, %v10575_v30  ;;  %v10578_v27 = vand.u32 4294901760, %v8701_v9  ;;  %v10583_v30 = vld [vmem:[#allocation121_spill] sm:$0xff]  ;;  %v10584_v51 = vld [vmem:[#allocation55_spill] sm:$0xff]  ;;  %v10586_v56 = vand.u32 4294901760, %v8728_v15  ;;  %3010 = vmatmul.mubr.f32.gmra.mrb[18].mxu0 %v8386_v55 }
 0x38f   :  { %v8812_v10 = vpack.c.bf16 %v10573_v63, %v10571_v26  ;;  %v8827_v63 = vld [vmem:[#allocation11 + $0x120] sm:$0xff]  ;;  %3169 = vmatmul.mubr.f32.gmra.mrb[22].mxu1 %v10581_v11  ;;  %v10582_v26 = vand.u32 4294901760, %v8644_v32  ;;  %v8841_v61 = vadd.f32 %v10583_v30, %v8744_v14  ;;  %v10587_v6 = vand.u32 4294901760, %v8733_v18  ;;  %3016 = vmatprep.mubr.f32.mxu0 %v8401_v8 }
 0x390   :  { %v8825_v12 = vsub.f32 %v8701_v9, %v10578_v27  ;;  %5656 = vmatpush3.bf16.msra.mxu1 %v10584_v51  ;;  %v10585_v27 = vld [vmem:[#allocation28_spill] sm:$0xff]  ;;  %v8848_v59 = vsub.f32 %v8728_v15, %v10586_v56  ;;  %v10590_v51 = vld [vmem:[#allocation58_spill] sm:$0xff]  ;;  %v10591_v56 = vand.u32 4294901760, %v8043_v4  ;;  %v10592_v15 = vand.u32 4294901760, %v8048_v21  ;;  %5616 = vmatpush3.bf16.msra.mxu0 %v5615_v41 }
 0x391   :  { %v8834_v37 = vsub.f32 %v8644_v32, %v10582_v26  ;;  %3460 = vmatprep.mubr.f32.mxu1 %v10585_v27  ;;  %v8853_v11 = vsub.f32 %v8733_v18, %v10587_v6  ;;  %v8855_v26 = vld [vmem:[#allocation11 + $0x1b0] sm:$0xff]  ;;  %v10588_v30 = vld [vmem:[#allocation20_spill] sm:$0xff]  ;;  %5658 = vmatprep.subr.bf16.mxu1 %v10590_v51  ;;  %v10593_v6 = vand.u32 4294901760, %v8754_v57  ;;  %v9874_v16 = vand.u32 4294901760, %v8827_v63 }
 0x392   :  { %10579 = vst [vmem:[#allocation37_spill] sm:$0xff] %v8825_v12  ;;  %v8861_v32 = vadd.f32 %v10589_v1, %v10588_v30  ;;  %v8869_v5 = vpack.c.bf16 %v10592_v15, %v10591_v56  ;;  %v2326_v3 = vadd.f32 1.0, %v6015_v42  ;;  %v8878_v55 = vpack.c.bf16 %v3769_v46, %v3762_v43  ;;  %5618 = vmatprep.subr.bf16.mxu0 %v5617_v44  ;;  %v10595_v41 = vld [vmem:[#allocation66_spill] sm:$0xff]  ;;  %v10598_v42 = vld [vmem:[#allocation67_spill] sm:$0xff]  ;;  %v8915_v56 = vld [vmem:[#allocation11 + $0x1c8] sm:$0xff] }
 0x393   :  { %v8874_v18 = vsub.f32 %v8754_v57, %v10593_v6  ;;  %v9875_v1 = vand.u32 4294901760, %v8825_v12  ;;  %v8882_v21 = vpack.c.bf16 %v3657_v35, %v3650_v54  ;;  %v10594_v15 = vand.u32 4294901760, %v8783_v17  ;;  %v8896_v54 = vld [vmem:[#allocation11 + $0x130] sm:$0xff]  ;;  %3019 = vmatmul.mubr.f32.gmra.mrb[20].mxu0 %v8396_v49  ;;  %v8911_v44 = vld [vmem:[#allocation11 + $0x138] sm:$0xff]  ;;  %v8913_v43 = vld [vmem:[#allocation11 + $0x1c0] sm:$0xff] }
 0x394   :  { %v4554_v8 = vmul.f32 -1.442695, %v8841_v61  ;;  %5660 = vmatpush3.bf16.msra.mxu1 %v10595_v41  ;;  %v10596_v35 = vld [vmem:[#allocation122_spill] sm:$0xff]  ;;  %v8909_v46 = vsub.f32 %v8827_v63, %v9874_v16  ;;  %6016 = vrcp.f32 %v2326_v3  ;;  %3025 = vmatprep.mubr.f32.mxu0 %v8498_v24  ;;  %v8932_v16 = vld [vmem:[#allocation11 + $0x140] sm:$0xff] }
 0x395   :  { %v8887_v51 = vsub.f32 %v8783_v17, %v10594_v15  ;;  %v8900_v6 = vadd.f32 %v10596_v35, %v8744_v14  ;;  %v4559_v15 = vmul.f32 -1.442695, %v8861_v32  ;;  %5662 = vmatprep.subr.bf16.mxu1 %v10598_v42  ;;  %v3671_v41 = vand.u32 4294901760, %v8874_v18  ;;  %v10600_v35 = vld [vmem:[#allocation125_spill] sm:$0xff]  ;;  %5620 = vmatpush3.bf16.msra.mxu0 %v5619_v62 }
 0x396   :  { %10599 = vst [vmem:[#allocation38_spill] sm:$0xff] %v8909_v46  ;;  %v8919_v4 = vadd.f32 %v10600_v35, %v10588_v30  ;;  %v8925_v49 = vsub.f32 %v8825_v12, %v9875_v1  ;;  %v10602_v18 = vand.u32 4294901760, %v8837_v31  ;;  %5622 = vmatprep.subr.bf16.mxu0 %v5621_v34  ;;  %v10604_v35 = vand.u32 4294901760, %v8855_v26  ;;  %v8946_v17 = vld [vmem:[#allocation11 + $0x148] sm:$0xff] }
 0x397   :  { %10597 = vst [vmem:[#allocation108_spill] sm:$0xff] %v8900_v6  ;;  %v3790_v3 = vand.u32 4294901760, %v8887_v51  ;;  %v10606_v62 = vand.u32 4294901760, %v8857_v2  ;;  %6018 = vpow2.f32 %v4554_v8  ;;  %3028 = vmatmul.mubr.f32.gmra.mrb[22].mxu0 %v10580_v50  ;;  %v10611_v12 = vld [vmem:[#allocation112_spill] sm:$0xff]  ;;  %v10612_v34 = vld [vmem:[#allocation21_spill] sm:$0xff]  ;;  %v10621_v8 = vand.u32 4294901760, %v8915_v56 }
 0x398   :  { %10601 = vst [vmem:[#allocation39_spill] sm:$0xff] %v8919_v4  ;;  %v8930_v42 = vsub.f32 %v8837_v31, %v10602_v18  ;;  %v8938_v24 = vsub.f32 %v8855_v26, %v10604_v35  ;;  %v10608_v18 = vld [vmem:[#allocation109_spill] sm:$0xff]  ;;  %v4558_v35 = vmul.f32 -1.442695, %v8900_v6  ;;  %6020 = vpow2.f32 %v4559_v15  ;;  %3335 = vmatprep.mubr.f32.mxu0 %v10585_v27  ;;  %v10625_v15 = vld [vmem:[#allocation114_spill] sm:$0xff] }
 0x399   :  { %v8943_v1 = vsub.f32 %v8857_v2, %v10606_v62  ;;  %5664 = vmatpush3.bf16.msra.mxu1 %v10608_v18  ;;  %v8955_v62 = vadd.f32 %v10609_v47, %v8744_v14  ;;  %v4563_v18 = vmul.f32 -1.442695, %v8919_v4  ;;  %v8963_v51 = vadd.f32 %v10612_v34, %v10588_v30  ;;  %5624 = vmatpush3.bf16.msra.mxu0 %v8812_v10  ;;  %v10614_v30 = vld [vmem:[#allocation113_spill] sm:$0xff] }
 0x39a   :  { %10603 = vst [vmem:[#allocation40_spill] sm:$0xff] %v8930_v42  ;;  %10605 = vst [vmem:[#allocation41_spill] sm:$0xff] %v8938_v24  ;;  %5666 = vmatprep.subr.bf16.mxu1 %v10611_v12  ;;  %5626 = vmatprep.subr.bf16.mxu0 %v8820_v53  ;;  %v3797_v12 = vand.u32 4294901760, %v8925_v49  ;;  %v10615_v10 = vand.u32 4294901760, %v8896_v54  ;;  %v10617_v34 = vand.u32 4294901760, %v8911_v44  ;;  %v10619_v53 = vand.u32 4294901760, %v8913_v43 }
 0x39b   :  { %10607 = vst [vmem:[#allocation53_spill] sm:$0xff] %v8943_v1  ;;  %10610 = vst [vmem:[#allocation42_spill] sm:$0xff] %v8955_v62  ;;  %v8993_v57 = vsub.f32 %v8915_v56, %v10621_v8  ;;  %6022 = vpow2.f32 %v4558_v35  ;;  %v10628_v35 = vand.u32 4294901760, %v8909_v46  ;;  %v10635_v7 = vand.u32 4294901760, %v8938_v24 }
 0x39c   :  { %10613 = vst [vmem:[#allocation43_spill] sm:$0xff] %v8963_v51  ;;  %v8978_v27 = vsub.f32 %v8896_v54, %v10615_v10  ;;  %v8983_v47 = vsub.f32 %v8911_v44, %v10617_v34  ;;  %v8988_v49 = vsub.f32 %v8913_v43, %v10619_v53  ;;  %v10623_v10 = vld [vmem:[#allocation22_spill] sm:$0xff]  ;;  %v10626_v34 = vand.u32 4294901760, %v8932_v16 }
 0x39d   :  { %5668 = vmatpush3.bf16.msra.mxu1 %v10614_v30  ;;  %10622 = vst [vmem:[#allocation46_spill] sm:$0xff] %v8993_v57  ;;  %v4562_v30 = vmul.f32 -1.442695, %v8955_v62  ;;  %v8998_v50 = vadd.f32 %v10623_v10, %v8744_v14  ;;  %6024 = vpow2.f32 %v4563_v18  ;;  %v4567_v53 = vmul.f32 -1.442695, %v8963_v51  ;;  %5628 = vmatpush3.bf16.msra.mxu0 %v8869_v5 }
 0x39e   :  { %10616 = vst [vmem:[#allocation44_spill] sm:$0xff] %v8978_v27  ;;  %10618 = vst [vmem:[#allocation45_spill] sm:$0xff] %v8983_v47  ;;  %5670 = vmatprep.subr.bf16.mxu1 %v10625_v15  ;;  %v9004_v4 = vsub.f32 %v8932_v16, %v10626_v34  ;;  %v3677_v8 = vsub.f32 %v8909_v46, %v10628_v35  ;;  %v10629_v62 = vand.u32 4294901760, %v8946_v17  ;;  %v10631_v15 = vld [vmem:[#allocation115_spill] sm:$0xff]  ;;  %v10632_v10 = vand.u32 4294901760, %v8834_v37  ;;  %v6017_v6 = vpop.eup %6016 }
 0x39f   :  { %10620 = vst [vmem:[#allocation59_spill] sm:$0xff] %v8988_v49  ;;  %10624 = vst [vmem:[#allocation47_spill] sm:$0xff] %v8998_v50  ;;  %5630 = vmatprep.subr.bf16.mxu0 %v10631_v15  ;;  %v10633_v34 = vand.u32 4294901760, %v8848_v59  ;;  %v10634_v51 = vand.u32 4294901760, %v8930_v42  ;;  %v3803_v35 = vsub.f32 %v8938_v24, %v10635_v7  ;;  %v10636_v46 = vand.u32 4294901760, %v8943_v1  ;;  %v10640_v59 = vld [vmem:[#allocation23_spill] sm:$0xff] }
 0x3a0   :  { %10627 = vst [vmem:[#allocation48_spill] sm:$0xff] %v9004_v4  ;;  %v9014_v14 = vsub.f32 %v8946_v17, %v10629_v62  ;;  %v10637_v37 = vand.u32 4294901760, %v8853_v11  ;;  %6026 = vpow2.f32 %v4562_v30  ;;  %v5713_v11 = vpack.c.bf16 %v3797_v12, %v3790_v3  ;;  %v10639_v30 = vld [vmem:[#allocation117_spill] sm:$0xff] }
 0x3a1   :  { %v5709_v18 = vpack.c.bf16 %v10633_v34, %v10632_v10  ;;  %v3684_v5 = vsub.f32 %v8930_v42, %v10634_v51  ;;  %v3810_v62 = vsub.f32 %v8943_v1, %v10636_v46  ;;  %5672 = vmatpush3.bf16.msra.mxu1 %v8264_v28  ;;  %v4566_v34 = vmul.f32 -1.442695, %v8998_v50  ;;  %v6019_v1 = vpop.eup %6018  ;;  %v10638_v28 = vld [vmem:[#allocation116_spill] sm:$0xff]  ;;  %v10641_v42 = vld [vmem:[#allocation30_spill] sm:$0xff] }
 0x3a2   :  { %10630 = vst [vmem:[#allocation49_spill] sm:$0xff] %v9014_v14  ;;  %v5711_v15 = vpack.c.bf16 %v3671_v41, %v10637_v37  ;;  %5706 = vmatprep.subr.bf16.mxu1 %v8878_v55  ;;  %v9904_v46 = vand.u32 4294901760, %v9004_v4  ;;  %6028 = vpow2.f32 %v4567_v53  ;;  %5632 = vmatpush3.bf16.msra.mxu0 %v10638_v28  ;;  %v3678_v41 = vand.u32 4294901760, %v3677_v8  ;;  %v6021_v10 = vpop.eup %6020  ;;  %v10649_v37 = vld [vmem:[#allocation91_spill] sm:$0xff] }
 0x3a3   :  { %v2374_v51 = vmul.f32 %v6017_v6, %v8533_v39  ;;  %5634 = vmatprep.subr.bf16.mxu0 %v10639_v30  ;;  %v3685_v55 = vand.u32 4294901760, %v3684_v5  ;;  %v3804_v24 = vand.u32 4294901760, %v3803_v35  ;;  %v3811_v7 = vand.u32 4294901760, %v3810_v62  ;;  %v10646_v30 = vld [vmem:[#allocation118_spill] sm:$0xff] }
 0x3a4   :  { %3462 = vmatmul.mubr.f32.vlgmr.msra.gmra.mrb[24].mxu1 %v10640_v59  ;;  %v10642_v53 = vand.u32 4294901760, %v8978_v27  ;;  %v10643_v12 = vand.u32 4294901760, %v8983_v47  ;;  %v10644_v39 = vand.u32 4294901760, %v8988_v49  ;;  %v2325_v28 = vadd.f32 1.0, %v6019_v1  ;;  %v10651_v1 = vld [vmem:[#allocation93_spill] sm:$0xff] }
 0x3a5   :  { %3467 = vmatprep.mubr.f32.mxu1 %v10641_v42  ;;  %5708 = vmatpush3.bf16.msra.mxu1 %v8882_v21  ;;  %6030 = vpow2.f32 %v4566_v34  ;;  %v10645_v5 = vand.u32 4294901760, %v8993_v57  ;;  %v3705_v21 = vsub.f32 %v9004_v4, %v9904_v46  ;;  %v2330_v62 = vadd.f32 1.0, %v6021_v10  ;;  %v6023_v46 = vpop.eup %6022 }
 0x3a6   :  { %v3691_v3 = vsub.f32 %v8978_v27, %v10642_v53  ;;  %v3698_v8 = vsub.f32 %v8983_v47, %v10643_v12  ;;  %v3817_v6 = vsub.f32 %v8988_v49, %v10644_v39  ;;  %5710 = vmatprep.subr.bf16.mxu1 %v5709_v18  ;;  %5636 = vmatpush3.bf16.msra.mxu0 %v10646_v30  ;;  %v10647_v53 = vld [vmem:[#allocation88_spill] sm:$0xff]  ;;  %v10650_v47 = vand.u32 4294901760, %v10649_v37  ;;  %v10656_v30 = vld [vmem:[#allocation119_spill] sm:$0xff] }
 0x3a7   :  { %v3824_v35 = vsub.f32 %v8993_v57, %v10645_v5  ;;  %v10648_v12 = vand.u32 4294901760, %v10647_v53  ;;  %v10652_v34 = vand.u32 4294901760, %v10651_v1  ;;  %v10653_v18 = vld [vmem:[#allocation92_spill] sm:$0xff]  ;;  %v10655_v5 = vand.u32 4294901760, %v9014_v14  ;;  %5638 = vmatprep.subr.bf16.mxu0 %v10656_v30  ;;  %v10657_v53 = vld [vmem:[#allocation27_spill] sm:$0xff] }
 0x3a8   :  { %v10654_v39 = vand.u32 4294901760, %v10653_v18  ;;  %v9078_v10 = vand.u32 4294901760, %v2374_v51  ;;  %3469 = vmatmul.mubr.f32.gmra.mrb[26].mxu1 %v10657_v53  ;;  %v5715_v37 = vpack.c.bf16 %v3685_v55, %v3678_v41  ;;  %v6025_v18 = vpop.eup %6024  ;;  %v10661_v4 = vand.u32 4294901760, %v8586_v40 }
 0x3a9   :  { %v9067_v27 = vpack.c.bf16 %v10650_v47, %v10648_v12  ;;  %v3712_v57 = vsub.f32 %v9014_v14, %v10655_v5  ;;  %v10658_v47 = vand.u32 4294901760, %v8488_v36  ;;  %v10659_v12 = vand.u32 4294901760, %v8492_v23  ;;  %5712 = vmatpush3.bf16.msra.mxu1 %v5711_v15 }
 0x3aa   :  { %v9073_v49 = vpack.c.bf16 %v10654_v39, %v10652_v34  ;;  %v5717_v34 = vpack.c.bf16 %v3811_v7, %v3804_v24  ;;  %v10660_v39 = vld [vmem:[#allocation89_spill] sm:$0xff]  ;;  %v3692_v5 = vand.u32 4294901760, %v3691_v3  ;;  %v3699_v14 = vand.u32 4294901760, %v3698_v8  ;;  %5714 = vmatprep.subr.bf16.mxu1 %v5713_v11  ;;  %v10663_v7 = vld [vmem:[#allocation120_spill] sm:$0xff] }
 0x3ab   :  { %v9086_v1 = vpack.c.bf16 %v10659_v12, %v10658_v47  ;;  %3474 = vmatprep.mubr.f32.mxu1 %v10660_v39  ;;  %v3831_v30 = vsub.f32 %v8586_v40, %v10661_v4  ;;  %v10662_v50 = vand.u32 4294901760, %v8591_v25  ;;  %6032 = vrcp.f32 %v2325_v28  ;;  %5640 = vmatpush3.bf16.msra.mxu0 %v10663_v7  ;;  %v6027_v47 = vpop.eup %6026 }
 0x3ac   :  { %v3818_v36 = vand.u32 4294901760, %v3817_v6  ;;  %v3825_v23 = vand.u32 4294901760, %v3824_v35  ;;  %v3706_v55 = vand.u32 4294901760, %v3705_v21  ;;  %v2329_v24 = vadd.f32 1.0, %v6023_v46  ;;  %5674 = vmatprep.subr.bf16.mxu0 %v9067_v27  ;;  %v6029_v35 = vpop.eup %6028  ;;  %v10669_v21 = vld [vmem:[#allocation24_spill] sm:$0xff] }
 0x3ad   :  { %v3838_v41 = vsub.f32 %v8591_v25, %v10662_v50  ;;  %6034 = vrcp.f32 %v2330_v62  ;;  %v3713_v15 = vand.u32 4294901760, %v3712_v57  ;;  %v10664_v3 = vand.u32 4294901760, %v8596_v29  ;;  %v10665_v50 = vld [vmem:[#allocation86_spill] sm:$0xff]  ;;  %5716 = vmatpush3.bf16.msra.mxu1 %v5715_v37 }
 0x3ae   :  { %v9100_v4 = vsub.f32 %v2374_v51, %v9078_v10  ;;  %v2334_v12 = vadd.f32 1.0, %v6025_v18  ;;  %3476 = vmatmul.mubr.f32.gmra.mrb[28].mxu1 %v10665_v50  ;;  %v10666_v11 = vand.u32 4294901760, %v8581_v19  ;;  %v10667_v46 = vand.u32 4294901760, %v8600_v38  ;;  %3337 = vmatmul.mubr.f32.vlgmr.msra.gmra.mrb[24].mxu0 %v10640_v59 }
 0x3af   :  { %v3719_v8 = vsub.f32 %v8596_v29, %v10664_v3  ;;  %v10668_v57 = vand.u32 4294901760, %v8605_v20  ;;  %3481 = vmatprep.mubr.f32.mxu1 %v10669_v21  ;;  %v5719_v51 = vpack.c.bf16 %v3699_v14, %v3692_v5  ;;  %v10670_v62 = vand.u32 4294901760, %v8668_v45  ;;  %5718 = vmatprep.subr.bf16.mxu1 %v5717_v34  ;;  %v6031_v5 = vpop.eup %6030  ;;  %v10674_v34 = vld [vmem:[#allocation90_spill] sm:$0xff] }
 0x3b0   :  { %v9108_v6 = vpack.c.bf16 %v10667_v46, %v10666_v11  ;;  %v10671_v18 = vand.u32 4294901760, %v8701_v9  ;;  %v3832_v19 = vand.u32 4294901760, %v3831_v30  ;;  %v3839_v3 = vand.u32 4294901760, %v3838_v41  ;;  %3342 = vmatprep.mubr.f32.mxu0 %v10641_v42  ;;  %5676 = vmatpush3.bf16.msra.mxu0 %v9073_v49 }
 0x3b1   :  { %v3726_v28 = vsub.f32 %v8605_v20, %v10668_v57  ;;  %v5721_v38 = vpack.c.bf16 %v3825_v23, %v3818_v36  ;;  %v10672_v11 = vand.u32 4294901760, %v8610_v48  ;;  %v10673_v57 = vand.u32 4294901760, %v8615_v60  ;;  %5678 = vmatprep.subr.bf16.mxu0 %v9086_v1  ;;  %5720 = vmatpush3.bf16.msra.mxu1 %v5719_v51 }
 0x3b2   :  { %v9118_v7 = vpack.c.bf16 %v10671_v18, %v10670_v62  ;;  %6036 = vrcp.f32 %v2329_v24  ;;  %v2333_v45 = vadd.f32 1.0, %v6027_v47  ;;  %v5723_v9 = vpack.c.bf16 %v3713_v15, %v3706_v55  ;;  %3483 = vmatmul.mubr.f32.gmra.mrb[30].mxu1 %v10674_v34  ;;  %3344 = vmatmul.mubr.f32.gmra.mrb[26].mxu0 %v10657_v53 }
 0x3b3   :  { %v3845_v46 = vsub.f32 %v8610_v48, %v10672_v11  ;;  %v3852_v14 = vsub.f32 %v8615_v60, %v10673_v57  ;;  %v3720_v37 = vand.u32 4294901760, %v3719_v8  ;;  %6038 = vrcp.f32 %v2334_v12  ;;  %3870 = vmatprep.mubr.f32.mxu1 %v9078_v10  ;;  %5722 = vmatprep.subr.bf16.mxu1 %v5721_v38 }
 0x3b4   :  { %v2338_v59 = vadd.f32 1.0, %v6029_v35  ;;  %v9913_v30 = vand.u32 4294901760, %v9100_v4  ;;  %v3727_v41 = vand.u32 4294901760, %v3726_v28  ;;  %v5725_v36 = vpack.c.bf16 %v3839_v3, %v3832_v19  ;;  %3349 = vmatprep.mubr.f32.mxu0 %v10660_v39  ;;  %5680 = vmatpush3.bf16.msra.mxu0 %v9108_v6 }
 0x3b5   :  { %v10675_v42 = vand.u32 4294901760, %v8620_v13  ;;  %v10676_v55 = vand.u32 4294901760, %v8625_v33  ;;  %v3846_v15 = vand.u32 4294901760, %v3845_v46  ;;  %v3853_v8 = vand.u32 4294901760, %v3852_v14  ;;  %v6033_v19 = vpop.eup %6032  ;;  %5682 = vmatprep.subr.bf16.mxu0 %v9118_v7  ;;  %5724 = vmatpush3.bf16.msra.mxu1 %v5723_v9 }
 0x3b6   :  { %v10677_v47 = vand.u32 4294901760, %v8630_v0  ;;  %v10678_v28 = vand.u32 4294901760, %v8635_v58  ;;  %6040 = vrcp.f32 %v2333_v45  ;;  %v2337_v51 = vadd.f32 1.0, %v6031_v5  ;;  %3351 = vmatmul.mubr.f32.gmra.mrb[28].mxu0 %v10665_v50  ;;  %5726 = vmatprep.subr.bf16.mxu1 %v5725_v36 }
 0x3b7   :  { %v3733_v23 = vsub.f32 %v8620_v13, %v10675_v42  ;;  %v3740_v24 = vsub.f32 %v8625_v33, %v10676_v55  ;;  %v10679_v62 = vand.u32 4294901760, %v8827_v63  ;;  %v10680_v53 = vand.u32 4294901760, %v8837_v31  ;;  %v6035_v63 = vpop.eup %6034  ;;  %3356 = vmatprep.mubr.f32.mxu0 %v10669_v21 }
 0x3b8   :  { %v3859_v12 = vsub.f32 %v8630_v0, %v10677_v47  ;;  %v3866_v35 = vsub.f32 %v8635_v58, %v10678_v28  ;;  %6042 = vrcp.f32 %v2338_v59  ;;  %v10681_v3 = vand.u32 4294901760, %v8855_v26  ;;  %v10692_v28 = vld [vmem:[#allocation108_spill] sm:$0xff] }
 0x3b9   :  { %v9152_v18 = vpack.c.bf16 %v10680_v53, %v10679_v62  ;;  %v10682_v38 = vand.u32 4294901760, %v8857_v2  ;;  %v3587_v39 = vsub.f32 %v9100_v4, %v9913_v30  ;;  %v5727_v46 = vpack.c.bf16 %v3727_v41, %v3720_v37 }
 0x3ba   :  { %v3734_v31 = vand.u32 4294901760, %v3733_v23  ;;  %v3741_v57 = vand.u32 4294901760, %v3740_v24  ;;  %v10683_v14 = vand.u32 4294901760, %v8650_v22  ;;  %v10684_v5 = vand.u32 4294901760, %v8655_v52  ;;  %3358 = vmatmul.mubr.f32.gmra.mrb[30].mxu0 %v10674_v34  ;;  %v10695_v34 = vld [vmem:[#allocation36_spill] sm:$0xff] }
 0x3bb   :  { %v9159_v11 = vpack.c.bf16 %v10682_v38, %v10681_v3  ;;  %v5729_v2 = vpack.c.bf16 %v3853_v8, %v3846_v15  ;;  %v3860_v59 = vand.u32 4294901760, %v3859_v12  ;;  %v3867_v42 = vand.u32 4294901760, %v3866_v35  ;;  %5684 = vmatpush3.bf16.msra.mxu0 %v9152_v18  ;;  %5728 = vmatpush3.bf16.msra.mxu1 %v5727_v46 }
 0x3bc   :  { %v3747_v45 = vsub.f32 %v8650_v22, %v10683_v14  ;;  %v3754_v26 = vsub.f32 %v8655_v52, %v10684_v5  ;;  %v2373_v37 = vmul.f32 %v6033_v19, %v8841_v61  ;;  %6044 = vrcp.f32 %v2337_v51  ;;  %v6037_v24 = vpop.eup %6036  ;;  %v10693_v51 = vld [vmem:[#allocation29_spill] sm:$0xff]  ;;  %v10701_v14 = vld [vmem:[#allocation106_spill] sm:$0xff] }
 0x3bd   :  { %v10685_v9 = vand.u32 4294901760, %v8896_v54  ;;  %v10686_v41 = vand.u32 4294901760, %v8911_v44  ;;  %v2378_v55 = vmul.f32 %v6035_v63, %v8861_v32  ;;  %5686 = vmatprep.subr.bf16.mxu0 %v9159_v11  ;;  %v10687_v50 = vand.u32 4294901760, %v8913_v43  ;;  %v6039_v47 = vpop.eup %6038  ;;  %5730 = vmatprep.subr.bf16.mxu1 %v5729_v2  ;;  %v10704_v2 = vld [vmem:[#allocation42_spill] sm:$0xff] }
 0x3be   :  { %v10688_v36 = vand.u32 4294901760, %v8915_v56  ;;  %v3588_v21 = vand.u32 4294901760, %v3587_v39  ;;  %v5731_v15 = vpack.c.bf16 %v3741_v57, %v3734_v31  ;;  %v3748_v8 = vand.u32 4294901760, %v3747_v45  ;;  %v10698_v39 = vld [vmem:[#allocation39_spill] sm:$0xff] }
 0x3bf   :  { %v9178_v23 = vpack.c.bf16 %v10686_v41, %v10685_v9  ;;  %v3755_v54 = vand.u32 4294901760, %v3754_v26  ;;  %v5733_v44 = vpack.c.bf16 %v3867_v42, %v3860_v59  ;;  %v9189_v32 = vand.u32 4294901760, %v2373_v37  ;;  %v10699_v31 = vld [vmem:[#allocation103_spill] sm:$0xff]  ;;  %v10705_v42 = vld [vmem:[#allocation74_spill] sm:$0xff] }
 0x3c0   :  { %v9186_v61 = vpack.c.bf16 %v10688_v36, %v10687_v50  ;;  %3589 = vmatprep.mubr.f32.mxu0 %v3588_v21  ;;  %v10690_v56 = vand.u32 4294901760, %v8932_v16  ;;  %v10691_v43 = vand.u32 4294901760, %v8946_v17  ;;  %v2377_v35 = vmul.f32 %v6037_v24, %v10692_v28  ;;  %v6041_v3 = vpop.eup %6040  ;;  %5732 = vmatpush3.bf16.msra.mxu1 %v5731_v15  ;;  %v10707_v41 = vld [vmem:[#allocation75_spill] sm:$0xff] }
 0x3c1   :  { %10689 = vst [vmem:[#allocation50_spill] sm:$0xff] %v9189_v32  ;;  %5688 = vmatpush3.bf16.msra.mxu0 %v9178_v23  ;;  %v10694_v62 = vand.u32 4294901760, %v10693_v51  ;;  %v10696_v53 = vand.u32 4294901760, %v10695_v34  ;;  %v9206_v38 = vand.u32 4294901760, %v2378_v55  ;;  %v2382_v46 = vmul.f32 %v6039_v47, %v10698_v39  ;;  %5734 = vmatprep.subr.bf16.mxu1 %v5733_v44  ;;  %v10710_v15 = vld [vmem:[#allocation43_spill] sm:$0xff]  ;;  %v10711_v47 = vld [vmem:[#allocation64_spill] sm:$0xff] }
 0x3c2   :  { %v9196_v12 = vpack.c.bf16 %v10691_v43, %v10690_v56  ;;  %5690 = vmatprep.subr.bf16.mxu0 %v9186_v61  ;;  %v5735_v16 = vpack.c.bf16 %v3755_v54, %v3748_v8  ;;  %v6043_v17 = vpop.eup %6042  ;;  %v9210_v63 = vsub.f32 %v2373_v37, %v9189_v32  ;;  %v10700_v57 = vand.u32 4294901760, %v10699_v31  ;;  %v10713_v56 = vld [vmem:[#allocation76_spill] sm:$0xff]  ;;  %v10719_v39 = vld [vmem:[#allocation78_spill] sm:$0xff] }
 0x3c3   :  { %v9204_v19 = vpack.c.bf16 %v10696_v53, %v10694_v62  ;;  %10697 = vst [vmem:[#allocation51_spill] sm:$0xff] %v9206_v38  ;;  %v10702_v45 = vand.u32 4294901760, %v10701_v14  ;;  %v9219_v26 = vand.u32 4294901760, %v2377_v35  ;;  %v2381_v59 = vmul.f32 %v6041_v3, %v10704_v2  ;;  %v10716_v62 = vld [vmem:[#allocation47_spill] sm:$0xff]  ;;  %v10717_v53 = vld [vmem:[#allocation77_spill] sm:$0xff] }
 0x3c4   :  { %v10706_v9 = vand.u32 4294901760, %v10705_v42  ;;  %v10708_v50 = vand.u32 4294901760, %v10707_v41  ;;  %v9230_v24 = vsub.f32 %v2378_v55, %v9206_v38  ;;  %v9232_v21 = vand.u32 4294901760, %v2382_v46  ;;  %5736 = vmatpush3.bf16.msra.mxu1 %v5735_v16 }
 0x3c5   :  { %5692 = vmatpush3.bf16.msra.mxu0 %v9196_v12  ;;  %v9217_v5 = vpack.c.bf16 %v10702_v45, %v10700_v57  ;;  %10703 = vst [vmem:[#allocation60_spill] sm:$0xff] %v9219_v26  ;;  %v2386_v8 = vmul.f32 %v6043_v17, %v10710_v15  ;;  %5770 = vmatprep.subr.bf16.mxu1 %v9067_v27  ;;  %v9912_v54 = vand.u32 4294901760, %v9210_v63  ;;  %v10712_v44 = vand.u32 4294901760, %v10711_v47  ;;  %v10722_v45 = vld [vmem:[#allocation79_spill] sm:$0xff]  ;;  %v10728_v15 = vld [vmem:[#allocation98_spill] sm:$0xff] }
 0x3c6   :  { %5694 = vmatprep.subr.bf16.mxu0 %v9204_v19  ;;  %v9227_v37 = vpack.c.bf16 %v10708_v50, %v10706_v9  ;;  %v6045_v36 = vpop.eup %6044  ;;  %10709 = vst [vmem:[#allocation61_spill] sm:$0xff] %v9232_v21  ;;  %v10714_v43 = vand.u32 4294901760, %v10713_v56  ;;  %v9245_v55 = vsub.f32 %v2377_v35, %v9219_v26  ;;  %v9247_v51 = vand.u32 4294901760, %v2381_v59 }
 0x3c7   :  { %v2385_v34 = vmul.f32 %v6045_v36, %v10716_v62  ;;  %3872 = vmatmul.mubr.f32.vlgmr.msra.gmra.mrb[32].mxu1 %v9189_v32  ;;  %v10718_v3 = vand.u32 4294901760, %v10717_v53  ;;  %v10720_v16 = vand.u32 4294901760, %v10719_v39  ;;  %v9259_v31 = vsub.f32 %v2382_v46, %v9232_v21  ;;  %v10724_v46 = vld [vmem:[#allocation80_spill] sm:$0xff]  ;;  %v10727_v36 = vld [vmem:[#allocation99_spill] sm:$0xff]  ;;  %v10729_v53 = vld [vmem:[#allocation26_spill] sm:$0xff] }
 0x3c8   :  { %v9242_v28 = vpack.c.bf16 %v10714_v43, %v10712_v44  ;;  %10715 = vst [vmem:[#allocation62_spill] sm:$0xff] %v9247_v51  ;;  %v9261_v57 = vand.u32 4294901760, %v2386_v8  ;;  %3877 = vmatprep.mubr.f32.mxu1 %v9206_v38  ;;  %5772 = vmatpush3.bf16.msra.mxu1 %v9073_v49  ;;  %v9911_v35 = vand.u32 4294901760, %v9230_v24  ;;  %v3593_v14 = vsub.f32 %v9210_v63, %v9912_v54 }
 0x3c9   :  { %5696 = vmatpush3.bf16.msra.mxu0 %v9217_v5  ;;  %v9256_v17 = vpack.c.bf16 %v10720_v16, %v10718_v3  ;;  %5774 = vmatprep.subr.bf16.mxu1 %v9086_v1  ;;  %v10723_v2 = vand.u32 4294901760, %v10722_v45  ;;  %v10725_v42 = vand.u32 4294901760, %v10724_v46  ;;  %v9278_v41 = vsub.f32 %v2381_v59, %v9247_v51  ;;  %v10730_v3 = vld [vmem:[#allocation63_spill] sm:$0xff]  ;;  %v10731_v45 = vld [vmem:[#allocation81_spill] sm:$0xff] }
 0x3ca   :  { %5698 = vmatprep.subr.bf16.mxu0 %v9227_v37  ;;  %10721 = vst [vmem:[#allocation70_spill] sm:$0xff] %v9261_v57  ;;  %v9280_v50 = vand.u32 4294901760, %v2385_v34  ;;  %v5737_v47 = vpack.c.bf16 %v10728_v15, %v10727_v36  ;;  %v9910_v44 = vand.u32 4294901760, %v9245_v55  ;;  %v9288_v56 = vsub.f32 %v2386_v8, %v9261_v57 }
 0x3cb   :  { %v9275_v9 = vpack.c.bf16 %v10725_v42, %v10723_v2  ;;  %3879 = vmatmul.mubr.f32.gmra.mrb[34].mxu1 %v9219_v26  ;;  %v3602_v59 = vsub.f32 %v9230_v24, %v9911_v35  ;;  %v9916_v43 = vand.u32 4294901760, %v9259_v31  ;;  %v3594_v62 = vand.u32 4294901760, %v3593_v14  ;;  %v10732_v2 = vld [vmem:[#allocation96_spill] sm:$0xff]  ;;  %v10734_v35 = vld [vmem:[#allocation57_spill] sm:$0xff] }
 0x3cc   :  { %10726 = vst [vmem:[#allocation71_spill] sm:$0xff] %v9280_v50  ;;  %3884 = vmatprep.mubr.f32.mxu1 %v9232_v21  ;;  %5776 = vmatpush3.bf16.msra.mxu1 %v9108_v6  ;;  %v5739_v39 = vpack.c.bf16 %v10730_v3, %v10729_v53  ;;  %v9301_v8 = vsub.f32 %v2385_v34, %v9280_v50  ;;  %v9919_v14 = vand.u32 4294901760, %v9278_v41  ;;  %v10741_v26 = vld [vmem:[#allocation41_spill] sm:$0xff] }
 0x3cd   :  { %5700 = vmatpush3.bf16.msra.mxu0 %v9242_v28  ;;  %5778 = vmatprep.subr.bf16.mxu1 %v9118_v7  ;;  %v3608_v16 = vsub.f32 %v9245_v55, %v9910_v44  ;;  %v5741_v46 = vpack.c.bf16 %v10732_v2, %v10731_v45  ;;  %v3603_v42 = vand.u32 4294901760, %v3602_v59  ;;  %v3617_v34 = vsub.f32 %v9259_v31, %v9916_v43  ;;  %v10733_v44 = vld [vmem:[#allocation25_spill] sm:$0xff] }
 0x3ce   :  { %5702 = vmatprep.subr.bf16.mxu0 %v9256_v17  ;;  %v5743_v54 = vpack.c.bf16 %v10734_v35, %v10733_v44  ;;  %v3623_v59 = vsub.f32 %v9278_v41, %v9919_v14  ;;  %v10736_v43 = vld [vmem:[#allocation37_spill] sm:$0xff]  ;;  %v10740_v14 = vld [vmem:[#allocation40_spill] sm:$0xff] }
 0x3cf   :  { %3886 = vmatmul.mubr.f32.gmra.mrb[36].mxu1 %v9247_v51  ;;  %v3609_v30 = vand.u32 4294901760, %v3608_v16  ;;  %v10738_v16 = vand.u32 4294901760, %v9288_v56 }
 0x3d0   :  { %3891 = vmatprep.mubr.f32.mxu1 %v9261_v57  ;;  %5780 = vmatpush3.bf16.msra.mxu1 %v9152_v18  ;;  %v10735_v57 = vld [vmem:[#allocation107_spill] sm:$0xff]  ;;  %v3624_v21 = vand.u32 4294901760, %v3623_v59 }
 0x3d1   :  { %5704 = vmatpush3.bf16.msra.mxu0 %v9275_v9  ;;  %5782 = vmatprep.subr.bf16.mxu1 %v9159_v11  ;;  %v5745_v51 = vpack.c.bf16 %v10736_v43, %v10735_v57 }
 0x3d2   :  { %5738 = vmatprep.subr.bf16.mxu0 %v5737_v47  ;;  %v3618_v47 = vand.u32 4294901760, %v3617_v34 }
 0x3d3   :  { %3893 = vmatmul.mubr.f32.gmra.mrb[38].mxu1 %v9280_v50 }
 0x3d4   :  { %3595 = vmatmul.mubr.f32.vlgmr.msra.gmra.mrb[32].mxu0 %v3594_v62  ;;  %v3637_v62 = vand.u32 4294901760, %v9301_v8  ;;  %5784 = vmatpush3.bf16.msra.mxu1 %v9178_v23 }
 0x3d5   :  { %3604 = vmatprep.mubr.f32.mxu0 %v3603_v42  ;;  %5740 = vmatpush3.bf16.msra.mxu0 %v5739_v39  ;;  %v10737_v39 = vand.u32 4294901760, %v9100_v4  ;;  %v3632_v42 = vsub.f32 %v9288_v56, %v10738_v16  ;;  %v10746_v16 = vld [vmem:[#allocation46_spill] sm:$0xff] }
 0x3d6   :  { %5742 = vmatprep.subr.bf16.mxu0 %v5741_v46  ;;  %5786 = vmatprep.subr.bf16.mxu1 %v9186_v61  ;;  %v10739_v46 = vld [vmem:[#allocation38_spill] sm:$0xff]  ;;  %v3638_v34 = vsub.f32 %v9301_v8, %v3637_v62 }
 0x3d7   :  { %4162 = vmatprep.mubr.f32.mxu1 %v10737_v39  ;;  %v5747_v50 = vpack.c.bf16 %v10740_v14, %v10739_v46  ;;  %v10742_v39 = vld [vmem:[#allocation53_spill] sm:$0xff]  ;;  %v3633_v32 = vand.u32 4294901760, %v3632_v42 }
 0x3d8   :  { %3610 = vmatmul.mubr.f32.gmra.mrb[34].mxu0 %v3609_v30  ;;  %v5749_v38 = vpack.c.bf16 %v10742_v39, %v10741_v26  ;;  %5788 = vmatpush3.bf16.msra.mxu1 %v9196_v12  ;;  %v10743_v30 = vld [vmem:[#allocation44_spill] sm:$0xff]  ;;  %v3639_v59 = vand.u32 4294901760, %v3638_v34  ;;  %v10748_v42 = vld [vmem:[#allocation49_spill] sm:$0xff]  ;;  %v5761_v34 = vpack.c.bf16 %v8615_v60, %v8610_v48  ;;  %v5767_v48 = vpack.c.bf16 %v8655_v52, %v8650_v22 }
 0x3d9   :  { %3619 = vmatprep.mubr.f32.mxu0 %v3618_v47  ;;  %5744 = vmatpush3.bf16.msra.mxu0 %v5743_v54  ;;  %v10744_v54 = vld [vmem:[#allocation45_spill] sm:$0xff]  ;;  %v10753_v60 = vand.u32 4294901760, %v10728_v15  ;;  %v10756_v22 = vand.u32 4294901760, %v10730_v3  ;;  %v10760_v15 = vand.u32 4294901760, %v9288_v56  ;;  %v10763_v3 = vand.u32 4294901760, %v10735_v57 }
 0x3da   :  { %5746 = vmatprep.subr.bf16.mxu0 %v5745_v51  ;;  %5790 = vmatprep.subr.bf16.mxu1 %v9204_v19  ;;  %v5751_v47 = vpack.c.bf16 %v10744_v54, %v10743_v30  ;;  %v10745_v51 = vld [vmem:[#allocation59_spill] sm:$0xff]  ;;  %v10768_v57 = vand.u32 4294901760, %v10741_v26 }
 0x3db   :  { %v5753_v14 = vpack.c.bf16 %v10746_v16, %v10745_v51  ;;  %v10772_v26 = vand.u32 4294901760, %v10745_v51 }
 0x3dc   :  { %3625 = vmatmul.mubr.f32.gmra.mrb[36].mxu0 %v3624_v21  ;;  %5792 = vmatpush3.bf16.msra.mxu1 %v9217_v5  ;;  %v10747_v21 = vld [vmem:[#allocation48_spill] sm:$0xff] }
 0x3dd   :  { %3634 = vmatprep.mubr.f32.mxu0 %v3633_v32  ;;  %5748 = vmatpush3.bf16.msra.mxu0 %v5747_v50  ;;  %v5755_v32 = vpack.c.bf16 %v10748_v42, %v10747_v21  ;;  %v5757_v50 = vpack.c.bf16 %v8591_v25, %v8586_v40  ;;  %v5763_v25 = vpack.c.bf16 %v8625_v33, %v8620_v13  ;;  %v10749_v40 = vand.u32 4294901760, %v9210_v63 }
 0x3de   :  { %5750 = vmatprep.subr.bf16.mxu0 %v5749_v38  ;;  %5794 = vmatprep.subr.bf16.mxu1 %v9227_v37  ;;  %v5759_v38 = vpack.c.bf16 %v8605_v20, %v8596_v29  ;;  %v10750_v20 = vand.u32 4294901760, %v9230_v24  ;;  %v10751_v29 = vand.u32 4294901760, %v9245_v55  ;;  %v10752_v13 = vand.u32 4294901760, %v10727_v36 }
 0x3e0   :  { %3640 = vmatmul.mubr.f32.gmra.mrb[38].mxu0 %v3639_v59  ;;  %5796 = vmatpush3.bf16.msra.mxu1 %v9242_v28  ;;  %v5801_v33 = vpack.c.bf16 %v10753_v60, %v10752_v13 }
 0x3e1   :  { %5752 = vmatpush3.bf16.msra.mxu0 %v5751_v47  ;;  %4028 = vmatprep.mubr.f32.mxu0 %v9100_v4  ;;  %v5765_v4 = vpack.c.bf16 %v8635_v58, %v8630_v0  ;;  %v10754_v0 = vand.u32 4294901760, %v9259_v31  ;;  %v10755_v58 = vand.u32 4294901760, %v10729_v53 }
 0x3e2   :  { %5754 = vmatprep.subr.bf16.mxu0 %v5753_v14  ;;  %5798 = vmatprep.subr.bf16.mxu1 %v9256_v17  ;;  %v10781_v14 = vld [vmem:[#allocation85_spill] sm:$0xff] }
 0x3e3   :  { %v5803_v52 = vpack.c.bf16 %v10756_v22, %v10755_v58 }
 0x3e4   :  { %5800 = vmatpush3.bf16.msra.mxu1 %v9275_v9 }
 0x3e5   :  { %5756 = vmatpush3.bf16.msra.mxu0 %v5755_v32  ;;  %5834 = vmatprep.subr.bf16.mxu1 %v9067_v27  ;;  %v10757_v27 = vand.u32 4294901760, %v9278_v41 }
 0x3e6   :  { %5758 = vmatprep.subr.bf16.mxu0 %v5757_v50 }
 0x3e7   :  { %4166 = vmatmul.mubr.f32.vlgmr.msra.gmra.mrb[40].mxu1 %v10749_v40 }
 0x3e8   :  { %4173 = vmatprep.mubr.f32.mxu1 %v10750_v20  ;;  %5836 = vmatpush3.bf16.msra.mxu1 %v9073_v49  ;;  %v10758_v49 = vand.u32 4294901760, %v10731_v45 }
 0x3e9   :  { %5760 = vmatpush3.bf16.msra.mxu0 %v5759_v38  ;;  %5838 = vmatprep.subr.bf16.mxu1 %v9086_v1  ;;  %v10759_v1 = vand.u32 4294901760, %v10732_v2 }
 0x3ea   :  { %5762 = vmatprep.subr.bf16.mxu0 %v5761_v34  ;;  %v4568_v34 = vld [vmem:[#allocation13] ss:$0 sm:$0xff] }
 0x3eb   :  { %4177 = vmatmul.mubr.f32.gmra.mrb[42].mxu1 %v10751_v29  ;;  %v5805_v36 = vpack.c.bf16 %v10759_v1, %v10758_v49 }
 0x3ec   :  { %4184 = vmatprep.mubr.f32.mxu1 %v10754_v0  ;;  %5840 = vmatpush3.bf16.msra.mxu1 %v9108_v6  ;;  %v10761_v6 = vand.u32 4294901760, %v10733_v44  ;;  %v10769_v44 = vand.u32 4294901760, %v10742_v39  ;;  %v10786_v39 = vld [vmem:[#allocation62_spill] sm:$0xff] }
 0x3ed   :  { %5764 = vmatpush3.bf16.msra.mxu0 %v5763_v25  ;;  %5842 = vmatprep.subr.bf16.mxu1 %v9118_v7  ;;  %v10762_v7 = vand.u32 4294901760, %v10734_v35 }
 0x3ee   :  { %5766 = vmatprep.subr.bf16.mxu0 %v5765_v4 }
 0x3ef   :  { %4188 = vmatmul.mubr.f32.gmra.mrb[44].mxu1 %v10757_v27  ;;  %v5807_v53 = vpack.c.bf16 %v10762_v7, %v10761_v6 }
 0x3f0   :  { %4195 = vmatprep.mubr.f32.mxu1 %v10760_v15  ;;  %5844 = vmatpush3.bf16.msra.mxu1 %v9152_v18  ;;  %v10764_v18 = vand.u32 4294901760, %v10736_v43  ;;  %v10773_v43 = vand.u32 4294901760, %v10746_v16 }
 0x3f1   :  { %5768 = vmatpush3.bf16.msra.mxu0 %v5767_v48  ;;  %5846 = vmatprep.subr.bf16.mxu1 %v9159_v11  ;;  %v10765_v11 = vand.u32 4294901760, %v10739_v46  ;;  %v10785_v46 = vld [vmem:[#allocation54_spill] sm:$0xff] }
 0x3f2   :  { %5802 = vmatprep.subr.bf16.mxu0 %v5801_v33  ;;  %v5809_v45 = vpack.c.bf16 %v10764_v18, %v10763_v3  ;;  %v5817_v2 = vpack.c.bf16 %v10773_v43, %v10772_v26 }
 0x3f3   :  { %4199 = vmatmul.mubr.f32.gmra.mrb[46].mxu1 %v3637_v62  ;;  %v10782_v62 = vld [vmem:[#allocation87_spill] sm:$0xff] }
 0x3f4   :  { %4031 = vmatmul.mubr.f32.vlgmr.msra.gmra.mrb[40].mxu0 %v9210_v63  ;;  %5848 = vmatpush3.bf16.msra.mxu1 %v9178_v23  ;;  %v10766_v63 = vld [vmem:[#allocation40_spill] sm:$0xff]  ;;  %v5813_v23 = vpack.c.bf16 %v10769_v44, %v10768_v57 }
 0x3f5   :  { %4037 = vmatprep.mubr.f32.mxu0 %v9230_v24  ;;  %5804 = vmatpush3.bf16.msra.mxu0 %v5803_v52  ;;  %v10767_v24 = vand.u32 4294901760, %v10766_v63 }
 0x3f6   :  { %5806 = vmatprep.subr.bf16.mxu0 %v5805_v36  ;;  %4490 = vmatprep.mubr.f32.mxu1 %v9078_v10 }
 0x3f7   :  { %5850 = vmatprep.subr.bf16.mxu1 %v9186_v61  ;;  %v5811_v35 = vpack.c.bf16 %v10767_v24, %v10765_v11  ;;  %v10770_v61 = vand.u32 4294901760, %v10743_v30  ;;  %v10788_v30 = vld [vmem:[#allocation71_spill] sm:$0xff] }
 0x3f8   :  { %4040 = vmatmul.mubr.f32.gmra.mrb[42].mxu0 %v9245_v55  ;;  %5852 = vmatpush3.bf16.msra.mxu1 %v9196_v12  ;;  %v10771_v55 = vand.u32 4294901760, %v10744_v54  ;;  %v10774_v12 = vand.u32 4294901760, %v10747_v21 }
 0x3f9   :  { %4046 = vmatprep.mubr.f32.mxu0 %v9259_v31  ;;  %5808 = vmatpush3.bf16.msra.mxu0 %v5807_v53 }
 0x3fa   :  { %5810 = vmatprep.subr.bf16.mxu0 %v5809_v45  ;;  %5854 = vmatprep.subr.bf16.mxu1 %v9204_v19  ;;  %v5815_v31 = vpack.c.bf16 %v10771_v55, %v10770_v61  ;;  %v10775_v19 = vand.u32 4294901760, %v10748_v42 }
 0x3fc   :  { %4049 = vmatmul.mubr.f32.gmra.mrb[44].mxu0 %v9278_v41  ;;  %5856 = vmatpush3.bf16.msra.mxu1 %v9217_v5  ;;  %v5819_v41 = vpack.c.bf16 %v10775_v19, %v10774_v12  ;;  %v10777_v5 = vld [vmem:[#allocation83_spill] sm:$0xff] }
 0x3fd   :  { %4055 = vmatprep.mubr.f32.mxu0 %v9288_v56  ;;  %5812 = vmatpush3.bf16.msra.mxu0 %v5811_v35  ;;  %v10776_v56 = vld [vmem:[#allocation82_spill] sm:$0xff] }
 0x3fe   :  { %5814 = vmatprep.subr.bf16.mxu0 %v5813_v23  ;;  %5858 = vmatprep.subr.bf16.mxu1 %v9227_v37  ;;  %v10778_v37 = vld [vmem:[#allocation84_spill] sm:$0xff] }
 0x400   :  { %4058 = vmatmul.mubr.f32.gmra.mrb[46].mxu0 %v9301_v8  ;;  %5860 = vmatpush3.bf16.msra.mxu1 %v9242_v28  ;;  %v10780_v8 = vld [vmem:[#allocation51_spill] sm:$0xff]  ;;  %v10783_v28 = vld [vmem:[#allocation60_spill] sm:$0xff] }
 0x401   :  { %5816 = vmatpush3.bf16.msra.mxu0 %v5815_v31  ;;  %4365 = vmatprep.mubr.f32.mxu0 %v9078_v10  ;;  %v10779_v10 = vld [vmem:[#allocation50_spill] sm:$0xff] }
 0x402   :  { %5818 = vmatprep.subr.bf16.mxu0 %v5817_v2  ;;  %5862 = vmatprep.subr.bf16.mxu1 %v9256_v17  ;;  %v10784_v17 = vld [vmem:[#allocation61_spill] sm:$0xff] }
 0x404   :  { %5864 = vmatpush3.bf16.msra.mxu1 %v9275_v9  ;;  %v10787_v9 = vld [vmem:[#allocation70_spill] sm:$0xff] }
 0x405   :  { %5820 = vmatpush3.bf16.msra.mxu0 %v5819_v41 }
 0x406   :  { %5822 = vmatprep.subr.bf16.mxu0 %v10776_v56 }
 0x407   :  { %4492 = vmatmul.mubr.f32.vlgmr.msra.gmra.mrb[48].mxu1 %v10779_v10 }
 0x408   :  { %4497 = vmatprep.mubr.f32.mxu1 %v10780_v8 }
 0x409   :  { %5824 = vmatpush3.bf16.msra.mxu0 %v10777_v5 }
 0x40a   :  { %5826 = vmatprep.subr.bf16.mxu0 %v10778_v37 }
 0x40b   :  { %4499 = vmatmul.mubr.f32.gmra.mrb[50].mxu1 %v10783_v28 }
 0x40c   :  { %4504 = vmatprep.mubr.f32.mxu1 %v10784_v17 }
 0x40d   :  { %5828 = vmatpush3.bf16.msra.mxu0 %v10781_v14 }
 0x40e   :  { %5830 = vmatprep.subr.bf16.mxu0 %v10782_v62 }
 0x40f   :  { %4506 = vmatmul.mubr.f32.gmra.mrb[52].mxu1 %v10786_v39 }
 0x410   :  { %4511 = vmatprep.mubr.f32.mxu1 %v10787_v9 }
 0x411   :  { %5832 = vmatpush3.bf16.msra.mxu0 %v10785_v46 }
 0x413   :  { %4513 = vmatmul.mubr.f32.gmra.mrb[54].mxu1 %v10788_v30 }
 0x414   :  { %4367 = vmatmul.mubr.f32.vlgmr.msra.gmra.mrb[48].mxu0 %v10779_v10 }
 0x415   :  { %4372 = vmatprep.mubr.f32.mxu0 %v10780_v8 }
 0x418   :  { %4374 = vmatmul.mubr.f32.gmra.mrb[50].mxu0 %v10783_v28 }
 0x419   :  { %4379 = vmatprep.mubr.f32.mxu0 %v10784_v17 }
 0x41c   :  { %4381 = vmatmul.mubr.f32.gmra.mrb[52].mxu0 %v10786_v39 }
 0x41d   :  { %4386 = vmatprep.mubr.f32.mxu0 %v10787_v9 }
 0x420   :  { %4388 = vmatmul.mubr.f32.gmra.mrb[54].mxu0 %v10788_v30 }
 0x42b   :  { %v4645_v54 = vpop.f32.mrb[8].mxu1 }
 0x42c   :  { %v4646_v47 = vpop.f32.mrb[9].mxu1 }
 0x42d   :  { %v4647_v59 = vadd.f32 %v4646_v47, %v4645_v54 }
 0x42f   :  { %v4648_v51 = vpop.f32.mrb[10].mxu1 }
 0x430   :  { %v4649_v16 = vpop.f32.mrb[11].mxu1 }
 0x431   :  { %v4650_v21 = vadd.f32 %v4649_v16, %v4648_v51 }
 0x433   :  { %v4651_v42 = vpop.f32.mrb[12].mxu1  ;;  %v4601_v38 = vpop.f32.mrb[8].mxu0 }
 0x434   :  { %v4652_v32 = vpop.f32.mrb[13].mxu1  ;;  %v4602_v25 = vpop.f32.mrb[9].mxu0 }
 0x435   :  { %v4653_v50 = vadd.f32 %v4652_v32, %v4651_v42  ;;  %v4603_v40 = vadd.f32 %v4602_v25, %v4601_v38 }
 0x437   :  { %v2567_v4 = vadd.f32 %v4603_v40, %v4568_v34 }
 0x438   :  { %v4604_v20 = vpop.f32.mrb[10].mxu0 }
 0x439   :  { %v4605_v48 = vpop.f32.mrb[11].mxu0  ;;  %v2844_v13 = vadd.f32 %v4647_v59, %v2567_v4 }
 0x43a   :  { %v4606_v29 = vadd.f32 %v4605_v48, %v4604_v20 }
 0x43c   :  { %v2582_v60 = vadd.f32 %v4606_v29, %v4568_v34  ;;  %v4607_v33 = vpop.f32.mrb[12].mxu0 }
 0x43d   :  { %v4608_v0 = vpop.f32.mrb[13].mxu0 }
 0x43e   :  { %v4609_v58 = vadd.f32 %v4608_v0, %v4607_v33  ;;  %v2851_v22 = vadd.f32 %v4650_v21, %v2582_v60 }
 0x440   :  { %v2597_v52 = vadd.f32 %v4609_v58, %v4568_v34 }
 0x441   :  { %v4654_v27 = vpop.f32.mrb[14].mxu1 }
 0x442   :  { %v4655_v49 = vpop.f32.mrb[15].mxu1  ;;  %v2858_v1 = vadd.f32 %v4653_v50, %v2597_v52 }
 0x443   :  { %v4656_v36 = vadd.f32 %v4655_v49, %v4654_v27 }
 0x44a   :  { %v4610_v15 = vpop.f32.mrb[14].mxu0 }
 0x44b   :  { %v4611_v6 = vpop.f32.mrb[15].mxu0 }
 0x44c   :  { %v4612_v7 = vadd.f32 %v4611_v6, %v4610_v15 }
 0x44e   :  { %v2612_v18 = vadd.f32 %v4612_v7, %v4568_v34 }
 0x44f   :  { %v4733_v53 = vpop.f32.mrb[16].mxu1 }
 0x450   :  { %v4734_v3 = vpop.f32.mrb[17].mxu1  ;;  %v2865_v63 = vadd.f32 %v4656_v36, %v2612_v18 }
 0x451   :  { %v4735_v45 = vadd.f32 %v4734_v3, %v4733_v53 }
 0x454   :  { %v4736_v11 = vpop.f32.mrb[18].mxu1 }
 0x455   :  { %v4737_v24 = vpop.f32.mrb[19].mxu1 }
 0x456   :  { %v4738_v35 = vadd.f32 %v4737_v24, %v4736_v11 }
 0x45b   :  { %v4739_v57 = vpop.f32.mrb[20].mxu1 }
 0x45c   :  { %v4740_v44 = vpop.f32.mrb[21].mxu1 }
 0x45d   :  { %v4689_v23 = vpop.f32.mrb[16].mxu0  ;;  %v4741_v61 = vadd.f32 %v4740_v44, %v4739_v57 }
 0x45e   :  { %v4690_v55 = vpop.f32.mrb[17].mxu0 }
 0x45f   :  { %v4691_v31 = vadd.f32 %v4690_v55, %v4689_v23 }
 0x461   :  { %v3003_v2 = vadd.f32 %v4691_v31, %v2844_v13  ;;  %v4692_v12 = vpop.f32.mrb[18].mxu0 }
 0x462   :  { %v4742_v26 = vpop.f32.mrb[22].mxu1  ;;  %v4693_v41 = vpop.f32.mrb[19].mxu0 }
 0x463   :  { %v4743_v43 = vpop.f32.mrb[23].mxu1  ;;  %v4694_v56 = vadd.f32 %v4693_v41, %v4692_v12  ;;  %v3138_v5 = vadd.f32 %v4735_v45, %v3003_v2 }
 0x464   :  { %v4744_v19 = vadd.f32 %v4743_v43, %v4742_v26 }
 0x465   :  { %v3012_v37 = vadd.f32 %v4694_v56, %v2851_v22 }
 0x466   :  { %v4695_v10 = vpop.f32.mrb[20].mxu0 }
 0x467   :  { %v4696_v8 = vpop.f32.mrb[21].mxu0  ;;  %v3149_v62 = vadd.f32 %v4738_v35, %v3012_v37 }
 0x468   :  { %v4697_v14 = vadd.f32 %v4696_v8, %v4695_v10 }
 0x46a   :  { %v3021_v28 = vadd.f32 %v4697_v14, %v2858_v1  ;;  %v4698_v17 = vpop.f32.mrb[22].mxu0 }
 0x46b   :  { %v4699_v46 = vpop.f32.mrb[23].mxu0 }
 0x46c   :  { %v4700_v39 = vadd.f32 %v4699_v46, %v4698_v17  ;;  %v3160_v9 = vadd.f32 %v4741_v61, %v3021_v28 }
 0x46e   :  { %v3030_v30 = vadd.f32 %v4700_v39, %v2865_v63 }
 0x470   :  { %v3171_v54 = vadd.f32 %v4744_v19, %v3030_v30 }
 0x477   :  { %v4821_v47 = vpop.f32.mrb[24].mxu1 }
 0x478   :  { %v4822_v59 = vpop.f32.mrb[25].mxu1 }
 0x479   :  { %v4823_v51 = vadd.f32 %v4822_v59, %v4821_v47 }
 0x47b   :  { %v4824_v16 = vpop.f32.mrb[26].mxu1 }
 0x47c   :  { %v4825_v21 = vpop.f32.mrb[27].mxu1 }
 0x47d   :  { %v4826_v42 = vadd.f32 %v4825_v21, %v4824_v16 }
 0x481   :  { %v4827_v32 = vpop.f32.mrb[28].mxu1  ;;  %v4777_v38 = vpop.f32.mrb[24].mxu0 }
 0x482   :  { %v4828_v50 = vpop.f32.mrb[29].mxu1  ;;  %v4778_v25 = vpop.f32.mrb[25].mxu0 }
 0x483   :  { %v4829_v34 = vadd.f32 %v4828_v50, %v4827_v32  ;;  %v4779_v40 = vadd.f32 %v4778_v25, %v4777_v38 }
 0x485   :  { %v4830_v4 = vpop.f32.mrb[30].mxu1  ;;  %v3339_v48 = vadd.f32 %v4779_v40, %v3138_v5  ;;  %v4780_v29 = vpop.f32.mrb[26].mxu0 }
 0x486   :  { %v4831_v20 = vpop.f32.mrb[31].mxu1  ;;  %v4781_v60 = vpop.f32.mrb[27].mxu0 }
 0x487   :  { %v4832_v13 = vadd.f32 %v4831_v20, %v4830_v4  ;;  %v4782_v33 = vadd.f32 %v4781_v60, %v4780_v29  ;;  %v3464_v0 = vadd.f32 %v4823_v51, %v3339_v48 }
 0x489   :  { %v3346_v58 = vadd.f32 %v4782_v33, %v3149_v62  ;;  %v4783_v22 = vpop.f32.mrb[28].mxu0 }
 0x48a   :  { %v4784_v52 = vpop.f32.mrb[29].mxu0 }
 0x48b   :  { %v4785_v27 = vadd.f32 %v4784_v52, %v4783_v22  ;;  %v3471_v49 = vadd.f32 %v4826_v42, %v3346_v58 }
 0x48d   :  { %v3353_v1 = vadd.f32 %v4785_v27, %v3160_v9  ;;  %v4786_v36 = vpop.f32.mrb[30].mxu0 }
 0x48e   :  { %v4787_v15 = vpop.f32.mrb[31].mxu0 }
 0x48f   :  { %v4788_v6 = vadd.f32 %v4787_v15, %v4786_v36  ;;  %v3478_v7 = vadd.f32 %v4829_v34, %v3353_v1 }
 0x491   :  { %v3360_v53 = vadd.f32 %v4788_v6, %v3171_v54 }
 0x493   :  { %v3485_v3 = vadd.f32 %v4832_v13, %v3360_v53 }
 0x49a   :  { %v4909_v18 = vpop.f32.mrb[32].mxu1 }
 0x49b   :  { %v4910_v45 = vpop.f32.mrb[33].mxu1 }
 0x49c   :  { %v4911_v11 = vadd.f32 %v4910_v45, %v4909_v18 }
 0x49e   :  { %v4912_v63 = vpop.f32.mrb[34].mxu1 }
 0x49f   :  { %v4913_v24 = vpop.f32.mrb[35].mxu1 }
 0x4a0   :  { %v4914_v35 = vadd.f32 %v4913_v24, %v4912_v63 }
 0x4a2   :  { %v4915_v57 = vpop.f32.mrb[36].mxu1 }
 0x4a3   :  { %v4916_v44 = vpop.f32.mrb[37].mxu1 }
 0x4a4   :  { %v4917_v61 = vadd.f32 %v4916_v44, %v4915_v57 }
 0x4a6   :  { %v4918_v26 = vpop.f32.mrb[38].mxu1 }
 0x4a7   :  { %v4865_v23 = vpop.f32.mrb[32].mxu0  ;;  %v4919_v43 = vpop.f32.mrb[39].mxu1 }
 0x4a8   :  { %v4866_v55 = vpop.f32.mrb[33].mxu0  ;;  %v4920_v19 = vadd.f32 %v4919_v43, %v4918_v26 }
 0x4a9   :  { %v4867_v31 = vadd.f32 %v4866_v55, %v4865_v23 }
 0x4ab   :  { %v3597_v2 = vadd.f32 %v4867_v31, %v3464_v0  ;;  %v4868_v12 = vpop.f32.mrb[34].mxu0 }
 0x4ac   :  { %v4869_v41 = vpop.f32.mrb[35].mxu0 }
 0x4ad   :  { %v4870_v56 = vadd.f32 %v4869_v41, %v4868_v12  ;;  %v3874_v5 = vadd.f32 %v4911_v11, %v3597_v2 }
 0x4af   :  { %v3612_v37 = vadd.f32 %v4870_v56, %v3471_v49  ;;  %v4871_v10 = vpop.f32.mrb[36].mxu0 }
 0x4b0   :  { %v4872_v8 = vpop.f32.mrb[37].mxu0 }
 0x4b1   :  { %v4873_v14 = vadd.f32 %v4872_v8, %v4871_v10  ;;  %v3881_v62 = vadd.f32 %v4914_v35, %v3612_v37 }
 0x4b3   :  { %v3627_v28 = vadd.f32 %v4873_v14, %v3478_v7  ;;  %v4874_v17 = vpop.f32.mrb[38].mxu0 }
 0x4b4   :  { %v4875_v46 = vpop.f32.mrb[39].mxu0 }
 0x4b5   :  { %v4876_v39 = vadd.f32 %v4875_v46, %v4874_v17  ;;  %v3888_v9 = vadd.f32 %v4917_v61, %v3627_v28 }
 0x4b7   :  { %v3642_v30 = vadd.f32 %v4876_v39, %v3485_v3 }
 0x4b9   :  { %v3895_v54 = vadd.f32 %v4920_v19, %v3642_v30 }
 0x4ba   :  { %v4997_v47 = vpop.f32.mrb[40].mxu1 }
 0x4bb   :  { %v4998_v59 = vpop.f32.mrb[41].mxu1 }
 0x4bc   :  { %v4999_v51 = vadd.f32 %v4998_v59, %v4997_v47  ;;  %v6047_v47 = vld [vmem:[#allocation2 + $0x8] sm:$0xff] }
 0x4be   :  { %v5000_v16 = vpop.f32.mrb[42].mxu1 }
 0x4bf   :  { %v5001_v21 = vpop.f32.mrb[43].mxu1 }
 0x4c0   :  { %v5002_v42 = vadd.f32 %v5001_v21, %v5000_v16 }
 0x4c2   :  { %v5003_v32 = vpop.f32.mrb[44].mxu1 }
 0x4c3   :  { %v5004_v50 = vpop.f32.mrb[45].mxu1 }
 0x4c4   :  { %v5005_v34 = vadd.f32 %v5004_v50, %v5003_v32  ;;  %v6048_v32 = vld [vmem:[#allocation2 + $0x10] sm:$0xff] }
 0x4c6   :  { %v5006_v4 = vpop.f32.mrb[46].mxu1 }
 0x4c7   :  { %v4953_v38 = vpop.f32.mrb[40].mxu0  ;;  %v5007_v20 = vpop.f32.mrb[47].mxu1 }
 0x4c8   :  { %v4954_v25 = vpop.f32.mrb[41].mxu0  ;;  %v5008_v13 = vadd.f32 %v5007_v20, %v5006_v4 }
 0x4c9   :  { %v4955_v40 = vadd.f32 %v4954_v25, %v4953_v38  ;;  %v6049_v25 = vld [vmem:[#allocation2 + $0x18] sm:$0xff] }
 0x4cb   :  { %v4033_v48 = vadd.f32 %v4955_v40, %v3874_v5  ;;  %v4956_v29 = vpop.f32.mrb[42].mxu0 }
 0x4cc   :  { %v4957_v60 = vpop.f32.mrb[43].mxu0 }
 0x4cd   :  { %v4958_v33 = vadd.f32 %v4957_v60, %v4956_v29  ;;  %v4168_v0 = vadd.f32 %v4999_v51, %v4033_v48 }
 0x4cf   :  { %v4042_v58 = vadd.f32 %v4958_v33, %v3881_v62  ;;  %v4959_v22 = vpop.f32.mrb[44].mxu0  ;;  %v6046_v62 = vld [vmem:[#allocation2] sm:$0xff] }
 0x4d0   :  { %v4960_v52 = vpop.f32.mrb[45].mxu0 }
 0x4d1   :  { %v4961_v27 = vadd.f32 %v4960_v52, %v4959_v22  ;;  %v4179_v49 = vadd.f32 %v5002_v42, %v4042_v58 }
 0x4d3   :  { %v4051_v1 = vadd.f32 %v4961_v27, %v3888_v9  ;;  %v4962_v36 = vpop.f32.mrb[46].mxu0 }
 0x4d4   :  { %v4963_v15 = vpop.f32.mrb[47].mxu0 }
 0x4d5   :  { %v4964_v6 = vadd.f32 %v4963_v15, %v4962_v36  ;;  %v4190_v7 = vadd.f32 %v5005_v34, %v4051_v1 }
 0x4d7   :  { %v4060_v53 = vadd.f32 %v4964_v6, %v3895_v54 }
 0x4d9   :  { %v4201_v3 = vadd.f32 %v5008_v13, %v4060_v53 }
 0x4da   :  { %v5085_v18 = vpop.f32.mrb[48].mxu1 }
 0x4db   :  { %v5086_v45 = vpop.f32.mrb[49].mxu1 }
 0x4dc   :  { %v5087_v11 = vadd.f32 %v5086_v45, %v5085_v18 }
 0x4de   :  { %v5088_v63 = vpop.f32.mrb[50].mxu1 }
 0x4df   :  { %v5089_v24 = vpop.f32.mrb[51].mxu1 }
 0x4e0   :  { %v5090_v35 = vadd.f32 %v5089_v24, %v5088_v63 }
 0x4e2   :  { %v5091_v57 = vpop.f32.mrb[52].mxu1 }
 0x4e3   :  { %v5092_v44 = vpop.f32.mrb[53].mxu1 }
 0x4e4   :  { %v5093_v61 = vadd.f32 %v5092_v44, %v5091_v57 }
 0x4e6   :  { %v5094_v26 = vpop.f32.mrb[54].mxu1 }
 0x4e7   :  { %v5041_v23 = vpop.f32.mrb[48].mxu0  ;;  %v5095_v43 = vpop.f32.mrb[55].mxu1 }
 0x4e8   :  { %v5042_v55 = vpop.f32.mrb[49].mxu0  ;;  %v5096_v19 = vadd.f32 %v5095_v43, %v5094_v26 }
 0x4e9   :  { %v5043_v31 = vadd.f32 %v5042_v55, %v5041_v23 }
 0x4eb   :  { %v4369_v2 = vadd.f32 %v5043_v31, %v4168_v0  ;;  %v5044_v12 = vpop.f32.mrb[50].mxu0 }
 0x4ec   :  { %v5045_v41 = vpop.f32.mrb[51].mxu0 }
 0x4ed   :  { %v4494_v56 = vadd.f32 %v5087_v11, %v4369_v2  ;;  %v5046_v5 = vadd.f32 %v5045_v41, %v5044_v12 }
 0x4ef   :  { %v4518_v37 = vmul.f32 0.5, %v4494_v56  ;;  %v4376_v10 = vadd.f32 %v5046_v5, %v4179_v49  ;;  %v5047_v8 = vpop.f32.mrb[52].mxu0 }
 0x4f0   :  { %v5048_v14 = vpop.f32.mrb[53].mxu0 }
 0x4f1   :  { %v4522_v28 = vadd.f32 %v6046_v62, %v4518_v37  ;;  %v4501_v17 = vadd.f32 %v5090_v35, %v4376_v10  ;;  %v5049_v46 = vadd.f32 %v5048_v14, %v5047_v8 }
 0x4f3   :  { %4526 = vst [vmem:[#allocation14] sm:$0xff] %v4522_v28  ;;  %v4519_v39 = vmul.f32 0.5, %v4501_v17  ;;  %v4383_v9 = vadd.f32 %v5049_v46, %v4190_v7  ;;  %v5050_v30 = vpop.f32.mrb[54].mxu0 }
 0x4f4   :  { %v5051_v54 = vpop.f32.mrb[55].mxu0 }
 0x4f5   :  { %v4523_v59 = vadd.f32 %v6047_v47, %v4519_v39  ;;  %v4508_v51 = vadd.f32 %v5093_v61, %v4383_v9  ;;  %v5052_v16 = vadd.f32 %v5051_v54, %v5050_v30 }
 0x4f7   :  { %4527 = vst [vmem:[#allocation14 + $0x8] sm:$0xff] %v4523_v59  ;;  %v4520_v21 = vmul.f32 0.5, %v4508_v51  ;;  %v4390_v42 = vadd.f32 %v5052_v16, %v4201_v3 }
 0x4f9   :  { %v4524_v50 = vadd.f32 %v6048_v32, %v4520_v21  ;;  %v4515_v38 = vadd.f32 %v5096_v19, %v4390_v42 }
 0x4fb   :  { %4528 = vst [vmem:[#allocation14 + $0x10] sm:$0xff] %v4524_v50  ;;  %v4521_v34 = vmul.f32 0.5, %v4515_v38 }
 0x4fd   :  { %v4525_v40 = vadd.f32 %v6049_v25, %v4521_v34 }
 0x4ff   :  { %4529 = vst [vmem:[#allocation14 + $0x18] sm:$0xff] %v4525_v40 }
 0x500   :  { %6215 = shalt.err (!%p6212_p4)
}
 0x501   :  { %s6216_s19 = scalar_lea.hbm %s9487_s7, 512 }
 0x502   :  { %p6217_p5 = scmp.ne.s32.totalorder %s9487_s7, %s6216_s19  ;;  %p6220_p6 = scmp.lt.u32.totalorder %s6216_s19, %s9487_s7 }
 0x504   :  { %p6222_p7 = pnand %p6220_p6, %p6217_p5 }
 0x506   :  { %6225 = shalt.err (!%p6222_p7)
}
 0x507   :  { %4541 = dma.vmem_to_hbm [thread:$0]  %s4536_s0, 512, %s9487_s7, [#allocation4], %s6242_s27, %s6242_s27, %s6243_s16  }
 0x508   :  { %6234 = dma.done.wait [#allocation4], 512  }
 0x509   :  { %6235 = vsyncadd [#allocation4], 4294966784 }
 0x50a   :  { %4545 = vsyncpa [#allocation3], 1 }
 0x50b   :  { %4546 = vsyncpa [#allocation6], 1 }
 0x50c   :  { %4547 = vsyncpa [#allocation9], 1 }
 0x50d   :  { %4548 = vsyncpa [#allocation12], 1 }
 0x50e   :  { %4549 = vsyncpa [#allocation4], 1 }

</bundles_post_ra>
